<compile_context>
chip_gen: v7x
topology: tpu7x:2x2x1
jax: 0.10.0
libtpu: 0.0.40
codegen_flags: <defaults>
</compile_context>

<pallas_src>
import functools

import jax
import jax.numpy as jnp
from jax.experimental import pallas as pl
from jax.experimental.pallas import tpu as pltpu


def _basic_block_kernel(x_ref, w1_ref, b1_ref, w2_ref, b2_ref, out_ref,
                        xpad_ref, *, H, W, C, Cp):
    """Fused BasicBlock forward for one batch element.

    x_ref   : (1, H, W, C)    f32   input tile (NHWC, unpadded)
    w1_ref  : (9, Cp, Cp)     bf16  conv1 weights, taps flattened, BN1-folded
    b1_ref  : (1, Cp)         f32   folded BN1 bias
    w2_ref  : (9, Cp, Cp)     bf16  conv2 weights, BN2-folded
    b2_ref  : (1, Cp)         f32   folded BN2 bias
    out_ref : (1, H, W, Cp)   f32   output tile (channel-padded, lane dense)
    xpad_ref: (H+2, W+2, Cp)  f32   VMEM scratch: spatial halo + channel pad
    """
    # Zero once per step: gives the spatial halo and the zero-filled padded
    # channels without any HBM-side jnp.pad. (~40 vregs of stores; trivial.)
    xpad_ref[...] = jnp.zeros_like(xpad_ref)
    xpad_ref[1:H + 1, 1:W + 1, 0:C] = x_ref[0]

    # Padded identity (channels C:Cp are exactly zero), captured before the
    # scratch interior is reused for the conv1 output. Stays in VMEM, f32.
    ident = xpad_ref[1:H + 1, 1:W + 1, :].reshape(H * W, Cp)

    def conv3x3(w_ref, acc0):
        # acc0 already holds the folded-BN bias (and optionally the residual).
        acc = acc0
        for kh in range(3):
            for kw in range(3):
                xs = xpad_ref[kh:kh + H, kw:kw + W, :]            # (H, W, Cp)
                xs = xs.reshape(H * W, Cp).astype(jnp.bfloat16)   # lane-dense
                acc = acc + jnp.dot(xs, w_ref[kh * 3 + kw],
                                    preferred_element_type=jnp.float32)
        return acc                                                # (H*W, Cp) f32

    # conv1 -> bn1 -> relu; intermediate stays in VMEM. Rewrite only the
    # interior of the scratch for conv2 -- the zero halo is untouched.
    b1 = jnp.broadcast_to(b1_ref[...], (H * W, Cp)).astype(jnp.float32)
    y1 = jnp.maximum(conv3x3(w1_ref, b1), 0.0)
    xpad_ref[1:H + 1, 1:W + 1, :] = y1.reshape(H, W, Cp)

    # conv2 -> bn2, with the residual fused into the accumulator init.
    acc0 = jnp.broadcast_to(b2_ref[...], (H * W, Cp)).astype(jnp.float32) + ident
    y2 = conv3x3(w2_ref, acc0)

    # Final ReLU: one full-width lane-dense store (padded channels are 0).
    out_ref[0] = jnp.maximum(y2, 0.0).reshape(H, W, Cp)


def _fold_bn_into_conv(w_oihw, gamma, beta, mean, var, cin, cout, cp,
                       eps=1e-5):
    """Fold inference-mode BN into conv weights; pad channels to cp."""
    scale = gamma / jnp.sqrt(var + eps)                      # (cout,)
    bias = beta - mean * scale                               # (cout,)
    w = jnp.transpose(w_oihw, (2, 3, 1, 0))                  # OIHW -> HWIO
    w = w * scale[None, None, None, :]                       # fold BN scale
    w_p = jnp.zeros((3, 3, cp, cp), jnp.float32).at[:, :, :cin, :cout].set(w)
    w_p = w_p.reshape(9, cp, cp).astype(jnp.bfloat16)        # bf16 MXU weights
    b_p = jnp.zeros((1, cp), jnp.float32).at[0, :cout].set(bias)
    return w_p, b_p


def basic_block_forward(x_nchw, params):
    """BasicBlock forward (stride=1, downsample=None), inference-mode BN.

    x_nchw: (N, C, H, W) float32, C == inplanes == planes.
    """
    N, C, H, W = x_nchw.shape
    Cp = ((C + 127) // 128) * 128            # lane-dense channel padding

    x = jnp.transpose(x_nchw, (0, 2, 3, 1))  # NCHW -> NHWC (channels last)

    w1, b1 = _fold_bn_into_conv(params["conv1_w"], params["bn1_gamma"],
                                params["bn1_beta"], params["bn1_mean"],
                                params["bn1_var"], C, C, Cp)
    w2, b2 = _fold_bn_into_conv(params["conv2_w"], params["bn2_gamma"],
                                params["bn2_beta"], params["bn2_mean"],
                                params["bn2_var"], C, C, Cp)

    kern = functools.partial(_basic_block_kernel, H=H, W=W, C=C, Cp=Cp)
    out_p = pl.pallas_call(
        kern,
        out_shape=jax.ShapeDtypeStruct((N, H, W, Cp), jnp.float32),
        grid_spec=pltpu.PrefetchScalarGridSpec(
            num_scalar_prefetch=0,
            grid=(N,),
            in_specs=[
                pl.BlockSpec((1, H, W, C), lambda n: (n, 0, 0, 0)),   # x
                pl.BlockSpec((9, Cp, Cp), lambda n: (0, 0, 0)),       # w1
                pl.BlockSpec((1, Cp), lambda n: (0, 0)),              # b1
                pl.BlockSpec((9, Cp, Cp), lambda n: (0, 0, 0)),       # w2
                pl.BlockSpec((1, Cp), lambda n: (0, 0)),              # b2
            ],
            out_specs=pl.BlockSpec((1, H, W, Cp), lambda n: (n, 0, 0, 0)),
            scratch_shapes=[pltpu.VMEM((H + 2, W + 2, Cp), jnp.float32)],
        ),
        compiler_params=pltpu.CompilerParams(
            dimension_semantics=("parallel",)),
    )(x, w1, b1, w2, b2)

    out = out_p[..., :C]                      # drop channel padding
    return jnp.transpose(out, (0, 3, 1, 2))   # NHWC -> NCHW


def _reference_forward(x_nchw, params):
    """Pure-JAX f32 reference using lax.conv_general_dilated (NCHW, OIHW)."""
    def conv(x, w):
        return jax.lax.conv_general_dilated(
            x, w, window_strides=(1, 1), padding=((1, 1), (1, 1)),
            dimension_numbers=("NCHW", "OIHW", "NCHW"))

    def bn(x, g, b, m, v, eps=1e-5):
        g = g[None, :, None, None]
        b = b[None, :, None, None]
        m = m[None, :, None, None]
        v = v[None, :, None, None]
        return (x - m) / jnp.sqrt(v + eps) * g + b

    out = conv(x_nchw, params["conv1_w"])
    out = bn(out, params["bn1_gamma"], params["bn1_beta"],
             params["bn1_mean"], params["bn1_var"])
    out = jnp.maximum(out, 0.0)
    out = conv(out, params["conv2_w"])
    out = bn(out, params["bn2_gamma"], params["bn2_beta"],
             params["bn2_mean"], params["bn2_var"])
    out = out + x_nchw
    return jnp.maximum(out, 0.0)


def _init_params(key, inplanes, planes):
    ks = jax.random.split(key, 10)
    return {
        "conv1_w": 0.1 * jax.random.normal(ks[0], (planes, inplanes, 3, 3),
                                           jnp.float32),
        "conv2_w": 0.1 * jax.random.normal(ks[1], (planes, planes, 3, 3),
                                           jnp.float32),
        "bn1_gamma": 1.0 + 0.1 * jax.random.normal(ks[2], (planes,), jnp.float32),
        "bn1_beta": 0.1 * jax.random.normal(ks[3], (planes,), jnp.float32),
        "bn1_mean": 0.1 * jax.random.normal(ks[4], (planes,), jnp.float32),
        "bn1_var": 1.0 + 0.1 * jnp.abs(jax.random.normal(ks[5], (planes,),
                                                         jnp.float32)),
        "bn2_gamma": 1.0 + 0.1 * jax.random.normal(ks[6], (planes,), jnp.float32),
        "bn2_beta": 0.1 * jax.random.normal(ks[7], (planes,), jnp.float32),
        "bn2_mean": 0.1 * jax.random.normal(ks[8], (planes,), jnp.float32),
        "bn2_var": 1.0 + 0.1 * jnp.abs(jax.random.normal(ks[9], (planes,),
                                                         jnp.float32)),
    }


if __name__ == "__main__":
    N, C, H, W = 2, 4, 16, 16     # inplanes = planes = 4, stride = 1
    key = jax.random.PRNGKey(0)
    kx, kp = jax.random.split(key)
    x = jax.random.normal(kx, (N, C, H, W), jnp.float32)
    params = _init_params(kp, C, C)

    out = jax.block_until_ready(basic_block_forward(x, params))
    ref = jax.block_until_ready(_reference_forward(x, params))

    assert out.shape == (N, C, H, W), out.shape
    # bf16 MXU inputs -> looser tolerance than a pure-f32 conv.
    assert jnp.allclose(out, ref, atol=2e-2, rtol=2e-2), (
        float(jnp.max(jnp.abs(out - ref))))
    print("KERNEL_OK")
</pallas_src>

<mosaic_0001>
module attributes {stable_mosaic.version = 11 : i64} {
  func.func @_basic_block_kernel(%arg0: i32, %arg1: memref<1x16x16x4xf32, #tpu.memory_space<vmem>>, %arg2: memref<9x128x128xbf16, #tpu.memory_space<vmem>>, %arg3: memref<1x128xf32, #tpu.memory_space<vmem>>, %arg4: memref<9x128x128xbf16, #tpu.memory_space<vmem>>, %arg5: memref<1x128xf32, #tpu.memory_space<vmem>>, %arg6: memref<1x16x16x128xf32, #tpu.memory_space<vmem>>, %arg7: memref<18x18x128xf32, #tpu.memory_space<vmem>>) attributes {dimension_semantics = [#tpu.dimension_semantics<parallel>], iteration_bounds = array<i64: 2>, scalar_prefetch = 0 : i64, scratch_operands = 1 : i64, tpu.core_type = #tpu.core_type<tc>, window_params = [{transform_indices = @transform_0, window_bounds = array<i64: 1, 16, 16, 4>}, {pipeline_mode = #tpu.pipeline_mode<synchronous>, transform_indices = @transform_1, window_bounds = array<i64: 9, 128, 128>}, {pipeline_mode = #tpu.pipeline_mode<synchronous>, transform_indices = @transform_2, window_bounds = array<i64: 1, 128>}, {pipeline_mode = #tpu.pipeline_mode<synchronous>, transform_indices = @transform_3, window_bounds = array<i64: 9, 128, 128>}, {pipeline_mode = #tpu.pipeline_mode<synchronous>, transform_indices = @transform_4, window_bounds = array<i64: 1, 128>}, {transform_indices = @transform_5, window_bounds = array<i64: 1, 16, 16, 128>}]} {
    %cst = arith.constant 0.000000e+00 : f32
    %0 = vector.broadcast %cst : f32 to vector<18x18x128xf32>
    %c0 = arith.constant 0 : index
    %c0_0 = arith.constant 0 : index
    %c0_1 = arith.constant 0 : index
    %1 = vector.load %arg7[%c0, %c0_0, %c0_1] : memref<18x18x128xf32, #tpu.memory_space<vmem>>, vector<18x18x128xf32>
    tpu.vector_store %arg7[%c0, %c0_0, %c0_1], %0 {strides = array<i32>} : memref<18x18x128xf32, #tpu.memory_space<vmem>>, vector<18x18x128xf32>,
    %c0_2 = arith.constant 0 : index
    %c0_3 = arith.constant 0 : index
    %c0_4 = arith.constant 0 : index
    %c0_5 = arith.constant 0 : index
    %2 = vector.load %arg1[%c0_2, %c0_3, %c0_4, %c0_5] : memref<1x16x16x4xf32, #tpu.memory_space<vmem>>, vector<1x16x16x4xf32>
    %3 = vector.shape_cast %2 : vector<1x16x16x4xf32> to vector<16x16x4xf32>
    %c1 = arith.constant 1 : index
    %c1_6 = arith.constant 1 : index
    %c0_7 = arith.constant 0 : index
    %4 = vector.load %arg7[%c1, %c1_6, %c0_7] : memref<18x18x128xf32, #tpu.memory_space<vmem>>, vector<16x16x4xf32>
    tpu.vector_store %arg7[%c1, %c1_6, %c0_7], %3 {strides = array<i32>} : memref<18x18x128xf32, #tpu.memory_space<vmem>>, vector<16x16x4xf32>,
    %c1_8 = arith.constant 1 : index
    %c1_9 = arith.constant 1 : index
    %c0_10 = arith.constant 0 : index
    %5 = vector.load %arg7[%c1_8, %c1_9, %c0_10] : memref<18x18x128xf32, #tpu.memory_space<vmem>>, vector<16x16x128xf32>
    %6 = vector.shape_cast %5 : vector<16x16x128xf32> to vector<256x128xf32>
    %c0_11 = arith.constant 0 : index
    %c0_12 = arith.constant 0 : index
    %7 = vector.load %arg3[%c0_11, %c0_12] : memref<1x128xf32, #tpu.memory_space<vmem>>, vector<1x128xf32>
    %8 = vector.shape_cast %7 : vector<1x128xf32> to vector<1x128xf32>
    %9 = vector.broadcast %8 : vector<1x128xf32> to vector<256x128xf32>
    %c0_13 = arith.constant 0 : index
    %c0_14 = arith.constant 0 : index
    %c0_15 = arith.constant 0 : index
    %10 = vector.load %arg7[%c0_13, %c0_14, %c0_15] : memref<18x18x128xf32, #tpu.memory_space<vmem>>, vector<16x16x128xf32>
    %11 = vector.shape_cast %10 : vector<16x16x128xf32> to vector<256x128xf32>
    %12 = arith.truncf %11 : vector<256x128xf32> to vector<256x128xbf16>
    %c0_16 = arith.constant 0 : index
    %c0_17 = arith.constant 0 : index
    %c0_18 = arith.constant 0 : index
    %13 = vector.load %arg2[%c0_16, %c0_17, %c0_18] : memref<9x128x128xbf16, #tpu.memory_space<vmem>>, vector<1x128x128xbf16>
    %14 = vector.shape_cast %13 : vector<1x128x128xbf16> to vector<128x128xbf16>
    %cst_19 = arith.constant dense<0.000000e+00> : vector<256x128xf32>
    %15 = tpu.matmul %12, %14, %cst_19 {dimension_numbers = #tpu.dot_dimension_numbers<[1], [0], [0], [1], [0, 0, 1, 1], [], []>} : vector<256x128xbf16>, vector<128x128xbf16>, vector<256x128xf32> -> vector<256x128xf32>
    %16 = arith.addf %9, %15 : vector<256x128xf32>
    %c0_20 = arith.constant 0 : index
    %c1_21 = arith.constant 1 : index
    %c0_22 = arith.constant 0 : index
    %17 = vector.load %arg7[%c0_20, %c1_21, %c0_22] : memref<18x18x128xf32, #tpu.memory_space<vmem>>, vector<16x16x128xf32>
    %18 = vector.shape_cast %17 : vector<16x16x128xf32> to vector<256x128xf32>
    %19 = arith.truncf %18 : vector<256x128xf32> to vector<256x128xbf16>
    %c1_23 = arith.constant 1 : index
    %c0_24 = arith.constant 0 : index
    %c0_25 = arith.constant 0 : index
    %20 = vector.load %arg2[%c1_23, %c0_24, %c0_25] : memref<9x128x128xbf16, #tpu.memory_space<vmem>>, vector<1x128x128xbf16>
    %21 = vector.shape_cast %20 : vector<1x128x128xbf16> to vector<128x128xbf16>
    %cst_26 = arith.constant dense<0.000000e+00> : vector<256x128xf32>
    %22 = tpu.matmul %19, %21, %cst_26 {dimension_numbers = #tpu.dot_dimension_numbers<[1], [0], [0], [1], [0, 0, 1, 1], [], []>} : vector<256x128xbf16>, vector<128x128xbf16>, vector<256x128xf32> -> vector<256x128xf32>
    %23 = arith.addf %16, %22 : vector<256x128xf32>
    %c0_27 = arith.constant 0 : index
    %c2 = arith.constant 2 : index
    %c0_28 = arith.constant 0 : index
    %24 = vector.load %arg7[%c0_27, %c2, %c0_28] : memref<18x18x128xf32, #tpu.memory_space<vmem>>, vector<16x16x128xf32>
    %25 = vector.shape_cast %24 : vector<16x16x128xf32> to vector<256x128xf32>
    %26 = arith.truncf %25 : vector<256x128xf32> to vector<256x128xbf16>
    %c2_29 = arith.constant 2 : index
    %c0_30 = arith.constant 0 : index
    %c0_31 = arith.constant 0 : index
    %27 = vector.load %arg2[%c2_29, %c0_30, %c0_31] : memref<9x128x128xbf16, #tpu.memory_space<vmem>>, vector<1x128x128xbf16>
    %28 = vector.shape_cast %27 : vector<1x128x128xbf16> to vector<128x128xbf16>
    %cst_32 = arith.constant dense<0.000000e+00> : vector<256x128xf32>
    %29 = tpu.matmul %26, %28, %cst_32 {dimension_numbers = #tpu.dot_dimension_numbers<[1], [0], [0], [1], [0, 0, 1, 1], [], []>} : vector<256x128xbf16>, vector<128x128xbf16>, vector<256x128xf32> -> vector<256x128xf32>
    %30 = arith.addf %23, %29 : vector<256x128xf32>
    %c1_33 = arith.constant 1 : index
    %c0_34 = arith.constant 0 : index
    %c0_35 = arith.constant 0 : index
    %31 = vector.load %arg7[%c1_33, %c0_34, %c0_35] : memref<18x18x128xf32, #tpu.memory_space<vmem>>, vector<16x16x128xf32>
    %32 = vector.shape_cast %31 : vector<16x16x128xf32> to vector<256x128xf32>
    %33 = arith.truncf %32 : vector<256x128xf32> to vector<256x128xbf16>
    %c3 = arith.constant 3 : index
    %c0_36 = arith.constant 0 : index
    %c0_37 = arith.constant 0 : index
    %34 = vector.load %arg2[%c3, %c0_36, %c0_37] : memref<9x128x128xbf16, #tpu.memory_space<vmem>>, vector<1x128x128xbf16>
    %35 = vector.shape_cast %34 : vector<1x128x128xbf16> to vector<128x128xbf16>
    %cst_38 = arith.constant dense<0.000000e+00> : vector<256x128xf32>
    %36 = tpu.matmul %33, %35, %cst_38 {dimension_numbers = #tpu.dot_dimension_numbers<[1], [0], [0], [1], [0, 0, 1, 1], [], []>} : vector<256x128xbf16>, vector<128x128xbf16>, vector<256x128xf32> -> vector<256x128xf32>
    %37 = arith.addf %30, %36 : vector<256x128xf32>
    %c1_39 = arith.constant 1 : index
    %c1_40 = arith.constant 1 : index
    %c0_41 = arith.constant 0 : index
    %38 = vector.load %arg7[%c1_39, %c1_40, %c0_41] : memref<18x18x128xf32, #tpu.memory_space<vmem>>, vector<16x16x128xf32>
    %39 = vector.shape_cast %38 : vector<16x16x128xf32> to vector<256x128xf32>
    %40 = arith.truncf %39 : vector<256x128xf32> to vector<256x128xbf16>
    %c4 = arith.constant 4 : index
    %c0_42 = arith.constant 0 : index
    %c0_43 = arith.constant 0 : index
    %41 = vector.load %arg2[%c4, %c0_42, %c0_43] : memref<9x128x128xbf16, #tpu.memory_space<vmem>>, vector<1x128x128xbf16>
    %42 = vector.shape_cast %41 : vector<1x128x128xbf16> to vector<128x128xbf16>
    %cst_44 = arith.constant dense<0.000000e+00> : vector<256x128xf32>
    %43 = tpu.matmul %40, %42, %cst_44 {dimension_numbers = #tpu.dot_dimension_numbers<[1], [0], [0], [1], [0, 0, 1, 1], [], []>} : vector<256x128xbf16>, vector<128x128xbf16>, vector<256x128xf32> -> vector<256x128xf32>
    %44 = arith.addf %37, %43 : vector<256x128xf32>
    %c1_45 = arith.constant 1 : index
    %c2_46 = arith.constant 2 : index
    %c0_47 = arith.constant 0 : index
    %45 = vector.load %arg7[%c1_45, %c2_46, %c0_47] : memref<18x18x128xf32, #tpu.memory_space<vmem>>, vector<16x16x128xf32>
    %46 = vector.shape_cast %45 : vector<16x16x128xf32> to vector<256x128xf32>
    %47 = arith.truncf %46 : vector<256x128xf32> to vector<256x128xbf16>
    %c5 = arith.constant 5 : index
    %c0_48 = arith.constant 0 : index
    %c0_49 = arith.constant 0 : index
    %48 = vector.load %arg2[%c5, %c0_48, %c0_49] : memref<9x128x128xbf16, #tpu.memory_space<vmem>>, vector<1x128x128xbf16>
    %49 = vector.shape_cast %48 : vector<1x128x128xbf16> to vector<128x128xbf16>
    %cst_50 = arith.constant dense<0.000000e+00> : vector<256x128xf32>
    %50 = tpu.matmul %47, %49, %cst_50 {dimension_numbers = #tpu.dot_dimension_numbers<[1], [0], [0], [1], [0, 0, 1, 1], [], []>} : vector<256x128xbf16>, vector<128x128xbf16>, vector<256x128xf32> -> vector<256x128xf32>
    %51 = arith.addf %44, %50 : vector<256x128xf32>
    %c2_51 = arith.constant 2 : index
    %c0_52 = arith.constant 0 : index
    %c0_53 = arith.constant 0 : index
    %52 = vector.load %arg7[%c2_51, %c0_52, %c0_53] : memref<18x18x128xf32, #tpu.memory_space<vmem>>, vector<16x16x128xf32>
    %53 = vector.shape_cast %52 : vector<16x16x128xf32> to vector<256x128xf32>
    %54 = arith.truncf %53 : vector<256x128xf32> to vector<256x128xbf16>
    %c6 = arith.constant 6 : index
    %c0_54 = arith.constant 0 : index
    %c0_55 = arith.constant 0 : index
    %55 = vector.load %arg2[%c6, %c0_54, %c0_55] : memref<9x128x128xbf16, #tpu.memory_space<vmem>>, vector<1x128x128xbf16>
    %56 = vector.shape_cast %55 : vector<1x128x128xbf16> to vector<128x128xbf16>
    %cst_56 = arith.constant dense<0.000000e+00> : vector<256x128xf32>
    %57 = tpu.matmul %54, %56, %cst_56 {dimension_numbers = #tpu.dot_dimension_numbers<[1], [0], [0], [1], [0, 0, 1, 1], [], []>} : vector<256x128xbf16>, vector<128x128xbf16>, vector<256x128xf32> -> vector<256x128xf32>
    %58 = arith.addf %51, %57 : vector<256x128xf32>
    %c2_57 = arith.constant 2 : index
    %c1_58 = arith.constant 1 : index
    %c0_59 = arith.constant 0 : index
    %59 = vector.load %arg7[%c2_57, %c1_58, %c0_59] : memref<18x18x128xf32, #tpu.memory_space<vmem>>, vector<16x16x128xf32>
    %60 = vector.shape_cast %59 : vector<16x16x128xf32> to vector<256x128xf32>
    %61 = arith.truncf %60 : vector<256x128xf32> to vector<256x128xbf16>
    %c7 = arith.constant 7 : index
    %c0_60 = arith.constant 0 : index
    %c0_61 = arith.constant 0 : index
    %62 = vector.load %arg2[%c7, %c0_60, %c0_61] : memref<9x128x128xbf16, #tpu.memory_space<vmem>>, vector<1x128x128xbf16>
    %63 = vector.shape_cast %62 : vector<1x128x128xbf16> to vector<128x128xbf16>
    %cst_62 = arith.constant dense<0.000000e+00> : vector<256x128xf32>
    %64 = tpu.matmul %61, %63, %cst_62 {dimension_numbers = #tpu.dot_dimension_numbers<[1], [0], [0], [1], [0, 0, 1, 1], [], []>} : vector<256x128xbf16>, vector<128x128xbf16>, vector<256x128xf32> -> vector<256x128xf32>
    %65 = arith.addf %58, %64 : vector<256x128xf32>
    %c2_63 = arith.constant 2 : index
    %c2_64 = arith.constant 2 : index
    %c0_65 = arith.constant 0 : index
    %66 = vector.load %arg7[%c2_63, %c2_64, %c0_65] : memref<18x18x128xf32, #tpu.memory_space<vmem>>, vector<16x16x128xf32>
    %67 = vector.shape_cast %66 : vector<16x16x128xf32> to vector<256x128xf32>
    %68 = arith.truncf %67 : vector<256x128xf32> to vector<256x128xbf16>
    %c8 = arith.constant 8 : index
    %c0_66 = arith.constant 0 : index
    %c0_67 = arith.constant 0 : index
    %69 = vector.load %arg2[%c8, %c0_66, %c0_67] : memref<9x128x128xbf16, #tpu.memory_space<vmem>>, vector<1x128x128xbf16>
    %70 = vector.shape_cast %69 : vector<1x128x128xbf16> to vector<128x128xbf16>
    %cst_68 = arith.constant dense<0.000000e+00> : vector<256x128xf32>
    %71 = tpu.matmul %68, %70, %cst_68 {dimension_numbers = #tpu.dot_dimension_numbers<[1], [0], [0], [1], [0, 0, 1, 1], [], []>} : vector<256x128xbf16>, vector<128x128xbf16>, vector<256x128xf32> -> vector<256x128xf32>
    %72 = arith.addf %65, %71 : vector<256x128xf32>
    %cst_69 = arith.constant 0.000000e+00 : f32
    %73 = vector.broadcast %cst_69 : f32 to vector<256x128xf32>
    %74 = arith.maximumf %72, %73 : vector<256x128xf32>
    %75 = vector.shape_cast %74 : vector<256x128xf32> to vector<16x16x128xf32>
    %c1_70 = arith.constant 1 : index
    %c1_71 = arith.constant 1 : index
    %c0_72 = arith.constant 0 : index
    %76 = vector.load %arg7[%c1_70, %c1_71, %c0_72] : memref<18x18x128xf32, #tpu.memory_space<vmem>>, vector<16x16x128xf32>
    tpu.vector_store %arg7[%c1_70, %c1_71, %c0_72], %75 {strides = array<i32>} : memref<18x18x128xf32, #tpu.memory_space<vmem>>, vector<16x16x128xf32>,
    %c0_73 = arith.constant 0 : index
    %c0_74 = arith.constant 0 : index
    %77 = vector.load %arg5[%c0_73, %c0_74] : memref<1x128xf32, #tpu.memory_space<vmem>>, vector<1x128xf32>
    %78 = vector.shape_cast %77 : vector<1x128xf32> to vector<1x128xf32>
    %79 = vector.broadcast %78 : vector<1x128xf32> to vector<256x128xf32>
    %80 = arith.addf %79, %6 : vector<256x128xf32>
    %c0_75 = arith.constant 0 : index
    %c0_76 = arith.constant 0 : index
    %c0_77 = arith.constant 0 : index
    %81 = vector.load %arg7[%c0_75, %c0_76, %c0_77] : memref<18x18x128xf32, #tpu.memory_space<vmem>>, vector<16x16x128xf32>
    %82 = vector.shape_cast %81 : vector<16x16x128xf32> to vector<256x128xf32>
    %83 = arith.truncf %82 : vector<256x128xf32> to vector<256x128xbf16>
    %c0_78 = arith.constant 0 : index
    %c0_79 = arith.constant 0 : index
    %c0_80 = arith.constant 0 : index
    %84 = vector.load %arg4[%c0_78, %c0_79, %c0_80] : memref<9x128x128xbf16, #tpu.memory_space<vmem>>, vector<1x128x128xbf16>
    %85 = vector.shape_cast %84 : vector<1x128x128xbf16> to vector<128x128xbf16>
    %cst_81 = arith.constant dense<0.000000e+00> : vector<256x128xf32>
    %86 = tpu.matmul %83, %85, %cst_81 {dimension_numbers = #tpu.dot_dimension_numbers<[1], [0], [0], [1], [0, 0, 1, 1], [], []>} : vector<256x128xbf16>, vector<128x128xbf16>, vector<256x128xf32> -> vector<256x128xf32>
    %87 = arith.addf %80, %86 : vector<256x128xf32>
    %c0_82 = arith.constant 0 : index
    %c1_83 = arith.constant 1 : index
    %c0_84 = arith.constant 0 : index
    %88 = vector.load %arg7[%c0_82, %c1_83, %c0_84] : memref<18x18x128xf32, #tpu.memory_space<vmem>>, vector<16x16x128xf32>
    %89 = vector.shape_cast %88 : vector<16x16x128xf32> to vector<256x128xf32>
    %90 = arith.truncf %89 : vector<256x128xf32> to vector<256x128xbf16>
    %c1_85 = arith.constant 1 : index
    %c0_86 = arith.constant 0 : index
    %c0_87 = arith.constant 0 : index
    %91 = vector.load %arg4[%c1_85, %c0_86, %c0_87] : memref<9x128x128xbf16, #tpu.memory_space<vmem>>, vector<1x128x128xbf16>
    %92 = vector.shape_cast %91 : vector<1x128x128xbf16> to vector<128x128xbf16>
    %cst_88 = arith.constant dense<0.000000e+00> : vector<256x128xf32>
    %93 = tpu.matmul %90, %92, %cst_88 {dimension_numbers = #tpu.dot_dimension_numbers<[1], [0], [0], [1], [0, 0, 1, 1], [], []>} : vector<256x128xbf16>, vector<128x128xbf16>, vector<256x128xf32> -> vector<256x128xf32>
    %94 = arith.addf %87, %93 : vector<256x128xf32>
    %c0_89 = arith.constant 0 : index
    %c2_90 = arith.constant 2 : index
    %c0_91 = arith.constant 0 : index
    %95 = vector.load %arg7[%c0_89, %c2_90, %c0_91] : memref<18x18x128xf32, #tpu.memory_space<vmem>>, vector<16x16x128xf32>
    %96 = vector.shape_cast %95 : vector<16x16x128xf32> to vector<256x128xf32>
    %97 = arith.truncf %96 : vector<256x128xf32> to vector<256x128xbf16>
    %c2_92 = arith.constant 2 : index
    %c0_93 = arith.constant 0 : index
    %c0_94 = arith.constant 0 : index
    %98 = vector.load %arg4[%c2_92, %c0_93, %c0_94] : memref<9x128x128xbf16, #tpu.memory_space<vmem>>, vector<1x128x128xbf16>
    %99 = vector.shape_cast %98 : vector<1x128x128xbf16> to vector<128x128xbf16>
    %cst_95 = arith.constant dense<0.000000e+00> : vector<256x128xf32>
    %100 = tpu.matmul %97, %99, %cst_95 {dimension_numbers = #tpu.dot_dimension_numbers<[1], [0], [0], [1], [0, 0, 1, 1], [], []>} : vector<256x128xbf16>, vector<128x128xbf16>, vector<256x128xf32> -> vector<256x128xf32>
    %101 = arith.addf %94, %100 : vector<256x128xf32>
    %c1_96 = arith.constant 1 : index
    %c0_97 = arith.constant 0 : index
    %c0_98 = arith.constant 0 : index
    %102 = vector.load %arg7[%c1_96, %c0_97, %c0_98] : memref<18x18x128xf32, #tpu.memory_space<vmem>>, vector<16x16x128xf32>
    %103 = vector.shape_cast %102 : vector<16x16x128xf32> to vector<256x128xf32>
    %104 = arith.truncf %103 : vector<256x128xf32> to vector<256x128xbf16>
    %c3_99 = arith.constant 3 : index
    %c0_100 = arith.constant 0 : index
    %c0_101 = arith.constant 0 : index
    %105 = vector.load %arg4[%c3_99, %c0_100, %c0_101] : memref<9x128x128xbf16, #tpu.memory_space<vmem>>, vector<1x128x128xbf16>
    %106 = vector.shape_cast %105 : vector<1x128x128xbf16> to vector<128x128xbf16>
    %cst_102 = arith.constant dense<0.000000e+00> : vector<256x128xf32>
    %107 = tpu.matmul %104, %106, %cst_102 {dimension_numbers = #tpu.dot_dimension_numbers<[1], [0], [0], [1], [0, 0, 1, 1], [], []>} : vector<256x128xbf16>, vector<128x128xbf16>, vector<256x128xf32> -> vector<256x128xf32>
    %108 = arith.addf %101, %107 : vector<256x128xf32>
    %c1_103 = arith.constant 1 : index
    %c1_104 = arith.constant 1 : index
    %c0_105 = arith.constant 0 : index
    %109 = vector.load %arg7[%c1_103, %c1_104, %c0_105] : memref<18x18x128xf32, #tpu.memory_space<vmem>>, vector<16x16x128xf32>
    %110 = vector.shape_cast %109 : vector<16x16x128xf32> to vector<256x128xf32>
    %111 = arith.truncf %110 : vector<256x128xf32> to vector<256x128xbf16>
    %c4_106 = arith.constant 4 : index
    %c0_107 = arith.constant 0 : index
    %c0_108 = arith.constant 0 : index
    %112 = vector.load %arg4[%c4_106, %c0_107, %c0_108] : memref<9x128x128xbf16, #tpu.memory_space<vmem>>, vector<1x128x128xbf16>
    %113 = vector.shape_cast %112 : vector<1x128x128xbf16> to vector<128x128xbf16>
    %cst_109 = arith.constant dense<0.000000e+00> : vector<256x128xf32>
    %114 = tpu.matmul %111, %113, %cst_109 {dimension_numbers = #tpu.dot_dimension_numbers<[1], [0], [0], [1], [0, 0, 1, 1], [], []>} : vector<256x128xbf16>, vector<128x128xbf16>, vector<256x128xf32> -> vector<256x128xf32>
    %115 = arith.addf %108, %114 : vector<256x128xf32>
    %c1_110 = arith.constant 1 : index
    %c2_111 = arith.constant 2 : index
    %c0_112 = arith.constant 0 : index
    %116 = vector.load %arg7[%c1_110, %c2_111, %c0_112] : memref<18x18x128xf32, #tpu.memory_space<vmem>>, vector<16x16x128xf32>
    %117 = vector.shape_cast %116 : vector<16x16x128xf32> to vector<256x128xf32>
    %118 = arith.truncf %117 : vector<256x128xf32> to vector<256x128xbf16>
    %c5_113 = arith.constant 5 : index
    %c0_114 = arith.constant 0 : index
    %c0_115 = arith.constant 0 : index
    %119 = vector.load %arg4[%c5_113, %c0_114, %c0_115] : memref<9x128x128xbf16, #tpu.memory_space<vmem>>, vector<1x128x128xbf16>
    %120 = vector.shape_cast %119 : vector<1x128x128xbf16> to vector<128x128xbf16>
    %cst_116 = arith.constant dense<0.000000e+00> : vector<256x128xf32>
    %121 = tpu.matmul %118, %120, %cst_116 {dimension_numbers = #tpu.dot_dimension_numbers<[1], [0], [0], [1], [0, 0, 1, 1], [], []>} : vector<256x128xbf16>, vector<128x128xbf16>, vector<256x128xf32> -> vector<256x128xf32>
    %122 = arith.addf %115, %121 : vector<256x128xf32>
    %c2_117 = arith.constant 2 : index
    %c0_118 = arith.constant 0 : index
    %c0_119 = arith.constant 0 : index
    %123 = vector.load %arg7[%c2_117, %c0_118, %c0_119] : memref<18x18x128xf32, #tpu.memory_space<vmem>>, vector<16x16x128xf32>
    %124 = vector.shape_cast %123 : vector<16x16x128xf32> to vector<256x128xf32>
    %125 = arith.truncf %124 : vector<256x128xf32> to vector<256x128xbf16>
    %c6_120 = arith.constant 6 : index
    %c0_121 = arith.constant 0 : index
    %c0_122 = arith.constant 0 : index
    %126 = vector.load %arg4[%c6_120, %c0_121, %c0_122] : memref<9x128x128xbf16, #tpu.memory_space<vmem>>, vector<1x128x128xbf16>
    %127 = vector.shape_cast %126 : vector<1x128x128xbf16> to vector<128x128xbf16>
    %cst_123 = arith.constant dense<0.000000e+00> : vector<256x128xf32>
    %128 = tpu.matmul %125, %127, %cst_123 {dimension_numbers = #tpu.dot_dimension_numbers<[1], [0], [0], [1], [0, 0, 1, 1], [], []>} : vector<256x128xbf16>, vector<128x128xbf16>, vector<256x128xf32> -> vector<256x128xf32>
    %129 = arith.addf %122, %128 : vector<256x128xf32>
    %c2_124 = arith.constant 2 : index
    %c1_125 = arith.constant 1 : index
    %c0_126 = arith.constant 0 : index
    %130 = vector.load %arg7[%c2_124, %c1_125, %c0_126] : memref<18x18x128xf32, #tpu.memory_space<vmem>>, vector<16x16x128xf32>
    %131 = vector.shape_cast %130 : vector<16x16x128xf32> to vector<256x128xf32>
    %132 = arith.truncf %131 : vector<256x128xf32> to vector<256x128xbf16>
    %c7_127 = arith.constant 7 : index
    %c0_128 = arith.constant 0 : index
    %c0_129 = arith.constant 0 : index
    %133 = vector.load %arg4[%c7_127, %c0_128, %c0_129] : memref<9x128x128xbf16, #tpu.memory_space<vmem>>, vector<1x128x128xbf16>
    %134 = vector.shape_cast %133 : vector<1x128x128xbf16> to vector<128x128xbf16>
    %cst_130 = arith.constant dense<0.000000e+00> : vector<256x128xf32>
    %135 = tpu.matmul %132, %134, %cst_130 {dimension_numbers = #tpu.dot_dimension_numbers<[1], [0], [0], [1], [0, 0, 1, 1], [], []>} : vector<256x128xbf16>, vector<128x128xbf16>, vector<256x128xf32> -> vector<256x128xf32>
    %136 = arith.addf %129, %135 : vector<256x128xf32>
    %c2_131 = arith.constant 2 : index
    %c2_132 = arith.constant 2 : index
    %c0_133 = arith.constant 0 : index
    %137 = vector.load %arg7[%c2_131, %c2_132, %c0_133] : memref<18x18x128xf32, #tpu.memory_space<vmem>>, vector<16x16x128xf32>
    %138 = vector.shape_cast %137 : vector<16x16x128xf32> to vector<256x128xf32>
    %139 = arith.truncf %138 : vector<256x128xf32> to vector<256x128xbf16>
    %c8_134 = arith.constant 8 : index
    %c0_135 = arith.constant 0 : index
    %c0_136 = arith.constant 0 : index
    %140 = vector.load %arg4[%c8_134, %c0_135, %c0_136] : memref<9x128x128xbf16, #tpu.memory_space<vmem>>, vector<1x128x128xbf16>
    %141 = vector.shape_cast %140 : vector<1x128x128xbf16> to vector<128x128xbf16>
    %cst_137 = arith.constant dense<0.000000e+00> : vector<256x128xf32>
    %142 = tpu.matmul %139, %141, %cst_137 {dimension_numbers = #tpu.dot_dimension_numbers<[1], [0], [0], [1], [0, 0, 1, 1], [], []>} : vector<256x128xbf16>, vector<128x128xbf16>, vector<256x128xf32> -> vector<256x128xf32>
    %143 = arith.addf %136, %142 : vector<256x128xf32>
    %cst_138 = arith.constant 0.000000e+00 : f32
    %144 = vector.broadcast %cst_138 : f32 to vector<256x128xf32>
    %145 = arith.maximumf %143, %144 : vector<256x128xf32>
    %146 = vector.shape_cast %145 : vector<256x128xf32> to vector<16x16x128xf32>
    %c0_139 = arith.constant 0 : index
    %c0_140 = arith.constant 0 : index
    %c0_141 = arith.constant 0 : index
    %c0_142 = arith.constant 0 : index
    %147 = vector.load %arg6[%c0_139, %c0_140, %c0_141, %c0_142] : memref<1x16x16x128xf32, #tpu.memory_space<vmem>>, vector<1x16x16x128xf32>
    %148 = vector.shape_cast %147 : vector<1x16x16x128xf32> to vector<16x16x128xf32>
    %149 = vector.shape_cast %146 : vector<16x16x128xf32> to vector<1x16x16x128xf32>
    tpu.vector_store %arg6[%c0_139, %c0_140, %c0_141, %c0_142], %149 {strides = array<i32>} : memref<1x16x16x128xf32, #tpu.memory_space<vmem>>, vector<1x16x16x128xf32>,
    return
  }
  func.func @transform_0(%arg0: i32) -> (i32, i32, i32, i32) {
    %c0_i32 = arith.constant 0 : i32
    %c0_i32_0 = arith.constant 0 : i32
    %c0_i32_1 = arith.constant 0 : i32
    %c0_i32_2 = arith.constant 0 : i32
    return %arg0, %c0_i32, %c0_i32_0, %c0_i32_1 : i32, i32, i32, i32
  }
  func.func @transform_1(%arg0: i32) -> (i32, i32, i32) {
    %c0_i32 = arith.constant 0 : i32
    %c0_i32_0 = arith.constant 0 : i32
    %c0_i32_1 = arith.constant 0 : i32
    %c0_i32_2 = arith.constant 0 : i32
    return %c0_i32, %c0_i32_0, %c0_i32_1 : i32, i32, i32
  }
  func.func @transform_2(%arg0: i32) -> (i32, i32) {
    %c0_i32 = arith.constant 0 : i32
    %c0_i32_0 = arith.constant 0 : i32
    %c0_i32_1 = arith.constant 0 : i32
    return %c0_i32, %c0_i32_0 : i32, i32
  }
  func.func @transform_3(%arg0: i32) -> (i32, i32, i32) {
    %c0_i32 = arith.constant 0 : i32
    %c0_i32_0 = arith.constant 0 : i32
    %c0_i32_1 = arith.constant 0 : i32
    %c0_i32_2 = arith.constant 0 : i32
    return %c0_i32, %c0_i32_0, %c0_i32_1 : i32, i32, i32
  }
  func.func @transform_4(%arg0: i32) -> (i32, i32) {
    %c0_i32 = arith.constant 0 : i32
    %c0_i32_0 = arith.constant 0 : i32
    %c0_i32_1 = arith.constant 0 : i32
    return %c0_i32, %c0_i32_0 : i32, i32
  }
  func.func @transform_5(%arg0: i32) -> (i32, i32, i32, i32) {
    %c0_i32 = arith.constant 0 : i32
    %c0_i32_0 = arith.constant 0 : i32
    %c0_i32_1 = arith.constant 0 : i32
    %c0_i32_2 = arith.constant 0 : i32
    return %arg0, %c0_i32, %c0_i32_0, %c0_i32_1 : i32, i32, i32, i32
  }
}

</mosaic_0001>

<bundles_post_ra>
// kernel: tpu_custom_call.1
= control target key start
LH: loop header
LB: loop body
LE: loop exit
PB: predicated region body
PF: predicated region fallthrough
CT: control target
= control target key end

     0   :  { %10 = vsyncpa [#allocation4], 0  ;;  %s9704_s0 = inlined_call_operand.vmem [shape: f32[2,16,16,4], index: 0, kind: input, shape index: {}]   ;;  %s9705_s1 = inlined_call_operand.vmem [shape: bf16[9,128,128], index: 1, kind: input, shape index: {}]   ;;  %s9706_s2 = inlined_call_operand.vmem [shape: f32[1,128], index: 2, kind: input, shape index: {}]   ;;  %s9707_s3 = inlined_call_operand.hbm [shape: bf16[9,128,128], index: 3, kind: input, shape index: {}]   ;;  %s9708_s4 = inlined_call_operand.vmem [shape: f32[1,128], index: 4, kind: input, shape index: {}]   ;;  %s9709_s5 = inlined_call_operand.hbm [shape: f32[2,16,16,128], index: 5, kind: output, shape index: {}]  }
   0x1   :  { %11 = vsyncpa [#allocation5], 0 }
   0x2   :  { %13 = vsyncpa [#allocation5 + $0x1], 0  ;;  %s8625_s18 = smov 0   ;;  %s8627_s19 = smov 0  }
   0x3   :  { %s8629_s20 = smov 0   ;;  %s8631_s21 = smov 0  }
   0x4 LB: > { %s8646_s22 = sadd.s32 4294967295, %s8585_s21   ;;  %s6128_s23 = sadd.s32 4294967294, %s8585_s21   ;;  %s8585_s21 = sphi %s8631_s21, %s9782_s21   ;;  %s8581_s20 = sphi %s8629_s20, %s9781_s20   ;;  %s8577_s19 = sphi %s8627_s19, %s9780_s19   ;;  %s8573_s18 = sphi %s8625_s18, %s9779_s18  }
   0x5   : > { %s8650_s24 = sadd.s32 1, %s8585_s21   ;;  %s136_s25 = sadd.s32 1, %s8581_s20 }
   0x6   : > { %s133_s26 = ssub.s32 %s8585_s21, %s8650_s24  ;;  %p146_p0 = scmp.ne.s32.totalorder %s8581_s20, %s8577_s19 }
   0x7   : > { %p134_p1 = scmp.eq.s32.totalorder %s133_s26, 0  ;;  %p147_p2 = scmp.eq.s32.totalorder %s8646_s22, 1 }
   0x8   : > { %p152_p3 = scmp.ne.s32.totalorder %s8577_s19, %s8573_s18  ;;  %p153_p4 = scmp.eq.s32.totalorder %s6128_s23, 1 }
   0x9   : > { %s8661_s27 = scalar_select %p134_p1, %s8581_s20, %s136_s25  }
   0xa   : > { %p8663_p5 = por %p147_p2, %p146_p0  ;;  %p8667_p6 = por %p153_p4, %p152_p3 }
   0xb   : > { %p6129_p7 = scmp.ge.s32.totalorder %s8585_s21, 1  ;;  %p160_p8 = scmp.lt.s32.totalorder %s8585_s21, 3 }
   0xc   : > { %s9732_s28 = scalar_select %p8663_p5, 1, 0 }
   0xd   : > { %s9733_s29 = scalar_select %p8667_p6, 1, 0 }
   0xe   : > { %p9710_p9 = scmp.eq.s32.totalorder %s8646_s22, 0  ;;  %p8674_p10 = pnand %p6129_p7, %p160_p8 }
   0xf   : > { %s8587_s6 = smov [#allocation3]   ;;  %s8491_s11 = scalar_lea.hbm %s9707_s3, 9216 }
  0x10   : > { %s9734_s30 = scalar_select %p8674_p10, 1, 0 }
  0x11   : > { %s178_s7 = sshll.u32 %s8587_s6, 4  ;;  %p8296_p11 = pneg %p8674_p10  ;;  %s179_s7 = int_to_ptr.vmem [resolvable:$true] %s178_s7 }
  0x12   : > { %p8492_p13 = scmp.ne.s32.totalorder %s9707_s3, %s8491_s11  ;;  %p8498_p3 = scmp.lt.u32.totalorder %s8491_s11, %s9707_s3 }
  0x13   : > { %p8682_p12 = pnand %p9710_p9, %p8296_p11 }
  0x15   : > { %p8493_p0 = pneg %p8682_p12 }
  0x17   : > { %p8494_p1 = pnand %p8493_p0, %p8492_p13 }
  0x19   : > { %p8495_p2 = pneg %p8494_p1 }
  0x1b   : > { %p8500_p4 = pnand %p8498_p3, %p8495_p2 }
  0x1d   : > { %8503 = shalt.err (!%p8500_p4)
}
  0x1e   : > { %s8504_s16 = scalar_lea.vmem %s179_s7, 9216  ;;  %p8512_p9 = scmp.lt.s32.totalorder %s179_s7, %s179_s7 }
  0x1f   : > { %p8505_p7 = scmp.ne.s32.totalorder %s179_s7, %s8504_s16  ;;  %p8513_p6 = scmp.lt.s32.totalorder %s8504_s16, %s8504_s16 }
  0x21   : > { %p8507_p8 = pnand %p8505_p7, %p8493_p0  ;;  %p8514_p5 = por %p8513_p6, %p8512_p9 }
  0x23   : > { %p8508_p11 = pneg %p8507_p8 }
  0x25   : > { %p8515_p10 = pnand %p8514_p5, %p8508_p11 }
  0x27   : > { %8518 = shalt.err (!%p8515_p10)
}
  0x28   : > { %s8588_s17 = smov 64   ;;  %s8589_s23 = smov 4  }
  0x29   : > { %8299 = dma.hbm_to_vmem [thread:$0]  (!%p8682_p12), %s9707_s3, 9216, %s179_s7, [#allocation4], %s8588_s17, %s8588_s17, %s8589_s23  }
  0x2a   : > { %p9736_p13 = scmp.ne.s32.totalorder %s9734_s30, 0 }
  0x2c   : > { %205 = sbr.rel (%p9736_p13) target bundleno = 1636 (0x664), region = 40 }
  0x33   : > { %p9737_p1 = scmp.eq.s32.totalorder %s8646_s22, 0 }
  0x35   : > { %8564 = dma.done.wait (%p9737_p1), [#allocation4], 9216   ;;  %p9738_p0 = pmov %p9737_p1 }
  0x36   : > { %v8590_v0 = vmov 0.0   ;;  %p233_p5 = scmp.lt.s32.totalorder %s8646_s22, 1  ;;  %v8591_v1 = vmov 0.0|0.0   ;;  %v8345_v2 = vld [vmem:[%s9705_s1] sm:$0xff]   ;;  %v8346_v3 = vld [vmem:[%s9705_s1 + $0x8] sm:$0xff]   ;;  %v8347_v4 = vld [vmem:[%s9705_s1 + $0x10] sm:$0xff]  }
  0x37   : > { %8566 = vsyncadd (%p9738_p0), [#allocation4], 4294958080  ;;  %239 = vst [vmem:[#allocation2] sm:$0xff] %v8590_v0  ;;  %6866 = vmatprep.mubr.bf16.mxu0 %v8591_v1  ;;  %6850 = vmatprep.subr.bf16.mxu0 %v8345_v2  ;;  %vm326_vm0 = vcmask 31744   ;;  %v8348_v5 = vld [vmem:[%s9705_s1 + $0x18] sm:$0xff]   ;;  %v8349_v12 = vld [vmem:[%s9705_s1 + $0x20] sm:$0xff]  }
  0x38   : > { %240 = vst [vmem:[#allocation2 + $0x8] sm:$0xff] %v8590_v0  ;;  %241 = vst [vmem:[#allocation2 + $0x10] sm:$0x3] %v8590_v0  ;;  %s234_s30 = scalar_select %p233_p5, %s8646_s22, 1  ;;  %6851 = vmatpush3.bf16.msra.mxu0 %v8345_v2  ;;  %v8350_v21 = vld [vmem:[%s9705_s1 + $0x28] sm:$0xff]   ;;  %v8351_v26 = vld [vmem:[%s9705_s1 + $0x30] sm:$0xff]  }
  0x39   : > { %242 = vst [vmem:[#allocation2 + $0x18] sm:$0xff] %v8590_v0  ;;  %243 = vst [vmem:[#allocation2 + $0x20] sm:$0xff] %v8590_v0  ;;  %6852 = vmatprep.subr.bf16.mxu0 %v8346_v3  ;;  %v8352_v27 = vld [vmem:[%s9705_s1 + $0x38] sm:$0xff]   ;;  %v8353_v33 = vld [vmem:[%s9705_s1 + $0x40] sm:$0xff]   ;;  %s230_s16 = sand.u32 1, %s8577_s19   ;;  %s6417_s25 = sshll.u32 %s8646_s22, 12 }
  0x3a   : > { %244 = vst [vmem:[#allocation2 + $0x28] sm:$0x3] %v8590_v0  ;;  %245 = vst [vmem:[#allocation2 + $0x30] sm:$0xff] %v8590_v0  ;;  %s6416_s10 = sshll.u32 %s234_s30, 8  ;;  %v8354_v47 = vld [vmem:[%s9705_s1 + $0x48] sm:$0xff]   ;;  %v8355_v52 = vld [vmem:[%s9705_s1 + $0x50] sm:$0xff]   ;;  %s9654_s7 = scalar_lea.hbm %s9709_s5, %s6417_s25 }
  0x3b   : > { %246 = vst [vmem:[#allocation2 + $0x38] sm:$0xff] %v8590_v0  ;;  %247 = vst [vmem:[#allocation2 + $0x40] sm:$0x3] %v8590_v0  ;;  %s8722_s15 = scalar_lea.vmem %s9704_s0, %s6416_s10  ;;  %v8356_v55 = vld [vmem:[%s9705_s1 + $0x58] sm:$0xff]   ;;  %v8357_v60 = vld [vmem:[%s9705_s1 + $0x60] sm:$0xff]   ;;  %s6134_s17 = sshll.u32 %s230_s16, 8 }
  0x3c   : > { %248 = vst [vmem:[#allocation2 + $0x48] sm:$0xff] %v8590_v0  ;;  %249 = vst [vmem:[#allocation2 + $0x50] sm:$0xff] %v8590_v0  ;;  %6853 = vmatpush3.bf16.msra.mxu0 %v8346_v3  ;;  %v293_v6 = vld [vmem:[%s8722_s15] sm:$0xff]  ;;  %v294_v7 = vld [vmem:[%s8722_s15 + $0x8] sm:$0xff]  ;;  %s9562_s23 = scalar_lea.vmem [#allocation6], %s6134_s17  ;;  %s9663_s22 = scalar_lea.sflag [#allocation5], %s230_s16 }
  0x3d   : > { %250 = vst [vmem:[#allocation2 + $0x58] sm:$0x3] %v8590_v0  ;;  %251 = vst [vmem:[#allocation2 + $0x60] sm:$0xff] %v8590_v0  ;;  %6854 = vmatprep.subr.bf16.mxu0 %v8347_v4  ;;  %v295_v8 = vld [vmem:[%s8722_s15 + $0x10] sm:$0xff]  ;;  %v296_v9 = vld [vmem:[%s8722_s15 + $0x18] sm:$0xff]  ;;  %s6054_s26 = sshll.u32 %s9562_s23, 4  ;;  %s9656_s26 = int_to_ptr.vmem [resolvable:$true] %s6054_s26 }
  0x3e   : > { %252 = vst [vmem:[#allocation2 + $0x68] sm:$0xff] %v8590_v0  ;;  %253 = vst [vmem:[#allocation2 + $0x70] sm:$0x3] %v8590_v0  ;;  %v297_v10 = vld [vmem:[%s8722_s15 + $0x20] sm:$0xff]  ;;  %v298_v11 = vld [vmem:[%s8722_s15 + $0x28] sm:$0xff]  ;;  %s8519_s8 = scalar_lea.vmem %s9656_s26, 4096 }
  0x3f   : > { %254 = vst [vmem:[#allocation2 + $0x78] sm:$0xff] %v8590_v0  ;;  %255 = vst [vmem:[#allocation2 + $0x80] sm:$0xff] %v8590_v0  ;;  %v299_v13 = vld [vmem:[%s8722_s15 + $0x30] sm:$0xff]  ;;  %v300_v14 = vld [vmem:[%s8722_s15 + $0x38] sm:$0xff]  ;;  %p8520_p6 = scmp.ne.s32.totalorder %s9656_s26, %s8519_s8  ;;  %p9777_p9 = scmp.ne.s32.totalorder %s9732_s28, 0 }
  0x40   : > { %256 = vst [vmem:[#allocation2 + $0x88] sm:$0x3] %v8590_v0  ;;  %257 = vst [vmem:[#allocation2 + $0x90] sm:$0xff] %v8590_v0  ;;  %6855 = vmatpush3.bf16.msra.mxu0 %v8347_v4  ;;  %v301_v15 = vld [vmem:[%s8722_s15 + $0x40] sm:$0xff]  ;;  %v302_v16 = vld [vmem:[%s8722_s15 + $0x48] sm:$0xff]  ;;  %s8592_s9 = smov [#allocation6]  }
  0x41   : > { %258 = vst [vmem:[#allocation2 + $0x98] sm:$0xff] %v8590_v0  ;;  %259 = vst [vmem:[#allocation2 + $0xa0] sm:$0x3] %v8590_v0  ;;  %6856 = vmatprep.subr.bf16.mxu0 %v8348_v5  ;;  %v303_v17 = vld [vmem:[%s8722_s15 + $0x50] sm:$0xff]  ;;  %v304_v18 = vld [vmem:[%s8722_s15 + $0x58] sm:$0xff]  ;;  %p8521_p10 = pnand %p8520_p6, %p9777_p9  ;;  %s8523_s10 = sshll.u32 %s8592_s9, 4  ;;  %s8524_s10 = int_to_ptr.vmem [resolvable:$false] %s8523_s10 }
  0x42   : > { %260 = vst [vmem:[#allocation2 + $0xa8] sm:$0xff] %v8590_v0  ;;  %261 = vst [vmem:[#allocation2 + $0xb0] sm:$0xff] %v8590_v0  ;;  %v305_v19 = vld [vmem:[%s8722_s15 + $0x60] sm:$0xff]  ;;  %v306_v20 = vld [vmem:[%s8722_s15 + $0x68] sm:$0xff]  ;;  %s8525_s11 = scalar_lea.vmem %s8524_s10, 8192  ;;  %p8526_p2 = scmp.lt.s32.totalorder %s9656_s26, %s8524_s10 }
  0x43   : > { %262 = vst [vmem:[#allocation2 + $0xb8] sm:$0x3] %v8590_v0  ;;  %263 = vst [vmem:[#allocation2 + $0xc0] sm:$0xff] %v8590_v0  ;;  %v307_v22 = vld [vmem:[%s8722_s15 + $0x70] sm:$0xff]  ;;  %v308_v23 = vld [vmem:[%s8722_s15 + $0x78] sm:$0xff]  ;;  %p8522_p12 = pneg %p8521_p10  ;;  %p8527_p3 = scmp.lt.s32.totalorder %s8525_s11, %s8519_s8 }
  0x44   : > { %264 = vst [vmem:[#allocation2 + $0xc8] sm:$0xff] %v8590_v0  ;;  %265 = vst [vmem:[#allocation2 + $0xd0] sm:$0x3] %v8590_v0  ;;  %6857 = vmatpush3.bf16.msra.mxu0 %v8348_v5  ;;  %v309_v24 = vld [vmem:[%s8722_s15 + $0x80] sm:$0xff]  ;;  %v310_v25 = vld [vmem:[%s8722_s15 + $0x88] sm:$0xff] }
  0x45   : > { %266 = vst [vmem:[#allocation2 + $0xd8] sm:$0xff] %v8590_v0  ;;  %267 = vst [vmem:[#allocation2 + $0xe0] sm:$0xff] %v8590_v0  ;;  %6858 = vmatprep.subr.bf16.mxu0 %v8349_v12  ;;  %v311_v28 = vld [vmem:[%s8722_s15 + $0x90] sm:$0xff]  ;;  %v312_v29 = vld [vmem:[%s8722_s15 + $0x98] sm:$0xff]  ;;  %p8528_p4 = por %p8527_p3, %p8526_p2 }
  0x46   : > { %268 = vst [vmem:[#allocation2 + $0xe8] sm:$0x3] %v8590_v0  ;;  %269 = vst [vmem:[#allocation2 + $0xf0] sm:$0xff] %v8590_v0  ;;  %v313_v30 = vld [vmem:[%s8722_s15 + $0xa0] sm:$0xff]  ;;  %v314_v31 = vld [vmem:[%s8722_s15 + $0xa8] sm:$0xff] }
  0x47   : > { %270 = vst [vmem:[#allocation2 + $0xf8] sm:$0xff] %v8590_v0  ;;  %271 = vst [vmem:[#allocation2 + $0x100] sm:$0x3] %v8590_v0  ;;  %v315_v34 = vld [vmem:[%s8722_s15 + $0xb0] sm:$0xff]  ;;  %v316_v35 = vld [vmem:[%s8722_s15 + $0xb8] sm:$0xff]  ;;  %p8529_p7 = pnand %p8528_p4, %p8522_p12 }
  0x48   : > { %272 = vst [vmem:[#allocation2 + $0x108] sm:$0xff] %v8590_v0  ;;  %273 = vst [vmem:[#allocation2 + $0x110] sm:$0xff] %v8590_v0  ;;  %6859 = vmatpush3.bf16.msra.mxu0 %v8349_v12  ;;  %v317_v39 = vld [vmem:[%s8722_s15 + $0xc0] sm:$0xff]  ;;  %v318_v40 = vld [vmem:[%s8722_s15 + $0xc8] sm:$0xff] }
  0x49   : > { %274 = vst [vmem:[#allocation2 + $0x118] sm:$0x3] %v8590_v0  ;;  %275 = vst [vmem:[#allocation2 + $0x120] sm:$0xff] %v8590_v0  ;;  %6860 = vmatprep.subr.bf16.mxu0 %v8350_v21  ;;  %v319_v41 = vld [vmem:[%s8722_s15 + $0xd0] sm:$0xff]  ;;  %v320_v43 = vld [vmem:[%s8722_s15 + $0xd8] sm:$0xff] }
  0x4a   : > { %276 = vst [vmem:[#allocation2 + $0x128] sm:$0xff] %v8590_v0  ;;  %277 = vst [vmem:[#allocation2 + $0x130] sm:$0x3] %v8590_v0  ;;  %v321_v44 = vld [vmem:[%s8722_s15 + $0xe0] sm:$0xff]  ;;  %v322_v45 = vld [vmem:[%s8722_s15 + $0xe8] sm:$0xff] }
  0x4b   : > { %278 = vst [vmem:[#allocation2 + $0x138] sm:$0xff] %v8590_v0  ;;  %279 = vst [vmem:[#allocation2 + $0x140] sm:$0xff] %v8590_v0  ;;  %v8358_v63 = vld [vmem:[%s9705_s1 + $0x68] sm:$0xff]   ;;  %v8359_v4 = vld [vmem:[%s9705_s1 + $0x70] sm:$0xff]  }
  0x4c   : > { %280 = vst [vmem:[#allocation2 + $0x148] sm:$0x3] %v8590_v0  ;;  %281 = vst [vmem:[#allocation2 + $0x150] sm:$0xff] %v8590_v0  ;;  %6861 = vmatpush3.bf16.msra.mxu0 %v8350_v21  ;;  %v8361_v12 = vld [vmem:[%s9705_s1 + $0x80] sm:$0xff]  }
  0x4d   : > { %282 = vst [vmem:[#allocation2 + $0x158] sm:$0xff] %v8590_v0  ;;  %283 = vst [vmem:[#allocation2 + $0x160] sm:$0x3] %v8590_v0  ;;  %6862 = vmatprep.subr.bf16.mxu0 %v8351_v26 }
  0x4e   : > { %284 = vst [vmem:[#allocation2 + $0x168] sm:$0xff] %v8590_v0  ;;  %285 = vst [vmem:[#allocation2 + $0x170] sm:$0xff] %v8590_v0 }
  0x4f   : > { %286 = vst [vmem:[#allocation2 + $0x178] sm:$0x3] %v8590_v0  ;;  %287 = vst [vmem:[#allocation2 + $0x180] sm:$0xff] %v8590_v0 }
  0x50   : > { %288 = vst [vmem:[#allocation2 + $0x188] sm:$0xff] %v8590_v0  ;;  %289 = vst [vmem:[#allocation2 + $0x190] sm:$0x3] %v8590_v0  ;;  %6863 = vmatpush3.bf16.msra.mxu0 %v8351_v26 }
  0x51   : > { %290 = vst [vmem:[#allocation2 + $0x198] sm:$0xff] %v8590_v0  ;;  %291 = vst [vmem:[#allocation2 + $0x1a0] sm:$0xff] %v8590_v0  ;;  %6864 = vmatprep.subr.bf16.mxu0 %v8352_v27 }
  0x52   : > { %292 = vst [vmem:[#allocation2 + $0x1a8] sm:$0x3] %v8590_v0  ;;  %327 = vst.msk [vmem:[#allocation2 + $0x19] sm:$0xff] %vm326_vm0, %v293_v6 }
  0x53   : > { %328 = vst.msk [vmem:[#allocation2 + $0x21] sm:$0xff] %vm326_vm0, %v294_v7  ;;  %329 = vst.msk [vmem:[#allocation2 + $0x31] sm:$0xff] %vm326_vm0, %v295_v8  ;;  %v8360_v7 = vld [vmem:[%s9705_s1 + $0x78] sm:$0xff]  }
  0x54   : > { %330 = vst.msk [vmem:[#allocation2 + $0x39] sm:$0xff] %vm326_vm0, %v296_v9  ;;  %331 = vst.msk [vmem:[#allocation2 + $0x49] sm:$0xff] %vm326_vm0, %v297_v10  ;;  %6865 = vmatpush3.bf16.msra.mxu0 %v8352_v27  ;;  %v703_v27 = vld [vmem:[#allocation2 + $0x1] sm:$0xff] }
  0x55   : > { %332 = vst.msk [vmem:[#allocation2 + $0x51] sm:$0xff] %vm326_vm0, %v298_v11  ;;  %333 = vst.msk [vmem:[#allocation2 + $0x61] sm:$0xff] %vm326_vm0, %v299_v13  ;;  %6898 = vmatprep.subr.bf16.mxu0 %v8353_v33 }
  0x56   : > { %334 = vst.msk [vmem:[#allocation2 + $0x69] sm:$0xff] %vm326_vm0, %v300_v14  ;;  %335 = vst.msk [vmem:[#allocation2 + $0x79] sm:$0xff] %vm326_vm0, %v301_v15 }
  0x57   : > { %336 = vst.msk [vmem:[#allocation2 + $0x81] sm:$0xff] %vm326_vm0, %v302_v16  ;;  %337 = vst.msk [vmem:[#allocation2 + $0x91] sm:$0xff] %vm326_vm0, %v303_v17 }
  0x58   : > { %338 = vst.msk [vmem:[#allocation2 + $0x99] sm:$0xff] %vm326_vm0, %v304_v18  ;;  %339 = vst.msk [vmem:[#allocation2 + $0xa9] sm:$0xff] %vm326_vm0, %v305_v19 }
  0x59   : > { %340 = vst.msk [vmem:[#allocation2 + $0xb1] sm:$0xff] %vm326_vm0, %v306_v20  ;;  %341 = vst.msk [vmem:[#allocation2 + $0xc1] sm:$0xff] %vm326_vm0, %v307_v22  ;;  %v400_v32 = vld [vmem:[#allocation2 + $0x18] sm:$0xff] }
  0x5a   : > { %342 = vst.msk [vmem:[#allocation2 + $0xc9] sm:$0xff] %vm326_vm0, %v308_v23  ;;  %343 = vst.msk [vmem:[#allocation2 + $0xd9] sm:$0xff] %vm326_vm0, %v309_v24  ;;  %v401_v36 = vld [vmem:[#allocation2 + $0x20] sm:$0xff]  ;;  %v402_v37 = vld [vmem:[#allocation2 + $0x30] sm:$0xff] }
  0x5b   : > { %344 = vst.msk [vmem:[#allocation2 + $0xe1] sm:$0xff] %vm326_vm0, %v310_v25  ;;  %345 = vst.msk [vmem:[#allocation2 + $0xf1] sm:$0xff] %vm326_vm0, %v311_v28  ;;  %v403_v38 = vld [vmem:[#allocation2 + $0x38] sm:$0xff]  ;;  %v8795_v42 = vpack.c.bf16 %v401_v36, %v400_v32  ;;  %v404_v48 = vld [vmem:[#allocation2 + $0x48] sm:$0xff] }
  0x5c   : > { %346 = vst.msk [vmem:[#allocation2 + $0xf9] sm:$0xff] %vm326_vm0, %v312_v29  ;;  %347 = vst.msk [vmem:[#allocation2 + $0x109] sm:$0xff] %vm326_vm0, %v313_v30  ;;  %v8801_v46 = vpack.c.bf16 %v403_v38, %v402_v37  ;;  %v405_v49 = vld [vmem:[#allocation2 + $0x50] sm:$0xff]  ;;  %v406_v50 = vld [vmem:[#allocation2 + $0x60] sm:$0xff] }
  0x5d   : > { %348 = vst.msk [vmem:[#allocation2 + $0x111] sm:$0xff] %vm326_vm0, %v314_v31  ;;  %349 = vst.msk [vmem:[#allocation2 + $0x121] sm:$0xff] %vm326_vm0, %v315_v34  ;;  %6867 = vmatmul.mubr.bf16.vlgmr.msra.gmra.mrb[0].mxu0 %v8795_v42  ;;  %v407_v51 = vld [vmem:[#allocation2 + $0x68] sm:$0xff]  ;;  %v8814_v53 = vpack.c.bf16 %v405_v49, %v404_v48  ;;  %v408_v56 = vld [vmem:[#allocation2 + $0x78] sm:$0xff] }
  0x5e   : > { %350 = vst.msk [vmem:[#allocation2 + $0x129] sm:$0xff] %vm326_vm0, %v316_v35  ;;  %351 = vst.msk [vmem:[#allocation2 + $0x139] sm:$0xff] %vm326_vm0, %v317_v39  ;;  %6899 = vmatpush3.bf16.msra.mxu0 %v8353_v33  ;;  %6870 = vmatprep.mubr.bf16.mxu0 %v8801_v46  ;;  %v8816_v54 = vpack.c.bf16 %v407_v51, %v406_v50  ;;  %v409_v57 = vld [vmem:[#allocation2 + $0x80] sm:$0xff]  ;;  %v410_v58 = vld [vmem:[#allocation2 + $0x90] sm:$0xff] }
  0x5f   : > { %352 = vst.msk [vmem:[#allocation2 + $0x141] sm:$0xff] %vm326_vm0, %v318_v40  ;;  %353 = vst.msk [vmem:[#allocation2 + $0x151] sm:$0xff] %vm326_vm0, %v319_v41  ;;  %6900 = vmatprep.subr.bf16.mxu0 %v8354_v47  ;;  %v411_v59 = vld [vmem:[#allocation2 + $0x98] sm:$0xff]  ;;  %v8826_v61 = vpack.c.bf16 %v409_v57, %v408_v56  ;;  %v412_v0 = vld [vmem:[#allocation2 + $0xa8] sm:$0xff] }
  0x60   : > { %354 = vst.msk [vmem:[#allocation2 + $0x159] sm:$0xff] %vm326_vm0, %v320_v43  ;;  %355 = vst.msk [vmem:[#allocation2 + $0x169] sm:$0xff] %vm326_vm0, %v321_v44  ;;  %v8828_v62 = vpack.c.bf16 %v411_v59, %v410_v58  ;;  %v413_v1 = vld [vmem:[#allocation2 + $0xb0] sm:$0xff]  ;;  %v414_v2 = vld [vmem:[#allocation2 + $0xc0] sm:$0xff] }
  0x61   : > { %356 = vst.msk [vmem:[#allocation2 + $0x171] sm:$0xff] %vm326_vm0, %v322_v45  ;;  %v415_v3 = vld [vmem:[#allocation2 + $0xc8] sm:$0xff]  ;;  %v8838_v5 = vpack.c.bf16 %v413_v1, %v412_v0  ;;  %v416_v8 = vld [vmem:[#allocation2 + $0xd8] sm:$0xff]  ;;  %v8363_v45 = vld [vmem:[%s9705_s1 + $0x90] sm:$0xff]  }
  0x62   : > { %6901 = vmatpush3.bf16.msra.mxu0 %v8354_v47  ;;  %v8840_v6 = vpack.c.bf16 %v415_v3, %v414_v2  ;;  %v417_v9 = vld [vmem:[#allocation2 + $0xe0] sm:$0xff]  ;;  %v418_v10 = vld [vmem:[#allocation2 + $0xf0] sm:$0xff]  ;;  %v8362_v38 = vld [vmem:[%s9705_s1 + $0x88] sm:$0xff]  }
  0x63   : > { %6902 = vmatprep.subr.bf16.mxu0 %v8355_v52  ;;  %v419_v11 = vld [vmem:[#allocation2 + $0xf8] sm:$0xff]  ;;  %v8850_v13 = vpack.c.bf16 %v417_v9, %v416_v8  ;;  %v420_v15 = vld [vmem:[#allocation2 + $0x108] sm:$0xff]  ;;  %v8365_v56 = vld [vmem:[%s9705_s1 + $0xa0] sm:$0xff]  }
  0x64   : > { %v8852_v14 = vpack.c.bf16 %v419_v11, %v418_v10  ;;  %v421_v16 = vld [vmem:[#allocation2 + $0x110] sm:$0xff]  ;;  %v422_v17 = vld [vmem:[#allocation2 + $0x120] sm:$0xff]  ;;  %v8364_v48 = vld [vmem:[%s9705_s1 + $0x98] sm:$0xff]  }
  0x65   : > { %6871 = vmatmul.mubr.bf16.gmra.mrb[4].mxu0 %v8814_v53  ;;  %v423_v18 = vld [vmem:[#allocation2 + $0x128] sm:$0xff]  ;;  %v8856_v19 = vpack.c.bf16 %v421_v16, %v420_v15  ;;  %v424_v21 = vld [vmem:[#allocation2 + $0x138] sm:$0xff]  ;;  %v8367_v2 = vld [vmem:[%s9705_s1 + $0xb0] sm:$0xff]  }
  0x66   : > { %6874 = vmatprep.mubr.bf16.mxu0 %v8816_v54  ;;  %6903 = vmatpush3.bf16.msra.mxu0 %v8355_v52  ;;  %v8858_v20 = vpack.c.bf16 %v423_v18, %v422_v17  ;;  %v425_v22 = vld [vmem:[#allocation2 + $0x140] sm:$0xff]  ;;  %v426_v23 = vld [vmem:[#allocation2 + $0x150] sm:$0xff]  ;;  %v8366_v58 = vld [vmem:[%s9705_s1 + $0xa8] sm:$0xff]  }
  0x67   : > { %6904 = vmatprep.subr.bf16.mxu0 %v8356_v55  ;;  %v427_v24 = vld [vmem:[#allocation2 + $0x158] sm:$0xff]  ;;  %v8862_v25 = vpack.c.bf16 %v425_v22, %v424_v21  ;;  %v704_v28 = vld [vmem:[#allocation2 + $0x9] sm:$0xff]  ;;  %v8872_v34 = vld [vmem:[#allocation2 + $0x21] sm:$0xff] }
  0x68   : > { %v8864_v26 = vpack.c.bf16 %v427_v24, %v426_v23  ;;  %v428_v29 = vld [vmem:[#allocation2 + $0x168] sm:$0xff]  ;;  %v429_v30 = vld [vmem:[#allocation2 + $0x170] sm:$0xff]  ;;  %v735_v32 = vpack.c.bf16 %v704_v28, %v703_v27  ;;  %v8870_v33 = vld [vmem:[#allocation2 + $0x19] sm:$0xff] }
  0x69   : > { %v8868_v31 = vpack.c.bf16 %v429_v30, %v428_v29  ;;  %v8875_v35 = vld [vmem:[#allocation2 + $0x31] sm:$0xff]  ;;  %v8877_v36 = vld [vmem:[#allocation2 + $0x39] sm:$0xff]  ;;  %v8881_v37 = vpack.c.bf16 %v8872_v34, %v8870_v33  ;;  %v8890_v40 = vld [vmem:[#allocation2 + $0x49] sm:$0xff] }
  0x6a   : > { %6905 = vmatpush3.bf16.msra.mxu0 %v8356_v55  ;;  %v8888_v39 = vpack.c.bf16 %v8877_v36, %v8875_v35  ;;  %v8892_v41 = vld [vmem:[#allocation2 + $0x51] sm:$0xff]  ;;  %v8895_v43 = vld [vmem:[#allocation2 + $0x61] sm:$0xff]  ;;  %v8897_v44 = vld [vmem:[#allocation2 + $0x69] sm:$0xff] }
  0x6b   : > { %6906 = vmatprep.subr.bf16.mxu0 %v8357_v60  ;;  %v8905_v47 = vpack.c.bf16 %v8892_v41, %v8890_v40  ;;  %v8912_v49 = vpack.c.bf16 %v8897_v44, %v8895_v43  ;;  %v8914_v50 = vld [vmem:[#allocation2 + $0x79] sm:$0xff]  ;;  %v8916_v51 = vld [vmem:[#allocation2 + $0x81] sm:$0xff]  ;;  %v8919_v52 = vld [vmem:[#allocation2 + $0x91] sm:$0xff] }
  0x6c   : > { %9739 = vst [vmem:[#allocation9_spill] sm:$0xff] %v8916_v51  ;;  %v8921_v55 = vld [vmem:[#allocation2 + $0x99] sm:$0xff]  ;;  %v8929_v57 = vpack.c.bf16 %v8916_v51, %v8914_v50  ;;  %v8943_v0 = vld [vmem:[#allocation2 + $0xc1] sm:$0xff]  ;;  %v8945_v1 = vld [vmem:[#allocation2 + $0xc9] sm:$0xff] }
  0x6d   : > { %6875 = vmatmul.mubr.bf16.gmra.mrb[8].mxu0 %v8826_v61  ;;  %v8936_v59 = vpack.c.bf16 %v8921_v55, %v8919_v52  ;;  %9742 = vst [vmem:[#allocation12_spill] sm:$0xff] %v8943_v0  ;;  %9743 = vst [vmem:[#allocation13_spill] sm:$0xff] %v8945_v1  ;;  %v8962_v8 = vld [vmem:[#allocation2 + $0xd9] sm:$0xff]  ;;  %v8964_v9 = vld [vmem:[#allocation2 + $0xe1] sm:$0xff] }
  0x6e   : > { %6878 = vmatprep.mubr.bf16.mxu0 %v8828_v62  ;;  %6907 = vmatpush3.bf16.msra.mxu0 %v8357_v60  ;;  %v8938_v60 = vld [vmem:[#allocation2 + $0xa9] sm:$0xff]  ;;  %9744 = vst [vmem:[#allocation14_spill] sm:$0xff] %v8962_v8  ;;  %9745 = vst [vmem:[#allocation15_spill] sm:$0xff] %v8964_v9  ;;  %v8967_v10 = vld [vmem:[#allocation2 + $0xf1] sm:$0xff]  ;;  %v8977_v15 = vpack.c.bf16 %v8964_v9, %v8962_v8 }
  0x6f   : > { %6908 = vmatprep.subr.bf16.mxu0 %v8358_v63  ;;  %9740 = vst [vmem:[#allocation10_spill] sm:$0xff] %v8938_v60  ;;  %9746 = vst [vmem:[#allocation16_spill] sm:$0xff] %v8967_v10  ;;  %v8969_v11 = vld [vmem:[#allocation2 + $0xf9] sm:$0xff]  ;;  %v8983_v17 = vld [vmem:[#allocation2 + $0x109] sm:$0xff] }
  0x70   : > { %9747 = vst [vmem:[#allocation17_spill] sm:$0xff] %v8969_v11  ;;  %v8981_v16 = vpack.c.bf16 %v8969_v11, %v8967_v10  ;;  %9748 = vst [vmem:[#allocation18_spill] sm:$0xff] %v8983_v17  ;;  %v8985_v18 = vld [vmem:[#allocation2 + $0x111] sm:$0xff]  ;;  %v8988_v21 = vld [vmem:[#allocation2 + $0x121] sm:$0xff] }
  0x71   : > { %9749 = vst [vmem:[#allocation19_spill] sm:$0xff] %v8985_v18  ;;  %9750 = vst [vmem:[#allocation20_spill] sm:$0xff] %v8988_v21  ;;  %v8990_v22 = vld [vmem:[#allocation2 + $0x129] sm:$0xff]  ;;  %v8995_v23 = vpack.c.bf16 %v8985_v18, %v8983_v17  ;;  %v9001_v27 = vld [vmem:[#allocation2 + $0x139] sm:$0xff] }
  0x72   : > { %6909 = vmatpush3.bf16.msra.mxu0 %v8358_v63  ;;  %v8940_v63 = vld [vmem:[#allocation2 + $0xb1] sm:$0xff]  ;;  %9751 = vst [vmem:[#allocation21_spill] sm:$0xff] %v8990_v22  ;;  %v8999_v24 = vpack.c.bf16 %v8990_v22, %v8988_v21  ;;  %9752 = vst [vmem:[#allocation22_spill] sm:$0xff] %v9001_v27  ;;  %v9003_v28 = vld [vmem:[#allocation2 + $0x141] sm:$0xff] }
  0x73   : > { %6910 = vmatprep.subr.bf16.mxu0 %v8359_v4  ;;  %9741 = vst [vmem:[#allocation11_spill] sm:$0xff] %v8940_v63  ;;  %v8953_v3 = vpack.c.bf16 %v8940_v63, %v8938_v60  ;;  %9753 = vst [vmem:[#allocation23_spill] sm:$0xff] %v9003_v28  ;;  %v9006_v29 = vld [vmem:[#allocation2 + $0x151] sm:$0xff]  ;;  %v9008_v30 = vld [vmem:[#allocation2 + $0x159] sm:$0xff] }
  0x74   : > { %9754 = vst [vmem:[#allocation24_spill] sm:$0xff] %v9006_v29  ;;  %9755 = vst [vmem:[#allocation25_spill] sm:$0xff] %v9008_v30  ;;  %v8370_v17 = vld [vmem:[%s9705_s1 + $0xc8] sm:$0xff]   ;;  %v1021_v21 = vld [vmem:[#allocation2 + $0x92] sm:$0xff] }
  0x75   : > { %6879 = vmatmul.mubr.bf16.gmra.mrb[12].mxu0 %v8838_v5  ;;  %v1022_v9 = vld [vmem:[#allocation2 + $0x9a] sm:$0xff]  ;;  %v1025_v11 = vld [vmem:[#allocation2 + $0xc2] sm:$0xff]  ;;  %v1026_v8 = vld [vmem:[#allocation2 + $0xca] sm:$0xff] }
  0x76   : > { %6882 = vmatprep.mubr.bf16.mxu0 %v8840_v6  ;;  %6911 = vmatpush3.bf16.msra.mxu0 %v8359_v4  ;;  %v8368_v4 = vld [vmem:[%s9705_s1 + $0xb8] sm:$0xff]  }
  0x77   : > { %6912 = vmatprep.subr.bf16.mxu0 %v8360_v7  ;;  %v1029_v10 = vld [vmem:[#allocation2 + $0xf2] sm:$0xff]  ;;  %v1030_v63 = vld [vmem:[#allocation2 + $0xfa] sm:$0xff] }
  0x7a   : > { %6913 = vmatpush3.bf16.msra.mxu0 %v8360_v7  ;;  %v8960_v7 = vpack.c.bf16 %v8945_v1, %v8943_v0  ;;  %v1034_v1 = vld [vmem:[#allocation2 + $0x12a] sm:$0xff] }
  0x7b   : > { %6946 = vmatprep.subr.bf16.mxu0 %v8361_v12 }
  0x7d   : > { %6883 = vmatmul.mubr.bf16.gmra.mrb[16].mxu0 %v8850_v13 }
  0x7e   : > { %6886 = vmatprep.mubr.bf16.mxu0 %v8852_v14 }
  0x85   : > { %6887 = vmatmul.mubr.bf16.gmra.mrb[20].mxu0 %v8856_v19 }
  0x86   : > { %6890 = vmatprep.mubr.bf16.mxu0 %v8858_v20 }
  0x8d   : > { %6891 = vmatmul.mubr.bf16.gmra.mrb[24].mxu0 %v8862_v25 }
  0x8e   : > { %6894 = vmatprep.mubr.bf16.mxu0 %v8864_v26 }
  0x95   : > { %6895 = vmatmul.mubr.bf16.gmra.mrb[28].mxu0 %v8868_v31 }
  0x96   : > { %6914 = vmatprep.mubr.bf16.mxu0 %v735_v32  ;;  %v9013_v32 = vpack.c.bf16 %v9003_v28, %v9001_v27  ;;  %v1013_v27 = vld [vmem:[#allocation2 + $0x32] sm:$0xff] }
  0x9d   : > { %6915 = vmatmul.mubr.bf16.vlgmr.msra.gmra.mrb[0].mxu0 %v8881_v37 }
  0x9e   : > { %6947 = vmatpush3.bf16.msra.mxu0 %v8361_v12  ;;  %6918 = vmatprep.mubr.bf16.mxu0 %v8888_v39  ;;  %v8369_v12 = vld [vmem:[%s9705_s1 + $0xc0] sm:$0xff]  }
  0x9f   : > { %6948 = vmatprep.subr.bf16.mxu0 %v8362_v38 }
  0xa2   : > { %6949 = vmatpush3.bf16.msra.mxu0 %v8362_v38  ;;  %v9017_v38 = vpack.c.bf16 %v9008_v30, %v9006_v29  ;;  %v1014_v29 = vld [vmem:[#allocation2 + $0x3a] sm:$0xff] }
  0xa3   : > { %6950 = vmatprep.subr.bf16.mxu0 %v8363_v45  ;;  %v9036_v22 = vpack.c.bf16 %v1014_v29, %v1013_v27 }
  0xa5   : > { %6919 = vmatmul.mubr.bf16.gmra.mrb[4].mxu0 %v8905_v47 }
  0xa6   : > { %6922 = vmatprep.mubr.bf16.mxu0 %v8912_v49  ;;  %6951 = vmatpush3.bf16.msra.mxu0 %v8363_v45  ;;  %v323_v45 = vld [vmem:[%s8722_s15 + $0xf0] sm:$0xff] }
  0xa7   : > { %6952 = vmatprep.subr.bf16.mxu0 %v8364_v48  ;;  %357 = vst.msk [vmem:[#allocation2 + $0x181] sm:$0xff] %vm326_vm0, %v323_v45  ;;  %v1011_v45 = vld [vmem:[#allocation2 + $0x1a] sm:$0xff] }
  0xaa   : > { %6953 = vmatpush3.bf16.msra.mxu0 %v8364_v48  ;;  %v324_v48 = vld [vmem:[%s8722_s15 + $0xf8] sm:$0xff] }
  0xab   : > { %6954 = vmatprep.subr.bf16.mxu0 %v8365_v56  ;;  %358 = vst.msk [vmem:[#allocation2 + $0x189] sm:$0xff] %vm326_vm0, %v324_v48  ;;  %v1012_v48 = vld [vmem:[#allocation2 + $0x22] sm:$0xff] }
  0xac   : > { %v9034_v18 = vpack.c.bf16 %v1012_v48, %v1011_v45  ;;  %v8371_v45 = vld [vmem:[%s9705_s1 + $0xd0] sm:$0xff]   ;;  %v1019_v48 = vld [vmem:[#allocation2 + $0x7a] sm:$0xff] }
  0xad   : > { %6923 = vmatmul.mubr.bf16.gmra.mrb[8].mxu0 %v8929_v57 }
  0xae   : > { %6926 = vmatprep.mubr.bf16.mxu0 %v8936_v59  ;;  %6955 = vmatpush3.bf16.msra.mxu0 %v8365_v56  ;;  %v9023_v56 = vld [vmem:[#allocation2 + $0x169] sm:$0xff] }
  0xaf   : > { %6956 = vmatprep.subr.bf16.mxu0 %v8366_v58  ;;  %9756 = vst [vmem:[#allocation26_spill] sm:$0xff] %v9023_v56 }
  0xb2   : > { %6957 = vmatpush3.bf16.msra.mxu0 %v8366_v58  ;;  %v9025_v58 = vld [vmem:[#allocation2 + $0x171] sm:$0xff] }
  0xb3   : > { %6958 = vmatprep.subr.bf16.mxu0 %v8367_v2  ;;  %9757 = vst [vmem:[#allocation27_spill] sm:$0xff] %v9025_v58  ;;  %v9031_v28 = vpack.c.bf16 %v9025_v58, %v9023_v56  ;;  %v1018_v58 = vld [vmem:[#allocation2 + $0x6a] sm:$0xff]  ;;  %v1020_v56 = vld [vmem:[#allocation2 + $0x82] sm:$0xff] }
  0xb5   : > { %6927 = vmatmul.mubr.bf16.gmra.mrb[12].mxu0 %v8953_v3 }
  0xb6   : > { %6930 = vmatprep.mubr.bf16.mxu0 %v8960_v7  ;;  %6959 = vmatpush3.bf16.msra.mxu0 %v8367_v2  ;;  %v1009_v2 = vld [vmem:[#allocation2 + $0x2] sm:$0xff] }
  0xb7   : > { %6960 = vmatprep.subr.bf16.mxu0 %v8368_v4 }
  0xba   : > { %6961 = vmatpush3.bf16.msra.mxu0 %v8368_v4  ;;  %v1010_v4 = vld [vmem:[#allocation2 + $0xa] sm:$0xff] }
  0xbb   : > { %6994 = vmatprep.subr.bf16.mxu0 %v8369_v12  ;;  %v1041_v30 = vpack.c.bf16 %v1010_v4, %v1009_v2  ;;  %v1015_v2 = vld [vmem:[#allocation2 + $0x4a] sm:$0xff]  ;;  %v1016_v4 = vld [vmem:[#allocation2 + $0x52] sm:$0xff] }
  0xbc   : > { %v9046_v27 = vpack.c.bf16 %v1016_v4, %v1015_v2  ;;  %v9060_v2 = vpack.c.bf16 %v1022_v9, %v1021_v21  ;;  %v8374_v4 = vld [vmem:[%s9705_s1 + $0xe8] sm:$0xff]   ;;  %v8375_v9 = vld [vmem:[%s9705_s1 + $0xf0] sm:$0xff]  }
  0xbd   : > { %6931 = vmatmul.mubr.bf16.gmra.mrb[16].mxu0 %v8977_v15 }
  0xbe   : > { %6934 = vmatprep.mubr.bf16.mxu0 %v8981_v16 }
  0xc5   : > { %6935 = vmatmul.mubr.bf16.gmra.mrb[20].mxu0 %v8995_v23 }
  0xc6   : > { %6938 = vmatprep.mubr.bf16.mxu0 %v8999_v24 }
  0xcd   : > { %6939 = vmatmul.mubr.bf16.gmra.mrb[24].mxu0 %v9013_v32 }
  0xce   : > { %6942 = vmatprep.mubr.bf16.mxu0 %v9017_v38 }
  0xd5   : > { %6943 = vmatmul.mubr.bf16.gmra.mrb[28].mxu0 %v9031_v28 }
  0xd6   : > { %6962 = vmatprep.mubr.bf16.mxu0 %v1041_v30  ;;  %v1017_v30 = vld [vmem:[#allocation2 + $0x62] sm:$0xff] }
  0xd7   : > { %v9048_v29 = vpack.c.bf16 %v1018_v58, %v1017_v30  ;;  %v9058_v58 = vpack.c.bf16 %v1020_v56, %v1019_v48  ;;  %v1023_v30 = vld [vmem:[#allocation2 + $0xaa] sm:$0xff]  ;;  %v9072_v56 = vpack.c.bf16 %v1026_v8, %v1025_v11  ;;  %v1027_v48 = vld [vmem:[#allocation2 + $0xda] sm:$0xff] }
  0xd8   : > { %v8377_v8 = vld [vmem:[%s9705_s1 + $0x100] sm:$0xff]  }
  0xdd   : > { %6963 = vmatmul.mubr.bf16.vlgmr.msra.gmra.mrb[0].mxu0 %v9034_v18 }
  0xde   : > { %6995 = vmatpush3.bf16.msra.mxu0 %v8369_v12  ;;  %6966 = vmatprep.mubr.bf16.mxu0 %v9036_v22  ;;  %v8372_v12 = vld [vmem:[%s9705_s1 + $0xd8] sm:$0xff]  }
  0xdf   : > { %6996 = vmatprep.subr.bf16.mxu0 %v8370_v17 }
  0xe2   : > { %6997 = vmatpush3.bf16.msra.mxu0 %v8370_v17  ;;  %v8373_v17 = vld [vmem:[%s9705_s1 + $0xe0] sm:$0xff]  }
  0xe3   : > { %6998 = vmatprep.subr.bf16.mxu0 %v8371_v45 }
  0xe5   : > { %6967 = vmatmul.mubr.bf16.gmra.mrb[4].mxu0 %v9046_v27 }
  0xe6   : > { %6970 = vmatprep.mubr.bf16.mxu0 %v9048_v29  ;;  %6999 = vmatpush3.bf16.msra.mxu0 %v8371_v45  ;;  %v1024_v45 = vld [vmem:[#allocation2 + $0xb2] sm:$0xff] }
  0xe7   : > { %7000 = vmatprep.subr.bf16.mxu0 %v8372_v12  ;;  %v9070_v21 = vpack.c.bf16 %v1024_v45, %v1023_v30  ;;  %v1031_v30 = vld [vmem:[#allocation2 + $0x10a] sm:$0xff]  ;;  %v1032_v45 = vld [vmem:[#allocation2 + $0x112] sm:$0xff] }
  0xe8   : > { %v9088_v60 = vpack.c.bf16 %v1032_v45, %v1031_v30  ;;  %v1039_v30 = vld [vmem:[#allocation2 + $0x16a] sm:$0xff]  ;;  %v1040_v45 = vld [vmem:[#allocation2 + $0x172] sm:$0xff] }
  0xea   : > { %7001 = vmatpush3.bf16.msra.mxu0 %v8372_v12  ;;  %v8376_v12 = vld [vmem:[%s9705_s1 + $0xf8] sm:$0xff]  }
  0xeb   : > { %7002 = vmatprep.subr.bf16.mxu0 %v8373_v17 }
  0xed   : > { %6971 = vmatmul.mubr.bf16.gmra.mrb[8].mxu0 %v9058_v58 }
  0xee   : > { %6974 = vmatprep.mubr.bf16.mxu0 %v9060_v2  ;;  %7003 = vmatpush3.bf16.msra.mxu0 %v8373_v17  ;;  %v1028_v17 = vld [vmem:[#allocation2 + $0xe2] sm:$0xff] }
  0xef   : > { %7004 = vmatprep.subr.bf16.mxu0 %v8374_v4  ;;  %v9082_v11 = vpack.c.bf16 %v1028_v17, %v1027_v48  ;;  %v1038_v48 = vld [vmem:[#allocation2 + $0x15a] sm:$0xff] }
  0xf2   : > { %7005 = vmatpush3.bf16.msra.mxu0 %v8374_v4  ;;  %v9084_v4 = vpack.c.bf16 %v1030_v63, %v1029_v10  ;;  %v1035_v63 = vld [vmem:[#allocation2 + $0x13a] sm:$0xff]  ;;  %v1036_v10 = vld [vmem:[#allocation2 + $0x142] sm:$0xff] }
  0xf3   : > { %7006 = vmatprep.subr.bf16.mxu0 %v8375_v9  ;;  %v9094_v17 = vpack.c.bf16 %v1036_v10, %v1035_v63  ;;  %v8379_v63 = vld [vmem:[%s9705_s1 + $0x110] sm:$0xff]   ;;  %v2209_v10 = vld [vmem:[#allocation2 + $0x80] sm:$0xff] }
  0xf5   : > { %6975 = vmatmul.mubr.bf16.gmra.mrb[12].mxu0 %v9070_v21 }
  0xf6   : > { %6978 = vmatprep.mubr.bf16.mxu0 %v9072_v56  ;;  %7007 = vmatpush3.bf16.msra.mxu0 %v8375_v9  ;;  %v1033_v9 = vld [vmem:[#allocation2 + $0x122] sm:$0xff] }
  0xf7   : > { %7008 = vmatprep.subr.bf16.mxu0 %v8376_v12  ;;  %v9090_v0 = vpack.c.bf16 %v1034_v1, %v1033_v9  ;;  %v9100_v1 = vpack.c.bf16 %v1040_v45, %v1039_v30  ;;  %v8378_v9 = vld [vmem:[%s9705_s1 + $0x108] sm:$0xff]  }
  0xfa   : > { %7009 = vmatpush3.bf16.msra.mxu0 %v8376_v12  ;;  %v1037_v12 = vld [vmem:[#allocation2 + $0x152] sm:$0xff] }
  0xfb   : > { %7042 = vmatprep.subr.bf16.mxu0 %v8377_v8  ;;  %v9096_v51 = vpack.c.bf16 %v1038_v48, %v1037_v12  ;;  %v2210_v12 = vld [vmem:[#allocation2 + $0x90] sm:$0xff]  ;;  %v2211_v48 = vld [vmem:[#allocation2 + $0x98] sm:$0xff] }
  0xfc   : > { %v2238_v45 = vpack.c.bf16 %v2211_v48, %v2210_v12  ;;  %v8419_v48 = vld [vmem:[#allocation3 + $0x10] sm:$0xff]  }
  0xfd   : > { %6979 = vmatmul.mubr.bf16.gmra.mrb[16].mxu0 %v9082_v11 }
  0xfe   : > { %6982 = vmatprep.mubr.bf16.mxu0 %v9084_v4 }
 0x105   : > { %6983 = vmatmul.mubr.bf16.gmra.mrb[20].mxu0 %v9088_v60 }
 0x106   : > { %6986 = vmatprep.mubr.bf16.mxu0 %v9090_v0 }
 0x10d   : > { %6987 = vmatmul.mubr.bf16.gmra.mrb[24].mxu0 %v9094_v17 }
 0x10e   : > { %6990 = vmatprep.mubr.bf16.mxu0 %v9096_v51 }
 0x115   : > { %6991 = vmatmul.mubr.bf16.gmra.mrb[28].mxu0 %v9100_v1 }
 0x116   : > { %7010 = vmatprep.mubr.bf16.mxu0 %v8795_v42  ;;  %v8380_v42 = vld [vmem:[%s9705_s1 + $0x118] sm:$0xff]  }
 0x11d   : > { %7011 = vmatmul.mubr.bf16.vlgmr.msra.gmra.mrb[0].mxu0 %v8801_v46  ;;  %v8381_v46 = vld [vmem:[%s9705_s1 + $0x120] sm:$0xff]  }
 0x11e   : > { %7043 = vmatpush3.bf16.msra.mxu0 %v8377_v8  ;;  %7014 = vmatprep.mubr.bf16.mxu0 %v8814_v53  ;;  %v8382_v53 = vld [vmem:[%s9705_s1 + $0x128] sm:$0xff]  }
 0x11f   : > { %7044 = vmatprep.subr.bf16.mxu0 %v8378_v9 }
 0x122   : > { %7045 = vmatpush3.bf16.msra.mxu0 %v8378_v9  ;;  %v2212_v9 = vld [vmem:[#allocation2 + $0xa8] sm:$0xff] }
 0x123   : > { %7046 = vmatprep.subr.bf16.mxu0 %v8379_v63 }
 0x125   : > { %7015 = vmatmul.mubr.bf16.gmra.mrb[4].mxu0 %v8816_v54  ;;  %v8383_v54 = vld [vmem:[%s9705_s1 + $0x130] sm:$0xff]  }
 0x126   : > { %7018 = vmatprep.mubr.bf16.mxu0 %v8826_v61  ;;  %7047 = vmatpush3.bf16.msra.mxu0 %v8379_v63  ;;  %v8384_v61 = vld [vmem:[%s9705_s1 + $0x138] sm:$0xff]   ;;  %v2213_v63 = vld [vmem:[#allocation2 + $0xb0] sm:$0xff] }
 0x127   : > { %7048 = vmatprep.subr.bf16.mxu0 %v8380_v42 }
 0x12a   : > { %7049 = vmatpush3.bf16.msra.mxu0 %v8380_v42  ;;  %v2214_v42 = vld [vmem:[#allocation2 + $0xc0] sm:$0xff] }
 0x12b   : > { %7050 = vmatprep.subr.bf16.mxu0 %v8381_v46 }
 0x12d   : > { %7019 = vmatmul.mubr.bf16.gmra.mrb[8].mxu0 %v8828_v62  ;;  %v8385_v62 = vld [vmem:[%s9705_s1 + $0x140] sm:$0xff]  }
 0x12e   : > { %7022 = vmatprep.mubr.bf16.mxu0 %v8838_v5  ;;  %7051 = vmatpush3.bf16.msra.mxu0 %v8381_v46  ;;  %v1345_v5 = vld [vmem:[#allocation2 + $0x180] sm:$0xff]  ;;  %v2215_v46 = vld [vmem:[#allocation2 + $0xc8] sm:$0xff] }
 0x12f   : > { %7052 = vmatprep.subr.bf16.mxu0 %v8382_v53 }
 0x132   : > { %7053 = vmatpush3.bf16.msra.mxu0 %v8382_v53  ;;  %v8405_v53 = vld [vmem:[%s9705_s1 + $0x1e0] sm:$0xff]  }
 0x133   : > { %7054 = vmatprep.subr.bf16.mxu0 %v8383_v54 }
 0x135   : > { %7023 = vmatmul.mubr.bf16.gmra.mrb[12].mxu0 %v8840_v6  ;;  %v1346_v6 = vld [vmem:[#allocation2 + $0x188] sm:$0xff] }
 0x136   : > { %7026 = vmatprep.mubr.bf16.mxu0 %v8850_v13  ;;  %7055 = vmatpush3.bf16.msra.mxu0 %v8383_v54  ;;  %v9142_v13 = vpack.c.bf16 %v1346_v6, %v1345_v5  ;;  %v2239_v54 = vpack.c.bf16 %v2213_v63, %v2212_v9  ;;  %v2216_v5 = vld [vmem:[#allocation2 + $0xd8] sm:$0xff]  ;;  %v2217_v6 = vld [vmem:[#allocation2 + $0xe0] sm:$0xff]  ;;  %v8411_v63 = vld [vmem:[%s9705_s1 + $0x210] sm:$0xff]  }
 0x137   : > { %7056 = vmatprep.subr.bf16.mxu0 %v8384_v61  ;;  %v2517_v9 = vld [vmem:[#allocation2 + $0x99] sm:$0xff] }
 0x13a   : > { %7057 = vmatpush3.bf16.msra.mxu0 %v8384_v61  ;;  %v2240_v61 = vpack.c.bf16 %v2215_v46, %v2214_v42 }
 0x13b   : > { %7090 = vmatprep.subr.bf16.mxu0 %v8385_v62 }
 0x13d   : > { %7027 = vmatmul.mubr.bf16.gmra.mrb[16].mxu0 %v8852_v14  ;;  %v8386_v14 = vld [vmem:[%s9705_s1 + $0x148] sm:$0xff]  }
 0x13e   : > { %7030 = vmatprep.mubr.bf16.mxu0 %v8856_v19  ;;  %v8387_v19 = vld [vmem:[%s9705_s1 + $0x150] sm:$0xff]  }
 0x145   : > { %7031 = vmatmul.mubr.bf16.gmra.mrb[20].mxu0 %v8858_v20  ;;  %v8388_v20 = vld [vmem:[%s9705_s1 + $0x158] sm:$0xff]  }
 0x146   : > { %7034 = vmatprep.mubr.bf16.mxu0 %v8862_v25  ;;  %v8389_v25 = vld [vmem:[%s9705_s1 + $0x160] sm:$0xff]  }
 0x14d   : > { %7035 = vmatmul.mubr.bf16.gmra.mrb[24].mxu0 %v8864_v26  ;;  %v8390_v26 = vld [vmem:[%s9705_s1 + $0x168] sm:$0xff]  }
 0x14e   : > { %7038 = vmatprep.mubr.bf16.mxu0 %v8868_v31  ;;  %v8391_v31 = vld [vmem:[%s9705_s1 + $0x170] sm:$0xff]  }
 0x155   : > { %7039 = vmatmul.mubr.bf16.gmra.mrb[28].mxu0 %v9142_v13 }
 0x156   : > { %7058 = vmatprep.mubr.bf16.mxu0 %v8881_v37  ;;  %v8392_v37 = vld [vmem:[%s9705_s1 + $0x178] sm:$0xff]  }
 0x15d   : > { %7059 = vmatmul.mubr.bf16.vlgmr.msra.gmra.mrb[0].mxu0 %v8888_v39  ;;  %v8393_v39 = vld [vmem:[%s9705_s1 + $0x180] sm:$0xff]  }
 0x15e   : > { %7091 = vmatpush3.bf16.msra.mxu0 %v8385_v62  ;;  %7062 = vmatprep.mubr.bf16.mxu0 %v8905_v47  ;;  %v9184_v47 = vld [vmem:[#allocation2 + $0x181] sm:$0xff] }
 0x15f   : > { %7092 = vmatprep.subr.bf16.mxu0 %v8386_v14  ;;  %v8406_v62 = vld [vmem:[%s9705_s1 + $0x1e8] sm:$0xff]  }
 0x162   : > { %7093 = vmatpush3.bf16.msra.mxu0 %v8386_v14  ;;  %v2218_v14 = vld [vmem:[#allocation2 + $0xf0] sm:$0xff] }
 0x163   : > { %7094 = vmatprep.subr.bf16.mxu0 %v8387_v19 }
 0x165   : > { %7063 = vmatmul.mubr.bf16.gmra.mrb[4].mxu0 %v8912_v49  ;;  %v9186_v49 = vld [vmem:[#allocation2 + $0x189] sm:$0xff] }
 0x166   : > { %7066 = vmatprep.mubr.bf16.mxu0 %v8929_v57  ;;  %7095 = vmatpush3.bf16.msra.mxu0 %v8387_v19  ;;  %v8489_v57 = vld [vmem:[#allocation2] sm:$0xff]  ;;  %v2219_v19 = vld [vmem:[#allocation2 + $0xf8] sm:$0xff] }
 0x167   : > { %7096 = vmatprep.subr.bf16.mxu0 %v8388_v20 }
 0x16a   : > { %7097 = vmatpush3.bf16.msra.mxu0 %v8388_v20  ;;  %v8407_v20 = vld [vmem:[%s9705_s1 + $0x1f0] sm:$0xff]  }
 0x16b   : > { %7098 = vmatprep.subr.bf16.mxu0 %v8389_v25 }
 0x16d   : > { %7067 = vmatmul.mubr.bf16.gmra.mrb[8].mxu0 %v8936_v59  ;;  %v9188_v59 = vpack.c.bf16 %v8489_v57, %v8489_v57  ;;  %v2222_v57 = vld [vmem:[#allocation2 + $0x120] sm:$0xff] }
 0x16e   : > { %7070 = vmatprep.mubr.bf16.mxu0 %v8953_v3  ;;  %7099 = vmatpush3.bf16.msra.mxu0 %v8389_v25  ;;  %v9193_v3 = vpack.c.bf16 %v9186_v49, %v9184_v47  ;;  %v2241_v25 = vpack.c.bf16 %v2217_v6, %v2216_v5  ;;  %v2521_v5 = vld [vmem:[#allocation2 + $0xc9] sm:$0xff]  ;;  %v8413_v6 = vld [vmem:[%s9705_s1 + $0x220] sm:$0xff]  }
 0x16f   : > { %7100 = vmatprep.subr.bf16.mxu0 %v8390_v26  ;;  %7298 = vmatprep.mubr.bf16.mxu1 %v9188_v59 }
 0x172   : > { %7101 = vmatpush3.bf16.msra.mxu0 %v8390_v26  ;;  %v2242_v26 = vpack.c.bf16 %v2219_v19, %v2218_v14 }
 0x173   : > { %7102 = vmatprep.subr.bf16.mxu0 %v8391_v31 }
 0x175   : > { %7071 = vmatmul.mubr.bf16.gmra.mrb[12].mxu0 %v8960_v7  ;;  %v8394_v7 = vld [vmem:[%s9705_s1 + $0x188] sm:$0xff]  }
 0x176   : > { %7074 = vmatprep.mubr.bf16.mxu0 %v8977_v15  ;;  %7103 = vmatpush3.bf16.msra.mxu0 %v8391_v31  ;;  %v8395_v15 = vld [vmem:[%s9705_s1 + $0x190] sm:$0xff]   ;;  %v8408_v31 = vld [vmem:[%s9705_s1 + $0x1f8] sm:$0xff]  }
 0x177   : > { %7104 = vmatprep.subr.bf16.mxu0 %v8392_v37 }
 0x17a   : > { %7105 = vmatpush3.bf16.msra.mxu0 %v8392_v37  ;;  %v2220_v37 = vld [vmem:[#allocation2 + $0x108] sm:$0xff] }
 0x17b   : > { %7138 = vmatprep.subr.bf16.mxu0 %v8393_v39 }
 0x17d   : > { %7075 = vmatmul.mubr.bf16.gmra.mrb[16].mxu0 %v8981_v16  ;;  %v8396_v16 = vld [vmem:[%s9705_s1 + $0x198] sm:$0xff]  }
 0x17e   : > { %7078 = vmatprep.mubr.bf16.mxu0 %v8995_v23  ;;  %v8399_v23 = vld [vmem:[%s9705_s1 + $0x1b0] sm:$0xff]  }
 0x185   : > { %7079 = vmatmul.mubr.bf16.gmra.mrb[20].mxu0 %v8999_v24  ;;  %v8400_v24 = vld [vmem:[%s9705_s1 + $0x1b8] sm:$0xff]  }
 0x186   : > { %7082 = vmatprep.mubr.bf16.mxu0 %v9013_v32  ;;  %v1925_v32 = vld [vmem:[#allocation2 + $0x182] sm:$0xff] }
 0x18d   : > { %7083 = vmatmul.mubr.bf16.gmra.mrb[24].mxu0 %v9017_v38  ;;  %v1926_v38 = vld [vmem:[#allocation2 + $0x18a] sm:$0xff] }
 0x18e   : > { %7086 = vmatprep.mubr.bf16.mxu0 %v9031_v28  ;;  %v8401_v28 = vld [vmem:[%s9705_s1 + $0x1c0] sm:$0xff]  }
 0x195   : > { %7087 = vmatmul.mubr.bf16.gmra.mrb[28].mxu0 %v9193_v3 }
 0x196   : > { %7106 = vmatprep.mubr.bf16.mxu0 %v9034_v18  ;;  %v8397_v18 = vld [vmem:[%s9705_s1 + $0x1a0] sm:$0xff]  }
 0x19d   : > { %7107 = vmatmul.mubr.bf16.vlgmr.msra.gmra.mrb[0].mxu0 %v9036_v22  ;;  %v8398_v22 = vld [vmem:[%s9705_s1 + $0x1a8] sm:$0xff]  }
 0x19e   : > { %7139 = vmatpush3.bf16.msra.mxu0 %v8393_v39  ;;  %7110 = vmatprep.mubr.bf16.mxu0 %v9046_v27  ;;  %v2202_v27 = vld [vmem:[#allocation2 + $0x30] sm:$0xff] }
 0x19f   : > { %7140 = vmatprep.subr.bf16.mxu0 %v8394_v7  ;;  %v2221_v39 = vld [vmem:[#allocation2 + $0x110] sm:$0xff] }
 0x1a2   : > { %7141 = vmatpush3.bf16.msra.mxu0 %v8394_v7  ;;  %v2223_v7 = vld [vmem:[#allocation2 + $0x128] sm:$0xff] }
 0x1a3   : > { %7142 = vmatprep.subr.bf16.mxu0 %v8395_v15 }
 0x1a5   : > { %7111 = vmatmul.mubr.bf16.gmra.mrb[4].mxu0 %v9048_v29  ;;  %v2203_v29 = vld [vmem:[#allocation2 + $0x38] sm:$0xff] }
 0x1a6   : > { %7114 = vmatprep.mubr.bf16.mxu0 %v9058_v58  ;;  %7143 = vmatpush3.bf16.msra.mxu0 %v8395_v15  ;;  %v9235_v58 = vpack.c.bf16 %v1926_v38, %v1925_v32  ;;  %v8409_v15 = vld [vmem:[%s9705_s1 + $0x200] sm:$0xff]  }
 0x1a7   : > { %7144 = vmatprep.subr.bf16.mxu0 %v8396_v16 }
 0x1aa   : > { %7145 = vmatpush3.bf16.msra.mxu0 %v8396_v16  ;;  %v2243_v16 = vpack.c.bf16 %v2221_v39, %v2220_v37  ;;  %v2525_v37 = vld [vmem:[#allocation2 + $0xf9] sm:$0xff]  ;;  %v8415_v39 = vld [vmem:[%s9705_s1 + $0x230] sm:$0xff]  }
 0x1ab   : > { %7146 = vmatprep.subr.bf16.mxu0 %v8397_v18 }
 0x1ad   : > { %7115 = vmatmul.mubr.bf16.gmra.mrb[8].mxu0 %v9060_v2  ;;  %v2234_v2 = vpack.c.bf16 %v2203_v29, %v2202_v27  ;;  %v2228_v27 = vld [vmem:[#allocation2 + $0x168] sm:$0xff]  ;;  %v2229_v29 = vld [vmem:[#allocation2 + $0x170] sm:$0xff] }
 0x1ae   : > { %7118 = vmatprep.mubr.bf16.mxu0 %v9070_v21  ;;  %7147 = vmatpush3.bf16.msra.mxu0 %v8397_v18  ;;  %v2204_v21 = vld [vmem:[#allocation2 + $0x48] sm:$0xff]  ;;  %v2244_v18 = vpack.c.bf16 %v2223_v7, %v2222_v57 }
 0x1af   : > { %7148 = vmatprep.subr.bf16.mxu0 %v8398_v22 }
 0x1b2   : > { %7149 = vmatpush3.bf16.msra.mxu0 %v8398_v22  ;;  %v2224_v22 = vld [vmem:[#allocation2 + $0x138] sm:$0xff] }
 0x1b3   : > { %7150 = vmatprep.subr.bf16.mxu0 %v8399_v23 }
 0x1b5   : > { %7119 = vmatmul.mubr.bf16.gmra.mrb[12].mxu0 %v9072_v56  ;;  %v2206_v56 = vld [vmem:[#allocation2 + $0x60] sm:$0xff] }
 0x1b6   : > { %7122 = vmatprep.mubr.bf16.mxu0 %v9082_v11  ;;  %7151 = vmatpush3.bf16.msra.mxu0 %v8399_v23  ;;  %v2225_v23 = vld [vmem:[#allocation2 + $0x140] sm:$0xff] }
 0x1b7   : > { %7152 = vmatprep.subr.bf16.mxu0 %v8400_v24  ;;  %v2245_v32 = vpack.c.bf16 %v2225_v23, %v2224_v22  ;;  %v2528_v22 = vld [vmem:[#allocation2 + $0x121] sm:$0xff]  ;;  %v2529_v23 = vld [vmem:[#allocation2 + $0x129] sm:$0xff] }
 0x1ba   : > { %7153 = vmatpush3.bf16.msra.mxu0 %v8400_v24  ;;  %v2226_v24 = vld [vmem:[#allocation2 + $0x150] sm:$0xff] }
 0x1bb   : > { %7186 = vmatprep.subr.bf16.mxu0 %v8401_v28 }
 0x1bd   : > { %7123 = vmatmul.mubr.bf16.gmra.mrb[16].mxu0 %v9084_v4  ;;  %v2208_v4 = vld [vmem:[#allocation2 + $0x78] sm:$0xff] }
 0x1be   : > { %7126 = vmatprep.mubr.bf16.mxu0 %v9088_v60  ;;  %v2205_v60 = vld [vmem:[#allocation2 + $0x50] sm:$0xff]  ;;  %v2237_v30 = vpack.c.bf16 %v2209_v10, %v2208_v4  ;;  %v2512_v4 = vld [vmem:[#allocation2 + $0x61] sm:$0xff] }
 0x1bf   : > { %v2235_v8 = vpack.c.bf16 %v2205_v60, %v2204_v21  ;;  %v2508_v21 = vld [vmem:[#allocation2 + $0x31] sm:$0xff]  ;;  %v2509_v60 = vld [vmem:[#allocation2 + $0x39] sm:$0xff]  ;;  %v2513_v10 = vld [vmem:[#allocation2 + $0x69] sm:$0xff] }
 0x1c5   : > { %7127 = vmatmul.mubr.bf16.gmra.mrb[20].mxu0 %v9090_v0  ;;  %v2207_v0 = vld [vmem:[#allocation2 + $0x68] sm:$0xff] }
 0x1c6   : > { %7130 = vmatprep.mubr.bf16.mxu0 %v9094_v17  ;;  %v2236_v11 = vpack.c.bf16 %v2207_v0, %v2206_v56  ;;  %v8403_v17 = vld [vmem:[%s9705_s1 + $0x1d0] sm:$0xff]   ;;  %v2540_v56 = vpack.c.bf16 %v2509_v60, %v2508_v21 }
 0x1c7   : > { %v8417_v0 = vld [vmem:[#allocation3] sm:$0xff]  }
 0x1c8   : > { %7282 = vmatprep.subr.bf16.mxu1 %v8417_v0  ;;  %v2534_v60 = vld [vmem:[#allocation2 + $0x169] sm:$0xff] }
 0x1c9   : > { %7283 = vmatpush3.bf16.msra.mxu1 %v8417_v0 }
 0x1cd   : > { %7131 = vmatmul.mubr.bf16.gmra.mrb[24].mxu0 %v9096_v51  ;;  %v8402_v51 = vld [vmem:[%s9705_s1 + $0x1c8] sm:$0xff]  }
 0x1ce   : > { %7134 = vmatprep.mubr.bf16.mxu0 %v9100_v1  ;;  %v8404_v1 = vld [vmem:[%s9705_s1 + $0x1d8] sm:$0xff]  }
 0x1d5   : > { %7135 = vmatmul.mubr.bf16.gmra.mrb[28].mxu0 %v9235_v58 }
 0x1d6   : > { %7154 = vmatprep.mubr.bf16.mxu0 %v2234_v2  ;;  %v2247_v2 = vpack.c.bf16 %v2229_v29, %v2228_v27  ;;  %v2532_v27 = vld [vmem:[#allocation2 + $0x151] sm:$0xff]  ;;  %v2533_v29 = vld [vmem:[#allocation2 + $0x159] sm:$0xff] }
 0x1d7   : > { %v2552_v21 = vpack.c.bf16 %v2533_v29, %v2532_v27  ;;  %v2841_v27 = vld [vmem:[#allocation2 + $0x172] sm:$0xff] }
 0x1dd   : > { %7155 = vmatmul.mubr.bf16.vlgmr.msra.gmra.mrb[0].mxu0 %v2235_v8  ;;  %v8418_v8 = vld [vmem:[#allocation3 + $0x8] sm:$0xff]  }
 0x1de   : > { %7187 = vmatpush3.bf16.msra.mxu0 %v8401_v28  ;;  %7158 = vmatprep.mubr.bf16.mxu0 %v2236_v11  ;;  %v2227_v28 = vld [vmem:[#allocation2 + $0x158] sm:$0xff]  ;;  %v2510_v11 = vld [vmem:[#allocation2 + $0x49] sm:$0xff] }
 0x1df   : > { %7188 = vmatprep.subr.bf16.mxu0 %v8402_v51  ;;  %v2246_v38 = vpack.c.bf16 %v2227_v28, %v2226_v24  ;;  %7284 = vmatprep.subr.bf16.mxu1 %v8418_v8  ;;  %v2550_v28 = vpack.c.bf16 %v2529_v23, %v2528_v22  ;;  %v2837_v22 = vld [vmem:[#allocation2 + $0x142] sm:$0xff]  ;;  %v2838_v23 = vld [vmem:[#allocation2 + $0x152] sm:$0xff] }
 0x1e0   : > { %7285 = vmatpush3.bf16.msra.mxu1 %v8418_v8  ;;  %v2538_v8 = vld [vmem:[#allocation2 + $0x199] sm:$0xff] }
 0x1e1   : > { %7286 = vmatprep.subr.bf16.mxu1 %v8419_v48 }
 0x1e2   : > { %7189 = vmatpush3.bf16.msra.mxu0 %v8402_v51  ;;  %v2511_v51 = vld [vmem:[#allocation2 + $0x51] sm:$0xff] }
 0x1e3   : > { %7190 = vmatprep.subr.bf16.mxu0 %v8403_v17  ;;  %v2541_v12 = vpack.c.bf16 %v2511_v51, %v2510_v11  ;;  %v2539_v11 = vld [vmem:[#allocation2 + $0x1a1] sm:$0xff]  ;;  %v2814_v51 = vld [vmem:[#allocation2 + $0x32] sm:$0xff] }
 0x1e4   : > { %7287 = vmatpush3.bf16.msra.mxu1 %v8419_v48  ;;  %v2816_v48 = vld [vmem:[#allocation2 + $0x4a] sm:$0xff] }
 0x1e5   : > { %7159 = vmatmul.mubr.bf16.gmra.mrb[4].mxu0 %v2237_v30  ;;  %v2514_v30 = vld [vmem:[#allocation2 + $0x79] sm:$0xff] }
 0x1e6   : > { %7162 = vmatprep.mubr.bf16.mxu0 %v2238_v45  ;;  %7191 = vmatpush3.bf16.msra.mxu0 %v8403_v17  ;;  %v2542_v17 = vpack.c.bf16 %v2513_v10, %v2512_v4  ;;  %v2515_v45 = vld [vmem:[#allocation2 + $0x81] sm:$0xff]  ;;  %v2555_v10 = vpack.c.bf16 %v2539_v11, %v2538_v8 }
 0x1e7   : > { %7192 = vmatprep.subr.bf16.mxu0 %v8404_v1  ;;  %v2543_v42 = vpack.c.bf16 %v2515_v45, %v2514_v30  ;;  %v2815_v4 = vld [vmem:[#allocation2 + $0x3a] sm:$0xff]  ;;  %v8424_v11 = vld [vmem:[#allocation3 + $0x38] sm:$0xff]  }
 0x1e8   : > { %v8423_v8 = vld [vmem:[#allocation3 + $0x30] sm:$0xff]  }
 0x1ea   : > { %7193 = vmatpush3.bf16.msra.mxu0 %v8404_v1  ;;  %v2516_v1 = vld [vmem:[#allocation2 + $0x91] sm:$0xff] }
 0x1eb   : > { %7194 = vmatprep.subr.bf16.mxu0 %v8405_v53  ;;  %v2544_v46 = vpack.c.bf16 %v2517_v9, %v2516_v1  ;;  %v2820_v1 = vld [vmem:[#allocation2 + $0x7a] sm:$0xff]  ;;  %v2821_v9 = vld [vmem:[#allocation2 + $0x82] sm:$0xff] }
 0x1ed   : > { %7163 = vmatmul.mubr.bf16.gmra.mrb[8].mxu0 %v2239_v54  ;;  %v2518_v54 = vld [vmem:[#allocation2 + $0xa9] sm:$0xff] }
 0x1ee   : > { %7166 = vmatprep.mubr.bf16.mxu0 %v2240_v61  ;;  %7195 = vmatpush3.bf16.msra.mxu0 %v8405_v53  ;;  %v8412_v53 = vld [vmem:[%s9705_s1 + $0x218] sm:$0xff]  }
 0x1ef   : > { %7196 = vmatprep.subr.bf16.mxu0 %v8406_v62  ;;  %v2519_v61 = vld [vmem:[#allocation2 + $0xb1] sm:$0xff] }
 0x1f0   : > { %v2545_v14 = vpack.c.bf16 %v2519_v61, %v2518_v54  ;;  %v2825_v54 = vld [vmem:[#allocation2 + $0xb2] sm:$0xff]  ;;  %v2826_v61 = vld [vmem:[#allocation2 + $0xc2] sm:$0xff] }
 0x1f2   : > { %7197 = vmatpush3.bf16.msra.mxu0 %v8406_v62  ;;  %v2520_v62 = vld [vmem:[#allocation2 + $0xc1] sm:$0xff] }
 0x1f3   : > { %7198 = vmatprep.subr.bf16.mxu0 %v8407_v20  ;;  %v2546_v19 = vpack.c.bf16 %v2521_v5, %v2520_v62  ;;  %v2827_v62 = vld [vmem:[#allocation2 + $0xca] sm:$0xff] }
 0x1f5   : > { %7167 = vmatmul.mubr.bf16.gmra.mrb[12].mxu0 %v2241_v25  ;;  %v2522_v25 = vld [vmem:[#allocation2 + $0xd9] sm:$0xff] }
 0x1f6   : > { %7170 = vmatprep.mubr.bf16.mxu0 %v2242_v26  ;;  %7199 = vmatpush3.bf16.msra.mxu0 %v8407_v20  ;;  %v8414_v20 = vld [vmem:[%s9705_s1 + $0x228] sm:$0xff]  }
 0x1f7   : > { %7200 = vmatprep.subr.bf16.mxu0 %v8408_v31  ;;  %v2523_v26 = vld [vmem:[#allocation2 + $0xe1] sm:$0xff] }
 0x1f8   : > { %v2547_v57 = vpack.c.bf16 %v2523_v26, %v2522_v25  ;;  %v2831_v25 = vld [vmem:[#allocation2 + $0xfa] sm:$0xff] }
 0x1fa   : > { %7201 = vmatpush3.bf16.msra.mxu0 %v8408_v31  ;;  %v2524_v31 = vld [vmem:[#allocation2 + $0xf1] sm:$0xff] }
 0x1fb   : > { %7234 = vmatprep.subr.bf16.mxu0 %v8409_v15  ;;  %v2548_v7 = vpack.c.bf16 %v2525_v37, %v2524_v31  ;;  %v2832_v37 = vld [vmem:[#allocation2 + $0x10a] sm:$0xff] }
 0x1fd   : > { %7171 = vmatmul.mubr.bf16.gmra.mrb[16].mxu0 %v2243_v16  ;;  %v2526_v16 = vld [vmem:[#allocation2 + $0x109] sm:$0xff] }
 0x1fe   : > { %7174 = vmatprep.mubr.bf16.mxu0 %v2244_v18  ;;  %v2527_v18 = vld [vmem:[#allocation2 + $0x111] sm:$0xff] }
 0x1ff   : > { %v2549_v24 = vpack.c.bf16 %v2527_v18, %v2526_v16  ;;  %v2836_v18 = vld [vmem:[#allocation2 + $0x13a] sm:$0xff] }
 0x205   : > { %7175 = vmatmul.mubr.bf16.gmra.mrb[20].mxu0 %v2245_v32  ;;  %v2530_v32 = vld [vmem:[#allocation2 + $0x139] sm:$0xff] }
 0x206   : > { %7178 = vmatprep.mubr.bf16.mxu0 %v2246_v38  ;;  %v2531_v38 = vld [vmem:[#allocation2 + $0x141] sm:$0xff] }
 0x20d   : > { %7179 = vmatmul.mubr.bf16.gmra.mrb[24].mxu0 %v2247_v2  ;;  %v2551_v2 = vpack.c.bf16 %v2531_v38, %v2530_v32  ;;  %v2840_v38 = vld [vmem:[#allocation2 + $0x16a] sm:$0xff] }
 0x20e   : > { %7182 = vmatprep.mubr.bf16.mxu0 %v9142_v13  ;;  %v8410_v13 = vld [vmem:[%s9705_s1 + $0x208] sm:$0xff]   ;;  %v2859_v29 = vpack.c.bf16 %v2841_v27, %v2840_v38 }
 0x215   : > { %7183 = vmatmul.mubr.bf16.gmra.mrb[28].mxu0 %v9188_v59  ;;  %v8420_v59 = vld [vmem:[#allocation3 + $0x18] sm:$0xff]  }
 0x216   : > { %7202 = vmatprep.mubr.bf16.mxu0 %v2540_v56  ;;  %7288 = vmatprep.subr.bf16.mxu1 %v8420_v59  ;;  %v2535_v56 = vld [vmem:[#allocation2 + $0x171] sm:$0xff] }
 0x217   : > { %7289 = vmatpush3.bf16.msra.mxu1 %v8420_v59  ;;  %v2553_v0 = vpack.c.bf16 %v2535_v56, %v2534_v60  ;;  %v2819_v59 = vld [vmem:[#allocation2 + $0x6a] sm:$0xff] }
 0x218   : > { %v8421_v56 = vld [vmem:[#allocation3 + $0x20] sm:$0xff]  }
 0x219   : > { %7290 = vmatprep.subr.bf16.mxu1 %v8421_v56 }
 0x21b   : > { %7291 = vmatpush3.bf16.msra.mxu1 %v8421_v56  ;;  %v8427_v56 = vld [vmem:[#allocation3 + $0x50] sm:$0xff]  }
 0x21d   : > { %7203 = vmatmul.mubr.bf16.vlgmr.msra.gmra.mrb[0].mxu0 %v2541_v12  ;;  %v2846_v12 = vpack.c.bf16 %v2815_v4, %v2814_v51  ;;  %v8425_v51 = vld [vmem:[#allocation3 + $0x40] sm:$0xff]  }
 0x21e   : > { %7235 = vmatpush3.bf16.msra.mxu0 %v8409_v15  ;;  %7206 = vmatprep.mubr.bf16.mxu0 %v2542_v17  ;;  %v8416_v15 = vld [vmem:[%s9705_s1 + $0x238] sm:$0xff]  }
 0x21f   : > { %7236 = vmatprep.subr.bf16.mxu0 %v8410_v13  ;;  %v2817_v17 = vld [vmem:[#allocation2 + $0x52] sm:$0xff] }
 0x220   : > { %v2847_v30 = vpack.c.bf16 %v2817_v17, %v2816_v48 }
 0x222   : > { %7237 = vmatpush3.bf16.msra.mxu0 %v8410_v13  ;;  %v2818_v13 = vld [vmem:[#allocation2 + $0x62] sm:$0xff] }
 0x223   : > { %7238 = vmatprep.subr.bf16.mxu0 %v8411_v63  ;;  %v2848_v45 = vpack.c.bf16 %v2819_v59, %v2818_v13 }
 0x225   : > { %7207 = vmatmul.mubr.bf16.gmra.mrb[4].mxu0 %v2543_v42  ;;  %v2849_v42 = vpack.c.bf16 %v2821_v9, %v2820_v1 }
 0x226   : > { %7210 = vmatprep.mubr.bf16.mxu0 %v2544_v46  ;;  %7239 = vmatpush3.bf16.msra.mxu0 %v8411_v63  ;;  %v2822_v63 = vld [vmem:[#allocation2 + $0x92] sm:$0xff] }
 0x227   : > { %7240 = vmatprep.subr.bf16.mxu0 %v8412_v53 }
 0x22a   : > { %7241 = vmatpush3.bf16.msra.mxu0 %v8412_v53  ;;  %v2824_v53 = vld [vmem:[#allocation2 + $0xaa] sm:$0xff] }
 0x22b   : > { %7242 = vmatprep.subr.bf16.mxu0 %v8413_v6  ;;  %v2851_v5 = vpack.c.bf16 %v2825_v54, %v2824_v53 }
 0x22d   : > { %7211 = vmatmul.mubr.bf16.gmra.mrb[8].mxu0 %v2545_v14  ;;  %v2828_v14 = vld [vmem:[#allocation2 + $0xda] sm:$0xff] }
 0x22e   : > { %7214 = vmatprep.mubr.bf16.mxu0 %v2546_v19  ;;  %7243 = vmatpush3.bf16.msra.mxu0 %v8413_v6  ;;  %v2852_v6 = vpack.c.bf16 %v2827_v62, %v2826_v61  ;;  %v2829_v19 = vld [vmem:[#allocation2 + $0xe2] sm:$0xff] }
 0x22f   : > { %7244 = vmatprep.subr.bf16.mxu0 %v8414_v20  ;;  %v2853_v26 = vpack.c.bf16 %v2829_v19, %v2828_v14 }
 0x232   : > { %7245 = vmatpush3.bf16.msra.mxu0 %v8414_v20  ;;  %v2830_v20 = vld [vmem:[#allocation2 + $0xf2] sm:$0xff] }
 0x233   : > { %7246 = vmatprep.subr.bf16.mxu0 %v8415_v39  ;;  %v2854_v31 = vpack.c.bf16 %v2831_v25, %v2830_v20 }
 0x235   : > { %7215 = vmatmul.mubr.bf16.gmra.mrb[12].mxu0 %v2547_v57  ;;  %v2834_v57 = vld [vmem:[#allocation2 + $0x122] sm:$0xff] }
 0x236   : > { %7218 = vmatprep.mubr.bf16.mxu0 %v2548_v7  ;;  %7247 = vmatpush3.bf16.msra.mxu0 %v8415_v39  ;;  %v2833_v39 = vld [vmem:[#allocation2 + $0x112] sm:$0xff]  ;;  %v2835_v7 = vld [vmem:[#allocation2 + $0x12a] sm:$0xff] }
 0x237   : > { %7248 = vmatprep.subr.bf16.mxu0 %v8416_v15  ;;  %v2856_v16 = vpack.c.bf16 %v2835_v7, %v2834_v57 }
 0x23a   : > { %7249 = vmatpush3.bf16.msra.mxu0 %v8416_v15  ;;  %v2855_v15 = vpack.c.bf16 %v2833_v39, %v2832_v37 }
 0x23d   : > { %7219 = vmatmul.mubr.bf16.gmra.mrb[16].mxu0 %v2549_v24  ;;  %v2839_v24 = vld [vmem:[#allocation2 + $0x15a] sm:$0xff] }
 0x23e   : > { %7222 = vmatprep.mubr.bf16.mxu0 %v2550_v28  ;;  %v2857_v28 = vpack.c.bf16 %v2837_v22, %v2836_v18  ;;  %v2858_v32 = vpack.c.bf16 %v2839_v24, %v2838_v23  ;;  %v8426_v18 = vld [vmem:[#allocation3 + $0x48] sm:$0xff]  }
 0x245   : > { %7223 = vmatmul.mubr.bf16.gmra.mrb[20].mxu0 %v2551_v2  ;;  %v2844_v2 = vld [vmem:[#allocation2 + $0x19a] sm:$0xff] }
 0x246   : > { %7226 = vmatprep.mubr.bf16.mxu0 %v2552_v21  ;;  %v2845_v21 = vld [vmem:[#allocation2 + $0x1a2] sm:$0xff] }
 0x247   : > { %v2861_v60 = vpack.c.bf16 %v2845_v21, %v2844_v2 }
 0x24d   : > { %7227 = vmatmul.mubr.bf16.gmra.mrb[24].mxu0 %v2553_v0  ;;  %v8422_v0 = vld [vmem:[#allocation3 + $0x28] sm:$0xff]  }
 0x24e   : > { %7230 = vmatprep.mubr.bf16.mxu0 %v9193_v3  ;;  %v2823_v3 = vld [vmem:[#allocation2 + $0x9a] sm:$0xff]  ;;  %7292 = vmatprep.subr.bf16.mxu1 %v8422_v0 }
 0x24f   : > { %v2850_v46 = vpack.c.bf16 %v2823_v3, %v2822_v63  ;;  %7293 = vmatpush3.bf16.msra.mxu1 %v8422_v0 }
 0x250   : > { %7294 = vmatprep.subr.bf16.mxu1 %v8423_v8 }
 0x253   : > { %7295 = vmatpush3.bf16.msra.mxu1 %v8423_v8 }
 0x254   : > { %7296 = vmatprep.subr.bf16.mxu1 %v8424_v11 }
 0x255   : > { %7231 = vmatmul.mubr.bf16.gmra.mrb[28].mxu0 %v2555_v10 }
 0x256   : > { %7250 = vmatprep.mubr.bf16.mxu0 %v2846_v12 }
 0x257   : > { %7297 = vmatpush3.bf16.msra.mxu1 %v8424_v11 }
 0x258   : > { %7330 = vmatprep.subr.bf16.mxu1 %v8425_v51 }
 0x25d   : > { %7251 = vmatmul.mubr.bf16.vlgmr.msra.gmra.mrb[0].mxu0 %v2847_v30 }
 0x25e   : > { %7254 = vmatprep.mubr.bf16.mxu0 %v2848_v45 }
 0x265   : > { %7255 = vmatmul.mubr.bf16.gmra.mrb[4].mxu0 %v2849_v42 }
 0x266   : > { %7258 = vmatprep.mubr.bf16.mxu0 %v2850_v46 }
 0x26d   : > { %7259 = vmatmul.mubr.bf16.gmra.mrb[8].mxu0 %v2851_v5 }
 0x26e   : > { %7262 = vmatprep.mubr.bf16.mxu0 %v2852_v6 }
 0x275   : > { %7263 = vmatmul.mubr.bf16.gmra.mrb[12].mxu0 %v2853_v26 }
 0x276   : > { %7266 = vmatprep.mubr.bf16.mxu0 %v2854_v31 }
 0x27d   : > { %7267 = vmatmul.mubr.bf16.gmra.mrb[16].mxu0 %v2855_v15 }
 0x27e   : > { %7270 = vmatprep.mubr.bf16.mxu0 %v2856_v16 }
 0x285   : > { %7271 = vmatmul.mubr.bf16.gmra.mrb[20].mxu0 %v2857_v28 }
 0x286   : > { %7274 = vmatprep.mubr.bf16.mxu0 %v2858_v32 }
 0x28d   : > { %7275 = vmatmul.mubr.bf16.gmra.mrb[24].mxu0 %v2859_v29 }
 0x28e   : > { %7278 = vmatprep.mubr.bf16.mxu0 %v9235_v58  ;;  %v9290_v58 = vld [vmem:[%s9706_s2] ss:$0 sm:$0xff] }
 0x295   : > { %7279 = vmatmul.mubr.bf16.gmra.mrb[28].mxu0 %v2861_v60 }
 0x330   : > { %v7252_v4 = vpop.f32.mrb[0].mxu0 }
 0x331   : > { %v7714_v10 = vadd.f32 %v7252_v4, %v9290_v58  ;;  %v2961_v12 = vpop.f32.mrb[1].mxu0 }
 0x332   : > { %v7715_v48 = vadd.f32 %v9290_v58, %v2961_v12  ;;  %v7253_v17 = vpop.f32.mrb[2].mxu0 }
 0x333   : > { %v3122_v13 = vmax.f32 %v7714_v10, 0.0  ;;  %v7716_v59 = vadd.f32 %v7253_v17, %v9290_v58  ;;  %v2964_v30 = vpop.f32.mrb[3].mxu0 }
 0x334   : > { %v3120_v45 = vmax.f32 %v7715_v48, 0.0  ;;  %v7717_v1 = vadd.f32 %v9290_v58, %v2964_v30 }
 0x335   : > { %3154 = vst [vmem:[#allocation2 + $0x31] sm:$0xff] %v3122_v13  ;;  %v3123_v9 = vmax.f32 %v7716_v59, 0.0 }
 0x336   : > { %3152 = vst [vmem:[#allocation2 + $0x19] sm:$0xff] %v3120_v45  ;;  %v3121_v63 = vmax.f32 %v7717_v1, 0.0 }
 0x337   : > { %3155 = vst [vmem:[#allocation2 + $0x39] sm:$0xff] %v3123_v9  ;;  %v9296_v3 = vpack.c.bf16 %v3123_v9, %v3122_v13  ;;  %v8428_v13 = vld [vmem:[#allocation3 + $0x58] sm:$0xff]  }
 0x338   : > { %3153 = vst [vmem:[#allocation2 + $0x21] sm:$0xff] %v3121_v63  ;;  %v7256_v42 = vpop.f32.mrb[4].mxu0  ;;  %v9298_v46 = vpack.c.bf16 %v3121_v63, %v3120_v45 }
 0x339   : > { %v7718_v53 = vadd.f32 %v7256_v42, %v9290_v58  ;;  %v2977_v54 = vpop.f32.mrb[5].mxu0 }
 0x33a   : > { %v7719_v61 = vadd.f32 %v9290_v58, %v2977_v54  ;;  %v7257_v62 = vpop.f32.mrb[6].mxu0 }
 0x33b   : > { %v3126_v5 = vmax.f32 %v7718_v53, 0.0  ;;  %v7720_v6 = vadd.f32 %v7257_v62, %v9290_v58  ;;  %v2980_v14 = vpop.f32.mrb[7].mxu0 }
 0x33c   : > { %v3124_v19 = vmax.f32 %v7719_v61, 0.0  ;;  %v7721_v20 = vadd.f32 %v9290_v58, %v2980_v14  ;;  %v3227_v16 = vld [vmem:[#allocation2 + $0x30] sm:$0xff] }
 0x33d   : > { %3158 = vst [vmem:[#allocation2 + $0x61] sm:$0xff] %v3126_v5  ;;  %v3127_v25 = vmax.f32 %v7720_v6, 0.0  ;;  %v3225_v37 = vld [vmem:[#allocation2 + $0x18] sm:$0xff] }
 0x33e   : > { %3156 = vst [vmem:[#allocation2 + $0x49] sm:$0xff] %v3124_v19  ;;  %v3125_v26 = vmax.f32 %v7721_v20, 0.0  ;;  %v3228_v31 = vld [vmem:[#allocation2 + $0x38] sm:$0xff] }
 0x33f   : > { %3159 = vst [vmem:[#allocation2 + $0x69] sm:$0xff] %v3127_v25  ;;  %v3226_v39 = vld [vmem:[#allocation2 + $0x20] sm:$0xff]  ;;  %v9304_v57 = vpack.c.bf16 %v3127_v25, %v3126_v5  ;;  %v9311_v28 = vpack.c.bf16 %v3228_v31, %v3227_v16  ;;  %v8429_v5 = vld [vmem:[#allocation3 + $0x60] sm:$0xff]  }
 0x340   : > { %3157 = vst [vmem:[#allocation2 + $0x51] sm:$0xff] %v3125_v26  ;;  %v7260_v7 = vpop.f32.mrb[8].mxu0  ;;  %v9306_v15 = vpack.c.bf16 %v3226_v39, %v3225_v37  ;;  %v9308_v22 = vpack.c.bf16 %v3125_v26, %v3124_v19 }
 0x341   : > { %v7722_v23 = vadd.f32 %v7260_v7, %v9290_v58  ;;  %v2993_v24 = vpop.f32.mrb[9].mxu0  ;;  %v8430_v7 = vld [vmem:[#allocation3 + $0x68] sm:$0xff]  }
 0x342   : > { %v7723_v32 = vadd.f32 %v9290_v58, %v2993_v24  ;;  %v7261_v38 = vpop.f32.mrb[10].mxu0  ;;  %7299 = vmatmul.mubr.bf16.vlgmr.msra.gmra.mrb[0].mxu1 %v9306_v15 }
 0x343   : > { %v3130_v27 = vmax.f32 %v7722_v23, 0.0  ;;  %v7724_v29 = vadd.f32 %v7261_v38, %v9290_v58  ;;  %v2996_v2 = vpop.f32.mrb[11].mxu0  ;;  %7302 = vmatprep.mubr.bf16.mxu1 %v9311_v28  ;;  %7331 = vmatpush3.bf16.msra.mxu1 %v8425_v51 }
 0x344   : > { %v3128_v21 = vmax.f32 %v7723_v32, 0.0  ;;  %v7725_v60 = vadd.f32 %v9290_v58, %v2996_v2  ;;  %7332 = vmatprep.subr.bf16.mxu1 %v8426_v18  ;;  %v3231_v17 = vld [vmem:[#allocation2 + $0x60] sm:$0xff] }
 0x345   : > { %3162 = vst [vmem:[#allocation2 + $0x91] sm:$0xff] %v3130_v27  ;;  %v3131_v0 = vmax.f32 %v7724_v29, 0.0  ;;  %v3229_v4 = vld [vmem:[#allocation2 + $0x48] sm:$0xff] }
 0x346   : > { %3160 = vst [vmem:[#allocation2 + $0x79] sm:$0xff] %v3128_v21  ;;  %v9318_v8 = vmax.f32 %v7725_v60, 0.0  ;;  %v3232_v11 = vld [vmem:[#allocation2 + $0x68] sm:$0xff] }
 0x347   : > { %3163 = vst [vmem:[#allocation2 + $0x99] sm:$0xff] %v3131_v0  ;;  %v3230_v10 = vld [vmem:[#allocation2 + $0x50] sm:$0xff]  ;;  %7333 = vmatpush3.bf16.msra.mxu1 %v8426_v18  ;;  %v9320_v12 = vpack.c.bf16 %v3131_v0, %v3130_v27  ;;  %v9329_v1 = vpack.c.bf16 %v3232_v11, %v3231_v17 }
 0x348   : > { %3161 = vst [vmem:[#allocation2 + $0x81] sm:$0xff] %v9318_v8  ;;  %v7264_v51 = vpop.f32.mrb[12].mxu0  ;;  %v9323_v48 = vpack.c.bf16 %v3230_v10, %v3229_v4  ;;  %7334 = vmatprep.subr.bf16.mxu1 %v8427_v56  ;;  %v9326_v59 = vpack.c.bf16 %v9318_v8, %v3128_v21 }
 0x349   : > { %v7726_v30 = vadd.f32 %v7264_v51, %v9290_v58  ;;  %v3009_v45 = vpop.f32.mrb[13].mxu0 }
 0x34a   : > { %v7727_v9 = vadd.f32 %v9290_v58, %v3009_v45  ;;  %v7265_v63 = vpop.f32.mrb[14].mxu0  ;;  %7303 = vmatmul.mubr.bf16.gmra.mrb[4].mxu1 %v9323_v48 }
 0x34b   : > { %v3134_v42 = vmax.f32 %v7726_v30, 0.0  ;;  %v7728_v53 = vadd.f32 %v7265_v63, %v9290_v58  ;;  %v3012_v54 = vpop.f32.mrb[15].mxu0  ;;  %7306 = vmatprep.mubr.bf16.mxu1 %v9329_v1  ;;  %7335 = vmatpush3.bf16.msra.mxu1 %v8427_v56  ;;  %v8431_v56 = vld [vmem:[#allocation3 + $0x70] sm:$0xff]  }
 0x34c   : > { %v3132_v61 = vmax.f32 %v7727_v9, 0.0  ;;  %v7729_v62 = vadd.f32 %v9290_v58, %v3012_v54  ;;  %7336 = vmatprep.subr.bf16.mxu1 %v8428_v13  ;;  %v3235_v39 = vld [vmem:[#allocation2 + $0x90] sm:$0xff]  ;;  %v8432_v9 = vld [vmem:[#allocation3 + $0x78] sm:$0xff]  }
 0x34d   : > { %3166 = vst [vmem:[#allocation2 + $0xc1] sm:$0xff] %v3134_v42  ;;  %v9336_v6 = vmax.f32 %v7728_v53, 0.0  ;;  %v3233_v20 = vld [vmem:[#allocation2 + $0x78] sm:$0xff] }
 0x34e   : > { %3164 = vst [vmem:[#allocation2 + $0xa9] sm:$0xff] %v3132_v61  ;;  %v3133_v14 = vmax.f32 %v7729_v62, 0.0  ;;  %v3236_v19 = vld [vmem:[#allocation2 + $0x98] sm:$0xff] }
 0x34f   : > { %3167 = vst [vmem:[#allocation2 + $0xc9] sm:$0xff] %v9336_v6  ;;  %v3234_v25 = vld [vmem:[#allocation2 + $0x80] sm:$0xff]  ;;  %7337 = vmatpush3.bf16.msra.mxu1 %v8428_v13  ;;  %v9340_v26 = vpack.c.bf16 %v9336_v6, %v3134_v42  ;;  %v9347_v24 = vpack.c.bf16 %v3236_v19, %v3235_v39 }
 0x350   : > { %3165 = vst [vmem:[#allocation2 + $0xb1] sm:$0xff] %v3133_v14  ;;  %v7268_v31 = vpop.f32.mrb[16].mxu0  ;;  %v9342_v37 = vpack.c.bf16 %v3234_v25, %v3233_v20  ;;  %7338 = vmatprep.subr.bf16.mxu1 %v8429_v5  ;;  %v9344_v16 = vpack.c.bf16 %v3133_v14, %v3132_v61 }
 0x351   : > { %v7730_v18 = vadd.f32 %v7268_v31, %v9290_v58  ;;  %v3025_v23 = vpop.f32.mrb[17].mxu0  ;;  %v9368_v31 = vld [vmem:[#allocation3 + $0x80] sm:$0xff]  }
 0x352   : > { %v7731_v32 = vadd.f32 %v9290_v58, %v3025_v23  ;;  %v7269_v38 = vpop.f32.mrb[18].mxu0  ;;  %7307 = vmatmul.mubr.bf16.gmra.mrb[8].mxu1 %v9342_v37 }
 0x353   : > { %v3138_v27 = vmax.f32 %v7730_v18, 0.0  ;;  %v7732_v29 = vadd.f32 %v7269_v38, %v9290_v58  ;;  %v3028_v2 = vpop.f32.mrb[19].mxu0  ;;  %7310 = vmatprep.mubr.bf16.mxu1 %v9347_v24  ;;  %7339 = vmatpush3.bf16.msra.mxu1 %v8429_v5 }
 0x354   : > { %v3136_v21 = vmax.f32 %v7731_v32, 0.0  ;;  %v7733_v60 = vadd.f32 %v9290_v58, %v3028_v2  ;;  %7340 = vmatprep.subr.bf16.mxu1 %v8430_v7  ;;  %v3239_v45 = vld [vmem:[#allocation2 + $0xc0] sm:$0xff] }
 0x355   : > { %3170 = vst [vmem:[#allocation2 + $0xf1] sm:$0xff] %v3138_v27  ;;  %v3139_v0 = vmax.f32 %v7732_v29, 0.0  ;;  %v3237_v10 = vld [vmem:[#allocation2 + $0xa8] sm:$0xff] }
 0x356   : > { %3168 = vst [vmem:[#allocation2 + $0xd9] sm:$0xff] %v3136_v21  ;;  %v3137_v11 = vmax.f32 %v7733_v60, 0.0  ;;  %v3240_v4 = vld [vmem:[#allocation2 + $0xc8] sm:$0xff] }
 0x357   : > { %3171 = vst [vmem:[#allocation2 + $0xf9] sm:$0xff] %v3139_v0  ;;  %v3238_v51 = vld [vmem:[#allocation2 + $0xb0] sm:$0xff]  ;;  %7341 = vmatpush3.bf16.msra.mxu1 %v8430_v7  ;;  %v9354_v17 = vpack.c.bf16 %v3139_v0, %v3138_v27  ;;  %v9361_v54 = vpack.c.bf16 %v3240_v4, %v3239_v45 }
 0x358   : > { %3169 = vst [vmem:[#allocation2 + $0xe1] sm:$0xff] %v3137_v11  ;;  %v7272_v13 = vpop.f32.mrb[20].mxu0  ;;  %v9356_v30 = vpack.c.bf16 %v3238_v51, %v3237_v10  ;;  %7342 = vmatprep.subr.bf16.mxu1 %v8431_v56  ;;  %v9358_v63 = vpack.c.bf16 %v3137_v11, %v3136_v21 }
 0x359   : > { %v7734_v42 = vadd.f32 %v7272_v13, %v9290_v58  ;;  %v3041_v53 = vpop.f32.mrb[21].mxu0 }
 0x35a   : > { %v7735_v61 = vadd.f32 %v9290_v58, %v3041_v53  ;;  %v7273_v62 = vpop.f32.mrb[22].mxu0  ;;  %7311 = vmatmul.mubr.bf16.gmra.mrb[12].mxu1 %v9356_v30 }
 0x35b   : > { %v3142_v5 = vmax.f32 %v7734_v42, 0.0  ;;  %v7736_v14 = vadd.f32 %v7273_v62, %v9290_v58  ;;  %v3044_v19 = vpop.f32.mrb[23].mxu0  ;;  %7314 = vmatprep.mubr.bf16.mxu1 %v9361_v54  ;;  %7343 = vmatpush3.bf16.msra.mxu1 %v8431_v56 }
 0x35c   : > { %v3140_v20 = vmax.f32 %v7735_v61, 0.0  ;;  %v7737_v25 = vadd.f32 %v9290_v58, %v3044_v19  ;;  %7344 = vmatprep.subr.bf16.mxu1 %v8432_v9  ;;  %v3243_v2 = vld [vmem:[#allocation2 + $0xf0] sm:$0xff] }
 0x35d   : > { %3174 = vst [vmem:[#allocation2 + $0x121] sm:$0xff] %v3142_v5  ;;  %v3143_v39 = vmax.f32 %v7736_v14, 0.0  ;;  %v3241_v23 = vld [vmem:[#allocation2 + $0xd8] sm:$0xff] }
 0x35e   : > { %3172 = vst [vmem:[#allocation2 + $0x109] sm:$0xff] %v3140_v20  ;;  %v3141_v7 = vmax.f32 %v7737_v25, 0.0  ;;  %v3244_v18 = vld [vmem:[#allocation2 + $0xf8] sm:$0xff] }
 0x35f   : > { %3175 = vst [vmem:[#allocation2 + $0x129] sm:$0xff] %v3143_v39  ;;  %v3242_v32 = vld [vmem:[#allocation2 + $0xe0] sm:$0xff]  ;;  %7345 = vmatpush3.bf16.msra.mxu1 %v8432_v9  ;;  %v9370_v38 = vpack.c.bf16 %v3143_v39, %v3142_v5  ;;  %v9378_v0 = vpack.c.bf16 %v3244_v18, %v3243_v2 }
 0x360   : > { %3173 = vst [vmem:[#allocation2 + $0x111] sm:$0xff] %v3141_v7  ;;  %v7276_v27 = vpop.f32.mrb[24].mxu0  ;;  %v9372_v29 = vpack.c.bf16 %v3242_v32, %v3241_v23  ;;  %7378 = vmatprep.subr.bf16.mxu1 %v9368_v31  ;;  %v9375_v21 = vpack.c.bf16 %v3141_v7, %v3140_v20 }
 0x361   : > { %v7738_v60 = vadd.f32 %v7276_v27, %v9290_v58  ;;  %v3057_v56 = vpop.f32.mrb[25].mxu0 }
 0x362   : > { %v7739_v11 = vadd.f32 %v9290_v58, %v3057_v56  ;;  %v7277_v4 = vpop.f32.mrb[26].mxu0  ;;  %7315 = vmatmul.mubr.bf16.gmra.mrb[16].mxu1 %v9372_v29 }
 0x363   : > { %v3146_v10 = vmax.f32 %v7738_v60, 0.0  ;;  %v7740_v51 = vadd.f32 %v7277_v4, %v9290_v58  ;;  %v3060_v13 = vpop.f32.mrb[27].mxu0  ;;  %7318 = vmatprep.mubr.bf16.mxu1 %v9378_v0 }
 0x364   : > { %v3144_v45 = vmax.f32 %v7739_v11, 0.0  ;;  %v7741_v9 = vadd.f32 %v9290_v58, %v3060_v13  ;;  %v3247_v25 = vld [vmem:[#allocation2 + $0x120] sm:$0xff] }
 0x365   : > { %3178 = vst [vmem:[#allocation2 + $0x151] sm:$0xff] %v3146_v10  ;;  %v3147_v42 = vmax.f32 %v7740_v51, 0.0  ;;  %v3245_v62 = vld [vmem:[#allocation2 + $0x108] sm:$0xff] }
 0x366   : > { %3176 = vst [vmem:[#allocation2 + $0x139] sm:$0xff] %v3144_v45  ;;  %v3145_v53 = vmax.f32 %v7741_v9, 0.0  ;;  %v3248_v61 = vld [vmem:[#allocation2 + $0x128] sm:$0xff] }
 0x367   : > { %3179 = vst [vmem:[#allocation2 + $0x159] sm:$0xff] %v3147_v42  ;;  %v3246_v5 = vld [vmem:[#allocation2 + $0x110] sm:$0xff]  ;;  %v9385_v14 = vpack.c.bf16 %v3147_v42, %v3146_v10  ;;  %v9392_v23 = vpack.c.bf16 %v3248_v61, %v3247_v25 }
 0x368   : > { %3177 = vst [vmem:[#allocation2 + $0x141] sm:$0xff] %v3145_v53  ;;  %v7280_v19 = vpop.f32.mrb[28].mxu0  ;;  %v9387_v20 = vpack.c.bf16 %v3246_v5, %v3245_v62  ;;  %v9389_v39 = vpack.c.bf16 %v3145_v53, %v3144_v45 }
 0x369   : > { %v7742_v7 = vadd.f32 %v7280_v19, %v9290_v58  ;;  %v3073_v18 = vpop.f32.mrb[29].mxu0  ;;  %v3529_v19 = vld [vmem:[#allocation2 + $0x9] sm:$0xff] }
 0x36a   : > { %v7743_v32 = vadd.f32 %v9290_v58, %v3073_v18  ;;  %v7281_v27 = vpop.f32.mrb[30].mxu0  ;;  %7319 = vmatmul.mubr.bf16.gmra.mrb[20].mxu1 %v9387_v20 }
 0x36b   : > { %v3150_v2 = vmax.f32 %v7742_v7, 0.0  ;;  %v7744_v60 = vadd.f32 %v7281_v27, %v9290_v58  ;;  %v3076_v56 = vpop.f32.mrb[31].mxu0  ;;  %7322 = vmatprep.mubr.bf16.mxu1 %v9392_v23  ;;  %v8434_v27 = vld [vmem:[#allocation3 + $0x88] sm:$0xff]  }
 0x36c   : > { %v3148_v11 = vmax.f32 %v7743_v32, 0.0  ;;  %v7745_v4 = vadd.f32 %v9290_v58, %v3076_v56  ;;  %v3251_v61 = vld [vmem:[#allocation2 + $0x150] sm:$0xff]  ;;  %v3528_v58 = vld [vmem:[#allocation2 + $0x1] sm:$0xff] }
 0x36d   : > { %3182 = vst [vmem:[#allocation2 + $0x181] sm:$0xff] %v3150_v2  ;;  %v3151_v10 = vmax.f32 %v7744_v60, 0.0  ;;  %v3249_v45 = vld [vmem:[#allocation2 + $0x138] sm:$0xff]  ;;  %v3560_v18 = vpack.c.bf16 %v3529_v19, %v3528_v58  ;;  %v8436_v60 = vld [vmem:[#allocation3 + $0x98] sm:$0xff]   ;;  %v8437_v56 = vld [vmem:[#allocation3 + $0xa0] sm:$0xff]  }
 0x36e   : > { %3180 = vst [vmem:[#allocation2 + $0x169] sm:$0xff] %v3148_v11  ;;  %v3149_v51 = vmax.f32 %v7745_v4, 0.0  ;;  %v3252_v13 = vld [vmem:[#allocation2 + $0x158] sm:$0xff]  ;;  %v3842_v19 = vld [vmem:[#allocation2 + $0x62] sm:$0xff] }
 0x36f   : > { %3183 = vst [vmem:[#allocation2 + $0x189] sm:$0xff] %v3151_v10  ;;  %v3250_v9 = vld [vmem:[#allocation2 + $0x140] sm:$0xff]  ;;  %v9399_v42 = vpack.c.bf16 %v3151_v10, %v3150_v2  ;;  %v9405_v5 = vpack.c.bf16 %v3252_v13, %v3251_v61  ;;  %v3838_v4 = vld [vmem:[#allocation2 + $0x32] sm:$0xff]  ;;  %v3840_v61 = vld [vmem:[#allocation2 + $0x4a] sm:$0xff] }
 0x370   : > { %3181 = vst [vmem:[#allocation2 + $0x171] sm:$0xff] %v3149_v51  ;;  %v9401_v53 = vpack.c.bf16 %v3250_v9, %v3249_v45  ;;  %v9403_v62 = vpack.c.bf16 %v3149_v51, %v3148_v11  ;;  %v8435_v2 = vld [vmem:[#allocation3 + $0x90] sm:$0xff]   ;;  %v8438_v11 = vld [vmem:[#allocation3 + $0xa8] sm:$0xff]  }
 0x371   : > { %v3839_v10 = vld [vmem:[#allocation2 + $0x3a] sm:$0xff]  ;;  %v3841_v58 = vld [vmem:[#allocation2 + $0x52] sm:$0xff] }
 0x372   : > { %7323 = vmatmul.mubr.bf16.gmra.mrb[24].mxu1 %v9401_v53  ;;  %v8442_v13 = vld [vmem:[#allocation3 + $0xc8] sm:$0xff]   ;;  %v9430_v45 = vpack.c.bf16 %v3839_v10, %v3838_v4  ;;  %v8443_v9 = vld [vmem:[#allocation3 + $0xd0] sm:$0xff]   ;;  %v3851_v4 = vld [vmem:[#allocation2 + $0xca] sm:$0xff] }
 0x373   : > { %7326 = vmatprep.mubr.bf16.mxu1 %v9405_v5 }
 0x375   : > { %v3253_v25 = vld [vmem:[#allocation2 + $0x168] sm:$0xff] }
 0x377   : > { %v3254_v7 = vld [vmem:[#allocation2 + $0x170] sm:$0xff] }
 0x378   : > { %v9409_v32 = vpack.c.bf16 %v3254_v7, %v3253_v25  ;;  %v3843_v25 = vld [vmem:[#allocation2 + $0x6a] sm:$0xff]  ;;  %v9434_v7 = vpack.c.bf16 %v3841_v58, %v3840_v61  ;;  %v3852_v58 = vld [vmem:[#allocation2 + $0xda] sm:$0xff] }
 0x379   : > { %v8449_v61 = vld [vmem:[#allocation3 + $0x100] sm:$0xff]  }
 0x37a   : > { %7327 = vmatmul.mubr.bf16.gmra.mrb[28].mxu1 %v9409_v32 }
 0x37b   : > { %7346 = vmatprep.mubr.bf16.mxu1 %v3560_v18  ;;  %v8444_v18 = vld [vmem:[#allocation3 + $0xd8] sm:$0xff]  }
 0x382   : > { %7347 = vmatmul.mubr.bf16.vlgmr.msra.gmra.mrb[0].mxu1 %v9298_v46  ;;  %v8440_v46 = vld [vmem:[#allocation3 + $0xb8] sm:$0xff]  }
 0x383   : > { %7350 = vmatprep.mubr.bf16.mxu1 %v9296_v3  ;;  %7379 = vmatpush3.bf16.msra.mxu1 %v9368_v31  ;;  %v8439_v3 = vld [vmem:[#allocation3 + $0xb0] sm:$0xff]  }
 0x384   : > { %7380 = vmatprep.subr.bf16.mxu1 %v8434_v27  ;;  %v3837_v31 = vld [vmem:[#allocation2 + $0x22] sm:$0xff] }
 0x387   : > { %7381 = vmatpush3.bf16.msra.mxu1 %v8434_v27  ;;  %v9436_v27 = vpack.c.bf16 %v3843_v25, %v3842_v19  ;;  %v3853_v19 = vld [vmem:[#allocation2 + $0xe2] sm:$0xff]  ;;  %v3854_v25 = vld [vmem:[#allocation2 + $0xf2] sm:$0xff] }
 0x388   : > { %7382 = vmatprep.subr.bf16.mxu1 %v8435_v2 }
 0x38a   : > { %7351 = vmatmul.mubr.bf16.gmra.mrb[4].mxu1 %v9308_v22  ;;  %v3834_v22 = vld [vmem:[#allocation2 + $0x2] sm:$0xff] }
 0x38b   : > { %7354 = vmatprep.mubr.bf16.mxu1 %v9304_v57  ;;  %7383 = vmatpush3.bf16.msra.mxu1 %v8435_v2  ;;  %v8441_v57 = vld [vmem:[#allocation3 + $0xc0] sm:$0xff]  }
 0x38c   : > { %7384 = vmatprep.subr.bf16.mxu1 %v8436_v60  ;;  %v8445_v2 = vld [vmem:[#allocation3 + $0xe0] sm:$0xff]  }
 0x38f   : > { %7385 = vmatpush3.bf16.msra.mxu1 %v8436_v60  ;;  %v3844_v60 = vld [vmem:[#allocation2 + $0x7a] sm:$0xff] }
 0x390   : > { %7386 = vmatprep.subr.bf16.mxu1 %v8437_v56 }
 0x392   : > { %7355 = vmatmul.mubr.bf16.gmra.mrb[8].mxu1 %v9326_v59 }
 0x393   : > { %7358 = vmatprep.mubr.bf16.mxu1 %v9320_v12  ;;  %7387 = vmatpush3.bf16.msra.mxu1 %v8437_v56  ;;  %v3835_v12 = vld [vmem:[#allocation2 + $0xa] sm:$0xff]  ;;  %v3845_v56 = vld [vmem:[#allocation2 + $0x82] sm:$0xff] }
 0x394   : > { %7388 = vmatprep.subr.bf16.mxu1 %v8438_v11  ;;  %v3866_v59 = vpack.c.bf16 %v3835_v12, %v3834_v22  ;;  %v8447_v12 = vld [vmem:[#allocation3 + $0xf0] sm:$0xff]  }
 0x397   : > { %7389 = vmatpush3.bf16.msra.mxu1 %v8438_v11  ;;  %v3846_v11 = vld [vmem:[#allocation2 + $0x92] sm:$0xff] }
 0x398   : > { %7390 = vmatprep.subr.bf16.mxu1 %v8439_v3 }
 0x39a   : > { %7359 = vmatmul.mubr.bf16.gmra.mrb[12].mxu1 %v9344_v16 }
 0x39b   : > { %7362 = vmatprep.mubr.bf16.mxu1 %v9340_v26  ;;  %7391 = vmatpush3.bf16.msra.mxu1 %v8439_v3  ;;  %v3836_v26 = vld [vmem:[#allocation2 + $0x1a] sm:$0xff] }
 0x39c   : > { %7392 = vmatprep.subr.bf16.mxu1 %v8440_v46  ;;  %v9428_v51 = vpack.c.bf16 %v3837_v31, %v3836_v26  ;;  %v3847_v3 = vld [vmem:[#allocation2 + $0x9a] sm:$0xff]  ;;  %v3849_v26 = vld [vmem:[#allocation2 + $0xb2] sm:$0xff]  ;;  %v3850_v31 = vld [vmem:[#allocation2 + $0xc2] sm:$0xff] }
 0x39d   : > { %v9442_v22 = vpack.c.bf16 %v3847_v3, %v3846_v11  ;;  %v3857_v11 = vld [vmem:[#allocation2 + $0x112] sm:$0xff]  ;;  %v3858_v3 = vld [vmem:[#allocation2 + $0x122] sm:$0xff] }
 0x39f   : > { %7393 = vmatpush3.bf16.msra.mxu1 %v8440_v46  ;;  %v9440_v46 = vpack.c.bf16 %v3845_v56, %v3844_v60  ;;  %v3856_v56 = vld [vmem:[#allocation2 + $0x10a] sm:$0xff] }
 0x3a0   : > { %7426 = vmatprep.subr.bf16.mxu1 %v8441_v57 }
 0x3a2   : > { %7363 = vmatmul.mubr.bf16.gmra.mrb[16].mxu1 %v9358_v63 }
 0x3a3   : > { %7366 = vmatprep.mubr.bf16.mxu1 %v9354_v17 }
 0x3aa   : > { %7367 = vmatmul.mubr.bf16.gmra.mrb[20].mxu1 %v9375_v21 }
 0x3ab   : > { %7370 = vmatprep.mubr.bf16.mxu1 %v9370_v38 }
 0x3b2   : > { %7371 = vmatmul.mubr.bf16.gmra.mrb[24].mxu1 %v9389_v39 }
 0x3b3   : > { %7374 = vmatprep.mubr.bf16.mxu1 %v9385_v14 }
 0x3ba   : > { %7375 = vmatmul.mubr.bf16.gmra.mrb[28].mxu1 %v9403_v62 }
 0x3bb   : > { %7394 = vmatprep.mubr.bf16.mxu1 %v3866_v59  ;;  %v3848_v59 = vld [vmem:[#allocation2 + $0xaa] sm:$0xff] }
 0x3bc   : > { %v9446_v10 = vpack.c.bf16 %v3849_v26, %v3848_v59  ;;  %v3860_v26 = vld [vmem:[#allocation2 + $0x13a] sm:$0xff] }
 0x3c2   : > { %7395 = vmatmul.mubr.bf16.vlgmr.msra.gmra.mrb[0].mxu1 %v9428_v51 }
 0x3c3   : > { %7398 = vmatprep.mubr.bf16.mxu1 %v9430_v45  ;;  %7427 = vmatpush3.bf16.msra.mxu1 %v8441_v57  ;;  %v8446_v57 = vld [vmem:[#allocation3 + $0xe8] sm:$0xff]  }
 0x3c4   : > { %7428 = vmatprep.subr.bf16.mxu1 %v8442_v13 }
 0x3c7   : > { %7429 = vmatpush3.bf16.msra.mxu1 %v8442_v13  ;;  %v8448_v13 = vld [vmem:[#allocation3 + $0xf8] sm:$0xff]  }
 0x3c8   : > { %7430 = vmatprep.subr.bf16.mxu1 %v8443_v9 }
 0x3ca   : > { %7399 = vmatmul.mubr.bf16.gmra.mrb[4].mxu1 %v9434_v7 }
 0x3cb   : > { %7402 = vmatprep.mubr.bf16.mxu1 %v9436_v27  ;;  %7431 = vmatpush3.bf16.msra.mxu1 %v8443_v9  ;;  %v9448_v9 = vpack.c.bf16 %v3851_v4, %v3850_v31  ;;  %v3861_v31 = vld [vmem:[#allocation2 + $0x142] sm:$0xff]  ;;  %v3862_v4 = vld [vmem:[#allocation2 + $0x152] sm:$0xff] }
 0x3cc   : > { %7432 = vmatprep.subr.bf16.mxu1 %v8444_v18 }
 0x3cf   : > { %7433 = vmatpush3.bf16.msra.mxu1 %v8444_v18  ;;  %v3855_v18 = vld [vmem:[#allocation2 + $0xfa] sm:$0xff] }
 0x3d0   : > { %7434 = vmatprep.subr.bf16.mxu1 %v8445_v2  ;;  %v9454_v60 = vpack.c.bf16 %v3855_v18, %v3854_v25  ;;  %v3864_v25 = vld [vmem:[#allocation2 + $0x16a] sm:$0xff]  ;;  %v3865_v18 = vld [vmem:[#allocation2 + $0x172] sm:$0xff] }
 0x3d2   : > { %7403 = vmatmul.mubr.bf16.gmra.mrb[8].mxu1 %v9440_v46 }
 0x3d3   : > { %7406 = vmatprep.mubr.bf16.mxu1 %v9442_v22  ;;  %7435 = vmatpush3.bf16.msra.mxu1 %v8445_v2  ;;  %v9452_v2 = vpack.c.bf16 %v3853_v19, %v3852_v58  ;;  %v9464_v58 = vpack.c.bf16 %v3861_v31, %v3860_v26  ;;  %v8453_v26 = vld [vmem:[#allocation3 + $0x120] sm:$0xff]  }
 0x3d4   : > { %7436 = vmatprep.subr.bf16.mxu1 %v8446_v57  ;;  %v4448_v31 = vld [vmem:[#allocation2 + $0x31] sm:$0xff] }
 0x3d7   : > { %7437 = vmatpush3.bf16.msra.mxu1 %v8446_v57  ;;  %v3859_v57 = vld [vmem:[#allocation2 + $0x12a] sm:$0xff] }
 0x3d8   : > { %7438 = vmatprep.subr.bf16.mxu1 %v8447_v12  ;;  %v9460_v59 = vpack.c.bf16 %v3859_v57, %v3858_v3  ;;  %v8451_v3 = vld [vmem:[#allocation3 + $0x110] sm:$0xff]   ;;  %v8452_v57 = vld [vmem:[#allocation3 + $0x118] sm:$0xff]  }
 0x3da   : > { %7407 = vmatmul.mubr.bf16.gmra.mrb[12].mxu1 %v9446_v10 }
 0x3db   : > { %7410 = vmatprep.mubr.bf16.mxu1 %v9448_v9  ;;  %7439 = vmatpush3.bf16.msra.mxu1 %v8447_v12  ;;  %v9458_v12 = vpack.c.bf16 %v3857_v11, %v3856_v56  ;;  %v9470_v56 = vpack.c.bf16 %v3865_v18, %v3864_v25  ;;  %v8450_v11 = vld [vmem:[#allocation3 + $0x108] sm:$0xff]   ;;  %v4452_v18 = vld [vmem:[#allocation2 + $0x61] sm:$0xff] }
 0x3dc   : > { %7440 = vmatprep.subr.bf16.mxu1 %v8448_v13  ;;  %v9497_v25 = vld [vmem:[#allocation2 + $0x79] sm:$0xff] }
 0x3df   : > { %7441 = vmatpush3.bf16.msra.mxu1 %v8448_v13  ;;  %v3863_v13 = vld [vmem:[#allocation2 + $0x15a] sm:$0xff] }
 0x3e0   : > { %7474 = vmatprep.subr.bf16.mxu1 %v8449_v61  ;;  %v9466_v19 = vpack.c.bf16 %v3863_v13, %v3862_v4  ;;  %v8458_v4 = vld [vmem:[#allocation3 + $0x148] sm:$0xff]   ;;  %v4453_v13 = vld [vmem:[#allocation2 + $0x69] sm:$0xff] }
 0x3e2   : > { %7411 = vmatmul.mubr.bf16.gmra.mrb[16].mxu1 %v9452_v2 }
 0x3e3   : > { %7414 = vmatprep.mubr.bf16.mxu1 %v9454_v60 }
 0x3ea   : > { %7415 = vmatmul.mubr.bf16.gmra.mrb[20].mxu1 %v9458_v12 }
 0x3eb   : > { %7418 = vmatprep.mubr.bf16.mxu1 %v9460_v59 }
 0x3f2   : > { %7419 = vmatmul.mubr.bf16.gmra.mrb[24].mxu1 %v9464_v58 }
 0x3f3   : > { %7422 = vmatprep.mubr.bf16.mxu1 %v9466_v19 }
 0x3fa   : > { %7423 = vmatmul.mubr.bf16.gmra.mrb[28].mxu1 %v9470_v56 }
 0x3fb   : > { %7442 = vmatprep.mubr.bf16.mxu1 %v9306_v15  ;;  %v8454_v15 = vld [vmem:[#allocation3 + $0x128] sm:$0xff]  }
 0x402   : > { %7443 = vmatmul.mubr.bf16.vlgmr.msra.gmra.mrb[0].mxu1 %v9311_v28  ;;  %v8455_v28 = vld [vmem:[#allocation3 + $0x130] sm:$0xff]  }
 0x403   : > { %7446 = vmatprep.mubr.bf16.mxu1 %v9323_v48  ;;  %7475 = vmatpush3.bf16.msra.mxu1 %v8449_v61  ;;  %v8456_v48 = vld [vmem:[#allocation3 + $0x138] sm:$0xff]  }
 0x404   : > { %7476 = vmatprep.subr.bf16.mxu1 %v8450_v11 }
 0x407   : > { %7477 = vmatpush3.bf16.msra.mxu1 %v8450_v11  ;;  %v9499_v11 = vpack.c.bf16 %v4453_v13, %v4452_v18  ;;  %v5068_v13 = vld [vmem:[#allocation2 + $0xa8] sm:$0xff] }
 0x408   : > { %7478 = vmatprep.subr.bf16.mxu1 %v8451_v3 }
 0x40a   : > { %7447 = vmatmul.mubr.bf16.gmra.mrb[4].mxu1 %v9329_v1  ;;  %v8457_v1 = vld [vmem:[#allocation3 + $0x140] sm:$0xff]  }
 0x40b   : > { %7450 = vmatprep.mubr.bf16.mxu1 %v9342_v37  ;;  %7479 = vmatpush3.bf16.msra.mxu1 %v8451_v3  ;;  %v4171_v37 = vld [vmem:[#allocation2 + $0x188] sm:$0xff] }
 0x40c   : > { %7480 = vmatprep.subr.bf16.mxu1 %v8452_v57  ;;  %v8460_v3 = vld [vmem:[#allocation3 + $0x158] sm:$0xff]  }
 0x40f   : > { %7481 = vmatpush3.bf16.msra.mxu1 %v8452_v57  ;;  %v4482_v57 = vpack.c.bf16 %v9318_v8, %v9497_v25  ;;  %v8463_v8 = vld [vmem:[#allocation3 + $0x170] sm:$0xff]  }
 0x410   : > { %7482 = vmatprep.subr.bf16.mxu1 %v8453_v26 }
 0x412   : > { %7451 = vmatmul.mubr.bf16.gmra.mrb[8].mxu1 %v9347_v24  ;;  %v4447_v24 = vld [vmem:[#allocation2 + $0x21] sm:$0xff] }
 0x413   : > { %7454 = vmatprep.mubr.bf16.mxu1 %v9356_v30  ;;  %7483 = vmatpush3.bf16.msra.mxu1 %v8453_v26  ;;  %v4170_v30 = vld [vmem:[#allocation2 + $0x180] sm:$0xff]  ;;  %v8461_v26 = vld [vmem:[#allocation3 + $0x160] sm:$0xff]  }
 0x414   : > { %7484 = vmatprep.subr.bf16.mxu1 %v8454_v15 }
 0x417   : > { %7485 = vmatpush3.bf16.msra.mxu1 %v8454_v15  ;;  %v4457_v15 = vld [vmem:[#allocation2 + $0x99] sm:$0xff] }
 0x418   : > { %7486 = vmatprep.subr.bf16.mxu1 %v8455_v28 }
 0x41a   : > { %7455 = vmatmul.mubr.bf16.gmra.mrb[12].mxu1 %v9361_v54  ;;  %v9488_v54 = vpack.c.bf16 %v4171_v37, %v4170_v30  ;;  %v9508_v37 = vld [vmem:[#allocation2 + $0xc1] sm:$0xff] }
 0x41b   : > { %7458 = vmatprep.mubr.bf16.mxu1 %v9372_v29  ;;  %7487 = vmatpush3.bf16.msra.mxu1 %v8455_v28  ;;  %v4446_v29 = vld [vmem:[#allocation2 + $0x19] sm:$0xff]  ;;  %v4456_v28 = vld [vmem:[#allocation2 + $0x91] sm:$0xff]  ;;  %v8464_v30 = vld [vmem:[#allocation3 + $0x178] sm:$0xff]  }
 0x41c   : > { %7488 = vmatprep.subr.bf16.mxu1 %v8456_v48  ;;  %v4478_v61 = vpack.c.bf16 %v4447_v24, %v4446_v29  ;;  %v4485_v24 = vpack.c.bf16 %v9336_v6, %v9508_v37  ;;  %v8465_v29 = vld [vmem:[#allocation3 + $0x180] sm:$0xff]   ;;  %v8466_v6 = vld [vmem:[#allocation3 + $0x188] sm:$0xff]  }
 0x41f   : > { %7489 = vmatpush3.bf16.msra.mxu1 %v8456_v48  ;;  %v9504_v48 = vpack.c.bf16 %v4457_v15, %v4456_v28  ;;  %v8479_v15 = vld [vmem:[#allocation3 + $0x1f0] sm:$0xff]  }
 0x420   : > { %7522 = vmatprep.subr.bf16.mxu1 %v8457_v1  ;;  %v5073_v28 = vld [vmem:[#allocation2 + $0xe0] sm:$0xff] }
 0x422   : > { %7459 = vmatmul.mubr.bf16.gmra.mrb[16].mxu1 %v9378_v0  ;;  %v4449_v0 = vld [vmem:[#allocation2 + $0x39] sm:$0xff] }
 0x423   : > { %7462 = vmatprep.mubr.bf16.mxu1 %v9387_v20  ;;  %v4451_v20 = vld [vmem:[#allocation2 + $0x51] sm:$0xff] }
 0x42a   : > { %7463 = vmatmul.mubr.bf16.gmra.mrb[20].mxu1 %v9392_v23  ;;  %v9491_v23 = vpack.c.bf16 %v4449_v0, %v4448_v31  ;;  %v5066_v0 = vld [vmem:[#allocation2 + $0x90] sm:$0xff] }
 0x42b   : > { %7466 = vmatprep.mubr.bf16.mxu1 %v9401_v53  ;;  %v4450_v53 = vld [vmem:[#allocation2 + $0x49] sm:$0xff] }
 0x432   : > { %7467 = vmatmul.mubr.bf16.gmra.mrb[24].mxu1 %v9405_v5  ;;  %v9493_v5 = vpack.c.bf16 %v4451_v20, %v4450_v53  ;;  %v8476_v20 = vld [vmem:[#allocation3 + $0x1d8] sm:$0xff]   ;;  %v8477_v53 = vld [vmem:[#allocation3 + $0x1e0] sm:$0xff]  }
 0x433   : > { %7470 = vmatprep.mubr.bf16.mxu1 %v9409_v32  ;;  %v8459_v32 = vld [vmem:[#allocation3 + $0x150] sm:$0xff]  }
 0x43a   : > { %7471 = vmatmul.mubr.bf16.gmra.mrb[28].mxu1 %v9488_v54 }
 0x43b   : > { %7490 = vmatprep.mubr.bf16.mxu1 %v4478_v61 }
 0x442   : > { %7491 = vmatmul.mubr.bf16.vlgmr.msra.gmra.mrb[0].mxu1 %v9491_v23 }
 0x443   : > { %7494 = vmatprep.mubr.bf16.mxu1 %v9493_v5  ;;  %7523 = vmatpush3.bf16.msra.mxu1 %v8457_v1  ;;  %v8462_v1 = vld [vmem:[#allocation3 + $0x168] sm:$0xff]  }
 0x444   : > { %7524 = vmatprep.subr.bf16.mxu1 %v8458_v4 }
 0x447   : > { %7525 = vmatpush3.bf16.msra.mxu1 %v8458_v4  ;;  %v5069_v4 = vld [vmem:[#allocation2 + $0xb0] sm:$0xff] }
 0x448   : > { %7526 = vmatprep.subr.bf16.mxu1 %v8459_v32  ;;  %v5095_v18 = vpack.c.bf16 %v5069_v4, %v5068_v13  ;;  %v8488_v13 = vld [vmem:[#allocation3 + $0x238] sm:$0xff]  }
 0x44a   : > { %7495 = vmatmul.mubr.bf16.gmra.mrb[4].mxu1 %v9499_v11 }
 0x44b   : > { %7498 = vmatprep.mubr.bf16.mxu1 %v4482_v57  ;;  %7527 = vmatpush3.bf16.msra.mxu1 %v8459_v32  ;;  %v5071_v32 = vld [vmem:[#allocation2 + $0xc8] sm:$0xff]  ;;  %v8478_v57 = vld [vmem:[#allocation3 + $0x1e8] sm:$0xff]  }
 0x44c   : > { %7528 = vmatprep.subr.bf16.mxu1 %v8460_v3 }
 0x44f   : > { %7529 = vmatpush3.bf16.msra.mxu1 %v8460_v3  ;;  %v5070_v3 = vld [vmem:[#allocation2 + $0xc0] sm:$0xff] }
 0x450   : > { %7530 = vmatprep.subr.bf16.mxu1 %v8461_v26 }
 0x452   : > { %7499 = vmatmul.mubr.bf16.gmra.mrb[8].mxu1 %v9504_v48 }
 0x453   : > { %7502 = vmatprep.mubr.bf16.mxu1 %v9344_v16  ;;  %7531 = vmatpush3.bf16.msra.mxu1 %v8461_v26  ;;  %v8467_v16 = vld [vmem:[#allocation3 + $0x190] sm:$0xff]   ;;  %v5096_v26 = vpack.c.bf16 %v5071_v32, %v5070_v3  ;;  %v5380_v32 = vld [vmem:[#allocation2 + $0xf1] sm:$0xff] }
 0x454   : > { %7532 = vmatprep.subr.bf16.mxu1 %v8462_v1  ;;  %v5383_v3 = vld [vmem:[#allocation2 + $0x111] sm:$0xff] }
 0x457   : > { %7533 = vmatpush3.bf16.msra.mxu1 %v8462_v1  ;;  %v5075_v1 = vld [vmem:[#allocation2 + $0xf8] sm:$0xff] }
 0x458   : > { %7534 = vmatprep.subr.bf16.mxu1 %v8463_v8 }
 0x45a   : > { %7503 = vmatmul.mubr.bf16.gmra.mrb[12].mxu1 %v4485_v24 }
 0x45b   : > { %7506 = vmatprep.mubr.bf16.mxu1 %v9358_v63  ;;  %7535 = vmatpush3.bf16.msra.mxu1 %v8463_v8  ;;  %v8469_v63 = vld [vmem:[#allocation3 + $0x1a0] sm:$0xff]   ;;  %v5072_v8 = vld [vmem:[#allocation2 + $0xd8] sm:$0xff] }
 0x45c   : > { %7536 = vmatprep.subr.bf16.mxu1 %v8464_v30  ;;  %v5097_v24 = vpack.c.bf16 %v5073_v28, %v5072_v8  ;;  %v5389_v8 = vld [vmem:[#allocation2 + $0x159] sm:$0xff] }
 0x45f   : > { %7537 = vmatpush3.bf16.msra.mxu1 %v8464_v30  ;;  %v5074_v30 = vld [vmem:[#allocation2 + $0xf0] sm:$0xff] }
 0x460   : > { %7570 = vmatprep.subr.bf16.mxu1 %v8465_v29 }
 0x462   : > { %7507 = vmatmul.mubr.bf16.gmra.mrb[16].mxu1 %v9354_v17  ;;  %v8468_v17 = vld [vmem:[#allocation3 + $0x198] sm:$0xff]  }
 0x463   : > { %7510 = vmatprep.mubr.bf16.mxu1 %v9375_v21  ;;  %v8471_v21 = vld [vmem:[#allocation3 + $0x1b0] sm:$0xff]  }
 0x46a   : > { %7511 = vmatmul.mubr.bf16.gmra.mrb[20].mxu1 %v9370_v38  ;;  %v8470_v38 = vld [vmem:[#allocation3 + $0x1a8] sm:$0xff]  }
 0x46b   : > { %7514 = vmatprep.mubr.bf16.mxu1 %v9389_v39  ;;  %v8473_v39 = vld [vmem:[#allocation3 + $0x1c0] sm:$0xff]  }
 0x472   : > { %7515 = vmatmul.mubr.bf16.gmra.mrb[24].mxu1 %v9385_v14  ;;  %v8472_v14 = vld [vmem:[#allocation3 + $0x1b8] sm:$0xff]  }
 0x473   : > { %7518 = vmatprep.mubr.bf16.mxu1 %v9403_v62  ;;  %v4783_v62 = vld [vmem:[#allocation2 + $0x18a] sm:$0xff] }
 0x47a   : > { %7519 = vmatmul.mubr.bf16.gmra.mrb[28].mxu1 %v9399_v42  ;;  %v4782_v42 = vld [vmem:[#allocation2 + $0x182] sm:$0xff] }
 0x47b   : > { %7538 = vmatprep.mubr.bf16.mxu1 %v9428_v51  ;;  %v5059_v51 = vld [vmem:[#allocation2 + $0x38] sm:$0xff] }
 0x482   : > { %7539 = vmatmul.mubr.bf16.vlgmr.msra.gmra.mrb[0].mxu1 %v9430_v45  ;;  %v9535_v45 = vpack.c.bf16 %v4783_v62, %v4782_v42  ;;  %v5081_v42 = vld [vmem:[#allocation2 + $0x140] sm:$0xff]  ;;  %v5083_v62 = vld [vmem:[#allocation2 + $0x158] sm:$0xff] }
 0x483   : > { %7542 = vmatprep.mubr.bf16.mxu1 %v9434_v7  ;;  %7571 = vmatpush3.bf16.msra.mxu1 %v8465_v29  ;;  %v5058_v7 = vld [vmem:[#allocation2 + $0x30] sm:$0xff]  ;;  %v8480_v29 = vld [vmem:[#allocation3 + $0x1f8] sm:$0xff]  }
 0x484   : > { %7572 = vmatprep.subr.bf16.mxu1 %v8466_v6 }
 0x487   : > { %7573 = vmatpush3.bf16.msra.mxu1 %v8466_v6  ;;  %v5098_v6 = vpack.c.bf16 %v5075_v1, %v5074_v30  ;;  %v5387_v1 = vld [vmem:[#allocation2 + $0x141] sm:$0xff] }
 0x488   : > { %7574 = vmatprep.subr.bf16.mxu1 %v8467_v16 }
 0x48a   : > { %7543 = vmatmul.mubr.bf16.gmra.mrb[4].mxu1 %v9436_v27  ;;  %v5090_v27 = vpack.c.bf16 %v5059_v51, %v5058_v7  ;;  %v5080_v51 = vld [vmem:[#allocation2 + $0x138] sm:$0xff] }
 0x48b   : > { %7546 = vmatprep.mubr.bf16.mxu1 %v9440_v46  ;;  %7575 = vmatpush3.bf16.msra.mxu1 %v8467_v16  ;;  %v5061_v46 = vld [vmem:[#allocation2 + $0x50] sm:$0xff]  ;;  %v5101_v7 = vpack.c.bf16 %v5081_v42, %v5080_v51  ;;  %v5395_v42 = vld [vmem:[#allocation2 + $0x1a1] sm:$0xff] }
 0x48c   : > { %7576 = vmatprep.subr.bf16.mxu1 %v8468_v17  ;;  %v8481_v16 = vld [vmem:[#allocation3 + $0x200] sm:$0xff]  }
 0x48d   : > { %v5670_v51 = vld [vmem:[#allocation2 + $0x32] sm:$0xff] }
 0x48f   : > { %7577 = vmatpush3.bf16.msra.mxu1 %v8468_v17  ;;  %v5077_v17 = vld [vmem:[#allocation2 + $0x110] sm:$0xff] }
 0x490   : > { %7578 = vmatprep.subr.bf16.mxu1 %v8469_v63 }
 0x492   : > { %7547 = vmatmul.mubr.bf16.gmra.mrb[8].mxu1 %v9442_v22  ;;  %v5063_v22 = vld [vmem:[#allocation2 + $0x68] sm:$0xff] }
 0x493   : > { %7550 = vmatprep.mubr.bf16.mxu1 %v9446_v10  ;;  %7579 = vmatpush3.bf16.msra.mxu1 %v8469_v63  ;;  %v5060_v10 = vld [vmem:[#allocation2 + $0x48] sm:$0xff] }
 0x494   : > { %7580 = vmatprep.subr.bf16.mxu1 %v8470_v38  ;;  %v5079_v63 = vld [vmem:[#allocation2 + $0x128] sm:$0xff] }
 0x497   : > { %7581 = vmatpush3.bf16.msra.mxu1 %v8470_v38  ;;  %v5076_v38 = vld [vmem:[#allocation2 + $0x108] sm:$0xff] }
 0x498   : > { %7582 = vmatprep.subr.bf16.mxu1 %v8471_v21 }
 0x49a   : > { %7551 = vmatmul.mubr.bf16.gmra.mrb[12].mxu1 %v9448_v9  ;;  %v5091_v9 = vpack.c.bf16 %v5061_v46, %v5060_v10  ;;  %v5084_v10 = vld [vmem:[#allocation2 + $0x168] sm:$0xff] }
 0x49b   : > { %7554 = vmatprep.mubr.bf16.mxu1 %v9452_v2  ;;  %7583 = vmatpush3.bf16.msra.mxu1 %v8471_v21  ;;  %v5062_v2 = vld [vmem:[#allocation2 + $0x60] sm:$0xff]  ;;  %v5099_v21 = vpack.c.bf16 %v5077_v17, %v5076_v38  ;;  %v5393_v17 = vld [vmem:[#allocation2 + $0x189] sm:$0xff] }
 0x49c   : > { %7584 = vmatprep.subr.bf16.mxu1 %v8472_v14 }
 0x49f   : > { %7585 = vmatpush3.bf16.msra.mxu1 %v8472_v14  ;;  %v5078_v14 = vld [vmem:[#allocation2 + $0x120] sm:$0xff] }
 0x4a0   : > { %7618 = vmatprep.subr.bf16.mxu1 %v8473_v39 }
 0x4a2   : > { %7555 = vmatmul.mubr.bf16.gmra.mrb[16].mxu1 %v9454_v60  ;;  %v8474_v60 = vld [vmem:[#allocation3 + $0x1c8] sm:$0xff]  }
 0x4a3   : > { %7558 = vmatprep.mubr.bf16.mxu1 %v9458_v12  ;;  %v5092_v12 = vpack.c.bf16 %v5063_v22, %v5062_v2  ;;  %v5085_v22 = vld [vmem:[#allocation2 + $0x170] sm:$0xff]  ;;  %v8490_v2 = vld [vmem:[#allocation2] sm:$0xff] }
 0x4aa   : > { %7559 = vmatmul.mubr.bf16.gmra.mrb[20].mxu1 %v9460_v59  ;;  %v8475_v59 = vld [vmem:[#allocation3 + $0x1d0] sm:$0xff]  }
 0x4ab   : > { %7562 = vmatprep.mubr.bf16.mxu1 %v9464_v58  ;;  %v5065_v58 = vld [vmem:[#allocation2 + $0x80] sm:$0xff] }
 0x4b2   : > { %7563 = vmatmul.mubr.bf16.gmra.mrb[24].mxu1 %v9466_v19  ;;  %v5067_v19 = vld [vmem:[#allocation2 + $0x98] sm:$0xff] }
 0x4b3   : > { %7566 = vmatprep.mubr.bf16.mxu1 %v9470_v56  ;;  %v5064_v56 = vld [vmem:[#allocation2 + $0x78] sm:$0xff]  ;;  %v5094_v31 = vpack.c.bf16 %v5067_v19, %v5066_v0 }
 0x4b4   : > { %v5093_v61 = vpack.c.bf16 %v5065_v58, %v5064_v56  ;;  %v5371_v58 = vld [vmem:[#allocation2 + $0x81] sm:$0xff]  ;;  %v8486_v0 = vld [vmem:[#allocation3 + $0x228] sm:$0xff]  }
 0x4b5   : > { %v5399_v19 = vpack.c.bf16 %v5371_v58, %v9497_v25  ;;  %v8484_v56 = vld [vmem:[#allocation3 + $0x218] sm:$0xff]   ;;  %v8487_v25 = vld [vmem:[#allocation3 + $0x230] sm:$0xff]   ;;  %v5678_v58 = vld [vmem:[#allocation2 + $0x92] sm:$0xff] }
 0x4ba   : > { %7567 = vmatmul.mubr.bf16.gmra.mrb[28].mxu1 %v9535_v45 }
 0x4bb   : > { %7586 = vmatprep.mubr.bf16.mxu1 %v5090_v27  ;;  %v5082_v27 = vld [vmem:[#allocation2 + $0x150] sm:$0xff] }
 0x4bc   : > { %v5102_v46 = vpack.c.bf16 %v5083_v62, %v5082_v27 }
 0x4c2   : > { %7587 = vmatmul.mubr.bf16.vlgmr.msra.gmra.mrb[0].mxu1 %v5091_v9  ;;  %v5103_v9 = vpack.c.bf16 %v5085_v22, %v5084_v10  ;;  %v5673_v22 = vld [vmem:[#allocation2 + $0x52] sm:$0xff]  ;;  %v5674_v10 = vld [vmem:[#allocation2 + $0x62] sm:$0xff] }
 0x4c3   : > { %7590 = vmatprep.mubr.bf16.mxu1 %v5092_v12  ;;  %7619 = vmatpush3.bf16.msra.mxu1 %v8473_v39  ;;  %v5100_v39 = vpack.c.bf16 %v5079_v63, %v5078_v14  ;;  %v8482_v12 = vld [vmem:[#allocation3 + $0x208] sm:$0xff]   ;;  %v5390_v63 = vld [vmem:[#allocation2 + $0x169] sm:$0xff] }
 0x4c4   : > { %7620 = vmatprep.subr.bf16.mxu1 %v8474_v60 }
 0x4c7   : > { %7621 = vmatpush3.bf16.msra.mxu1 %v8474_v60  ;;  %v5105_v60 = vpack.c.bf16 %v8490_v2, %v8490_v2 }
 0x4c8   : > { %7622 = vmatprep.subr.bf16.mxu1 %v8475_v59 }
 0x4ca   : > { %7591 = vmatmul.mubr.bf16.gmra.mrb[4].mxu1 %v5093_v61  ;;  %v5377_v61 = vld [vmem:[#allocation2 + $0xc9] sm:$0xff] }
 0x4cb   : > { %7594 = vmatprep.mubr.bf16.mxu1 %v5094_v31  ;;  %7623 = vmatpush3.bf16.msra.mxu1 %v8475_v59  ;;  %v8483_v59 = vld [vmem:[#allocation3 + $0x210] sm:$0xff]  }
 0x4cc   : > { %7624 = vmatprep.subr.bf16.mxu1 %v8476_v20  ;;  %v5379_v31 = vld [vmem:[#allocation2 + $0xe1] sm:$0xff] }
 0x4cf   : > { %7625 = vmatpush3.bf16.msra.mxu1 %v8476_v20  ;;  %v5402_v20 = vpack.c.bf16 %v5377_v61, %v9508_v37  ;;  %v5385_v37 = vld [vmem:[#allocation2 + $0x129] sm:$0xff]  ;;  %v5681_v61 = vld [vmem:[#allocation2 + $0xb2] sm:$0xff] }
 0x4d0   : > { %7626 = vmatprep.subr.bf16.mxu1 %v8477_v53 }
 0x4d2   : > { %7595 = vmatmul.mubr.bf16.gmra.mrb[8].mxu1 %v5095_v18 }
 0x4d3   : > { %7598 = vmatprep.mubr.bf16.mxu1 %v5096_v26  ;;  %7627 = vmatpush3.bf16.msra.mxu1 %v8477_v53  ;;  %v5381_v53 = vld [vmem:[#allocation2 + $0xf9] sm:$0xff] }
 0x4d4   : > { %7628 = vmatprep.subr.bf16.mxu1 %v8478_v57  ;;  %v5404_v18 = vpack.c.bf16 %v5381_v53, %v5380_v32  ;;  %v5686_v53 = vld [vmem:[#allocation2 + $0xf2] sm:$0xff] }
 0x4d7   : > { %7629 = vmatpush3.bf16.msra.mxu1 %v8478_v57  ;;  %v5382_v57 = vld [vmem:[#allocation2 + $0x109] sm:$0xff] }
 0x4d8   : > { %7630 = vmatprep.subr.bf16.mxu1 %v8479_v15  ;;  %v5405_v26 = vpack.c.bf16 %v5383_v3, %v5382_v57  ;;  %v5690_v3 = vld [vmem:[#allocation2 + $0x122] sm:$0xff] }
 0x4da   : > { %7599 = vmatmul.mubr.bf16.gmra.mrb[12].mxu1 %v5097_v24  ;;  %v5386_v24 = vld [vmem:[#allocation2 + $0x139] sm:$0xff] }
 0x4db   : > { %7602 = vmatprep.mubr.bf16.mxu1 %v5098_v6  ;;  %7631 = vmatpush3.bf16.msra.mxu1 %v8479_v15  ;;  %v5384_v15 = vld [vmem:[#allocation2 + $0x121] sm:$0xff]  ;;  %v5407_v30 = vpack.c.bf16 %v5387_v1, %v5386_v24  ;;  %v5694_v1 = vld [vmem:[#allocation2 + $0x152] sm:$0xff] }
 0x4dc   : > { %7632 = vmatprep.subr.bf16.mxu1 %v8480_v29  ;;  %v5406_v28 = vpack.c.bf16 %v5385_v37, %v5384_v15  ;;  %v5691_v37 = vld [vmem:[#allocation2 + $0x12a] sm:$0xff]  ;;  %v5692_v15 = vld [vmem:[#allocation2 + $0x13a] sm:$0xff] }
 0x4df   : > { %7633 = vmatpush3.bf16.msra.mxu1 %v8480_v29  ;;  %v5388_v29 = vld [vmem:[#allocation2 + $0x151] sm:$0xff] }
 0x4e0   : > { %7666 = vmatprep.subr.bf16.mxu1 %v8481_v16  ;;  %v5408_v6 = vpack.c.bf16 %v5389_v8, %v5388_v29  ;;  %v5695_v8 = vld [vmem:[#allocation2 + $0x15a] sm:$0xff]  ;;  %v5696_v29 = vld [vmem:[#allocation2 + $0x16a] sm:$0xff] }
 0x4e2   : > { %7603 = vmatmul.mubr.bf16.gmra.mrb[16].mxu1 %v5099_v21  ;;  %v5392_v21 = vld [vmem:[#allocation2 + $0x181] sm:$0xff] }
 0x4e3   : > { %7606 = vmatprep.mubr.bf16.mxu1 %v5100_v39  ;;  %v5410_v14 = vpack.c.bf16 %v5393_v17, %v5392_v21  ;;  %v5394_v39 = vld [vmem:[#allocation2 + $0x199] sm:$0xff] }
 0x4e4   : > { %v5411_v62 = vpack.c.bf16 %v5395_v42, %v5394_v39  ;;  %v5700_v17 = vld [vmem:[#allocation2 + $0x19a] sm:$0xff] }
 0x4e5   : > { %v9549_v21 = vld [vmem:[%s9708_s4] ss:$0 sm:$0xff] }
 0x4e6   : > { %v3191_v39 = vadd.f32 %v9549_v21, %v8870_v33 }
 0x4ea   : > { %7607 = vmatmul.mubr.bf16.gmra.mrb[20].mxu1 %v5101_v7  ;;  %v5671_v7 = vld [vmem:[#allocation2 + $0x3a] sm:$0xff] }
 0x4eb   : > { %7610 = vmatprep.mubr.bf16.mxu1 %v5102_v46  ;;  %v5702_v27 = vpack.c.bf16 %v5671_v7, %v5670_v51  ;;  %v5672_v46 = vld [vmem:[#allocation2 + $0x4a] sm:$0xff] }
 0x4ec   : > { %v5703_v2 = vpack.c.bf16 %v5673_v22, %v5672_v46 }
 0x4f2   : > { %7611 = vmatmul.mubr.bf16.gmra.mrb[24].mxu1 %v5103_v9  ;;  %v5675_v9 = vld [vmem:[#allocation2 + $0x6a] sm:$0xff] }
 0x4f3   : > { %7614 = vmatprep.mubr.bf16.mxu1 %v9488_v54  ;;  %v8485_v54 = vld [vmem:[#allocation3 + $0x220] sm:$0xff]  }
 0x4fa   : > { %7615 = vmatmul.mubr.bf16.gmra.mrb[28].mxu1 %v5105_v60  ;;  %v5704_v60 = vpack.c.bf16 %v5675_v9, %v5674_v10 }
 0x4fb   : > { %7634 = vmatprep.mubr.bf16.mxu1 %v9491_v23  ;;  %v5375_v23 = vld [vmem:[#allocation2 + $0xb1] sm:$0xff] }
 0x502   : > { %7635 = vmatmul.mubr.bf16.vlgmr.msra.gmra.mrb[0].mxu1 %v9493_v5  ;;  %v5374_v5 = vld [vmem:[#allocation2 + $0xa9] sm:$0xff] }
 0x503   : > { %7638 = vmatprep.mubr.bf16.mxu1 %v9499_v11  ;;  %7667 = vmatpush3.bf16.msra.mxu1 %v8481_v16  ;;  %v5401_v11 = vpack.c.bf16 %v5375_v23, %v5374_v5  ;;  %v5391_v16 = vld [vmem:[#allocation2 + $0x171] sm:$0xff]  ;;  %v5682_v5 = vld [vmem:[#allocation2 + $0xc2] sm:$0xff] }
 0x504   : > { %7668 = vmatprep.subr.bf16.mxu1 %v8482_v12  ;;  %v5409_v38 = vpack.c.bf16 %v5391_v16, %v5390_v63  ;;  %v5680_v23 = vld [vmem:[#allocation2 + $0xaa] sm:$0xff]  ;;  %v5701_v63 = vld [vmem:[#allocation2 + $0x1a2] sm:$0xff] }
 0x507   : > { %7669 = vmatpush3.bf16.msra.mxu1 %v8482_v12  ;;  %v5676_v12 = vld [vmem:[#allocation2 + $0x7a] sm:$0xff] }
 0x508   : > { %7670 = vmatprep.subr.bf16.mxu1 %v8483_v59 }
 0x50a   : > { %7639 = vmatmul.mubr.bf16.gmra.mrb[4].mxu1 %v5399_v19  ;;  %v5679_v19 = vld [vmem:[#allocation2 + $0x9a] sm:$0xff] }
 0x50b   : > { %7642 = vmatprep.mubr.bf16.mxu1 %v9504_v48  ;;  %7671 = vmatpush3.bf16.msra.mxu1 %v8483_v59  ;;  %v5378_v48 = vld [vmem:[#allocation2 + $0xd9] sm:$0xff]  ;;  %v5677_v59 = vld [vmem:[#allocation2 + $0x82] sm:$0xff] }
 0x50c   : > { %7672 = vmatprep.subr.bf16.mxu1 %v8484_v56  ;;  %v5403_v4 = vpack.c.bf16 %v5379_v31, %v5378_v48  ;;  %v5685_v31 = vld [vmem:[#allocation2 + $0xe2] sm:$0xff]  ;;  %v5687_v48 = vld [vmem:[#allocation2 + $0xfa] sm:$0xff] }
 0x50d   : > { %v5710_v32 = vpack.c.bf16 %v5687_v48, %v5686_v53  ;;  %v9758_v53 = vld [vmem:[#allocation9_spill] sm:$0xff] }
 0x50e   : > { %v3200_v48 = vadd.f32 %v9549_v21, %v9758_v53 }
 0x50f   : > { %7673 = vmatpush3.bf16.msra.mxu1 %v8484_v56  ;;  %v5705_v56 = vpack.c.bf16 %v5677_v59, %v5676_v12  ;;  %v3198_v12 = vadd.f32 %v9549_v21, %v8897_v44  ;;  %v3201_v44 = vadd.f32 %v9549_v21, %v8919_v52 }
 0x510   : > { %7674 = vmatprep.subr.bf16.mxu1 %v8485_v54 }
 0x512   : > { %7643 = vmatmul.mubr.bf16.gmra.mrb[8].mxu1 %v5401_v11  ;;  %v5683_v11 = vld [vmem:[#allocation2 + $0xca] sm:$0xff] }
 0x513   : > { %7646 = vmatprep.mubr.bf16.mxu1 %v5402_v20  ;;  %7675 = vmatpush3.bf16.msra.mxu1 %v8485_v54  ;;  %v5706_v54 = vpack.c.bf16 %v5679_v19, %v5678_v58  ;;  %v5708_v20 = vpack.c.bf16 %v5683_v11, %v5682_v5  ;;  %v3196_v58 = vadd.f32 %v9549_v21, %v8892_v41 }
 0x514   : > { %7676 = vmatprep.subr.bf16.mxu1 %v8486_v0  ;;  %v3199_v41 = vadd.f32 %v9549_v21, %v8914_v50 }
 0x517   : > { %7677 = vmatpush3.bf16.msra.mxu1 %v8486_v0  ;;  %v5707_v0 = vpack.c.bf16 %v5681_v61, %v5680_v23 }
 0x518   : > { %7678 = vmatprep.subr.bf16.mxu1 %v8487_v25 }
 0x51a   : > { %7647 = vmatmul.mubr.bf16.gmra.mrb[12].mxu1 %v5403_v4 }
 0x51b   : > { %7650 = vmatprep.mubr.bf16.mxu1 %v5404_v18  ;;  %7679 = vmatpush3.bf16.msra.mxu1 %v8487_v25  ;;  %v5684_v25 = vld [vmem:[#allocation2 + $0xda] sm:$0xff]  ;;  %v5689_v18 = vld [vmem:[#allocation2 + $0x112] sm:$0xff] }
 0x51c   : > { %7680 = vmatprep.subr.bf16.mxu1 %v8488_v13  ;;  %v5709_v4 = vpack.c.bf16 %v5685_v31, %v5684_v25  ;;  %v3202_v25 = vadd.f32 %v9549_v21, %v8921_v55  ;;  %v9759_v55 = vld [vmem:[#allocation12_spill] sm:$0xff] }
 0x51f   : > { %7681 = vmatpush3.bf16.msra.mxu1 %v8488_v13  ;;  %v5688_v13 = vld [vmem:[#allocation2 + $0x10a] sm:$0xff] }
 0x520   : > { %v5711_v57 = vpack.c.bf16 %v5689_v18, %v5688_v13 }
 0x522   : > { %7651 = vmatmul.mubr.bf16.gmra.mrb[16].mxu1 %v5405_v26  ;;  %v5712_v26 = vpack.c.bf16 %v5691_v37, %v5690_v3 }
 0x523   : > { %7654 = vmatprep.mubr.bf16.mxu1 %v5406_v28  ;;  %v5693_v28 = vld [vmem:[#allocation2 + $0x142] sm:$0xff] }
 0x524   : > { %v5713_v24 = vpack.c.bf16 %v5693_v28, %v5692_v15  ;;  %v3205_v15 = vadd.f32 %v9549_v21, %v9759_v55 }
 0x52a   : > { %7655 = vmatmul.mubr.bf16.gmra.mrb[20].mxu1 %v5407_v30  ;;  %v5714_v30 = vpack.c.bf16 %v5695_v8, %v5694_v1  ;;  %v9760_v1 = vld [vmem:[#allocation10_spill] sm:$0xff] }
 0x52b   : > { %7658 = vmatprep.mubr.bf16.mxu1 %v5408_v6  ;;  %v5697_v6 = vld [vmem:[#allocation2 + $0x172] sm:$0xff]  ;;  %v3203_v8 = vadd.f32 %v9549_v21, %v9760_v1 }
 0x52c   : > { %v5715_v16 = vpack.c.bf16 %v5697_v6, %v5696_v29  ;;  %v9762_v6 = vld [vmem:[#allocation11_spill] sm:$0xff] }
 0x532   : > { %7659 = vmatmul.mubr.bf16.gmra.mrb[24].mxu1 %v5409_v38  ;;  %v5717_v38 = vpack.c.bf16 %v5701_v63, %v5700_v17 }
 0x533   : > { %7662 = vmatprep.mubr.bf16.mxu1 %v5410_v14  ;;  %v3193_v14 = vadd.f32 %v9549_v21, %v8875_v35 }
 0x53a   : > { %7663 = vmatmul.mubr.bf16.gmra.mrb[28].mxu1 %v5411_v62  ;;  %v3192_v62 = vadd.f32 %v9549_v21, %v8872_v34  ;;  %v3197_v34 = vadd.f32 %v9549_v21, %v8895_v43 }
 0x53b   : > { %7682 = vmatprep.mubr.bf16.mxu1 %v5702_v27 }
 0x542   : > { %7683 = vmatmul.mubr.bf16.vlgmr.msra.gmra.mrb[0].mxu1 %v5703_v2 }
 0x543   : > { %7686 = vmatprep.mubr.bf16.mxu1 %v5704_v60  ;;  %v3195_v60 = vadd.f32 %v9549_v21, %v8890_v40 }
 0x54a   : > { %7687 = vmatmul.mubr.bf16.gmra.mrb[4].mxu1 %v5705_v56 }
 0x54b   : > { %7690 = vmatprep.mubr.bf16.mxu1 %v5706_v54 }
 0x552   : > { %7691 = vmatmul.mubr.bf16.gmra.mrb[8].mxu1 %v5707_v0 }
 0x553   : > { %7694 = vmatprep.mubr.bf16.mxu1 %v5708_v20 }
 0x55a   : > { %7695 = vmatmul.mubr.bf16.gmra.mrb[12].mxu1 %v5709_v4 }
 0x55b   : > { %7698 = vmatprep.mubr.bf16.mxu1 %v5710_v32 }
 0x562   : > { %7699 = vmatmul.mubr.bf16.gmra.mrb[16].mxu1 %v5711_v57 }
 0x563   : > { %7702 = vmatprep.mubr.bf16.mxu1 %v5712_v26 }
 0x56a   : > { %7703 = vmatmul.mubr.bf16.gmra.mrb[20].mxu1 %v5713_v24  ;;  %v9761_v24 = vld [vmem:[#allocation13_spill] sm:$0xff] }
 0x56b   : > { %7706 = vmatprep.mubr.bf16.mxu1 %v5714_v30  ;;  %v3206_v30 = vadd.f32 %v9549_v21, %v9761_v24 }
 0x572   : > { %7707 = vmatmul.mubr.bf16.gmra.mrb[24].mxu1 %v5715_v16  ;;  %v3204_v16 = vadd.f32 %v9549_v21, %v9762_v6 }
 0x573   : > { %7710 = vmatprep.mubr.bf16.mxu1 %v9535_v45  ;;  %v3194_v45 = vadd.f32 %v9549_v21, %v8877_v36 }
 0x57a   : > { %7711 = vmatmul.mubr.bf16.gmra.mrb[28].mxu1 %v5717_v38 }
 0x615   : > { %v7684_v42 = vpop.f32.mrb[0].mxu1 }
 0x616   : > { %v7746_v51 = vadd.f32 %v7684_v42, %v3193_v14  ;;  %v5817_v7 = vpop.f32.mrb[1].mxu1 }
 0x617   : > { %v7747_v27 = vadd.f32 %v5817_v7, %v3191_v39  ;;  %v7685_v46 = vpop.f32.mrb[2].mxu1 }
 0x618   : > { %v5978_v22 = vmax.f32 %v7746_v51, 0.0  ;;  %v7748_v10 = vadd.f32 %v7685_v46, %v3194_v45  ;;  %v5820_v9 = vpop.f32.mrb[3].mxu1 }
 0x619   : > { %v5976_v35 = vmax.f32 %v7747_v27, 0.0  ;;  %v7749_v2 = vadd.f32 %v5820_v9, %v3192_v62  ;;  %v9763_v27 = vld [vmem:[#allocation16_spill] sm:$0xff] }
 0x61a   : > { %6010 = vst [vmem:[%s9562_s23 + $0x10] sm:$0xff] %v5978_v22  ;;  %v5979_v33 = vmax.f32 %v7748_v10, 0.0  ;;  %v3209_v46 = vadd.f32 %v9549_v21, %v9763_v27  ;;  %v9764_v10 = vld [vmem:[#allocation14_spill] sm:$0xff] }
 0x61b   : > { %6008 = vst [vmem:[%s9562_s23] sm:$0xff] %v5976_v35  ;;  %v5977_v36 = vmax.f32 %v7749_v2, 0.0  ;;  %v3207_v9 = vadd.f32 %v9549_v21, %v9764_v10  ;;  %v9765_v35 = vld [vmem:[#allocation17_spill] sm:$0xff]  ;;  %v3222_v10 = vadd.f32 %v9549_v21, %v9186_v49 }
 0x61c   : > { %6011 = vst [vmem:[%s9562_s23 + $0x18] sm:$0xff] %v5979_v33  ;;  %v3210_v2 = vadd.f32 %v9549_v21, %v9765_v35  ;;  %v9776_v35 = vld [vmem:[#allocation27_spill] sm:$0xff] }
 0x61d   : > { %6009 = vst [vmem:[%s9562_s23 + $0x8] sm:$0xff] %v5977_v36  ;;  %v7688_v59 = vpop.f32.mrb[4].mxu1 }
 0x61e   : > { %v7750_v19 = vadd.f32 %v7688_v59, %v3197_v34  ;;  %v5833_v56 = vpop.f32.mrb[5].mxu1  ;;  %v9766_v34 = vld [vmem:[#allocation15_spill] sm:$0xff] }
 0x61f   : > { %v7751_v43 = vadd.f32 %v5833_v56, %v3195_v60  ;;  %v7689_v54 = vpop.f32.mrb[6].mxu1  ;;  %v3208_v36 = vadd.f32 %v9549_v21, %v9766_v34 }
 0x620   : > { %v5982_v23 = vmax.f32 %v7750_v19, 0.0  ;;  %v7752_v61 = vadd.f32 %v7689_v54, %v3198_v12  ;;  %v5836_v5 = vpop.f32.mrb[7].mxu1 }
 0x621   : > { %v5980_v40 = vmax.f32 %v7751_v43, 0.0  ;;  %v7753_v11 = vadd.f32 %v5836_v5, %v3196_v58  ;;  %v9767_v5 = vld [vmem:[#allocation20_spill] sm:$0xff] }
 0x622   : > { %6014 = vst [vmem:[%s9562_s23 + $0x30] sm:$0xff] %v5982_v23  ;;  %v5983_v0 = vmax.f32 %v7752_v61, 0.0 }
 0x623   : > { %6012 = vst [vmem:[%s9562_s23 + $0x20] sm:$0xff] %v5980_v40  ;;  %v5981_v20 = vmax.f32 %v7753_v11, 0.0  ;;  %v3213_v40 = vadd.f32 %v9549_v21, %v9767_v5 }
 0x624   : > { %6015 = vst [vmem:[%s9562_s23 + $0x38] sm:$0xff] %v5983_v0  ;;  %v9768_v0 = vld [vmem:[#allocation18_spill] sm:$0xff] }
 0x625   : > { %6013 = vst [vmem:[%s9562_s23 + $0x28] sm:$0xff] %v5981_v20  ;;  %v7692_v31 = vpop.f32.mrb[8].mxu1  ;;  %v9769_v20 = vld [vmem:[#allocation21_spill] sm:$0xff] }
 0x626   : > { %v7754_v4 = vadd.f32 %v7692_v31, %v3201_v44  ;;  %v5849_v32 = vpop.f32.mrb[9].mxu1  ;;  %v3211_v44 = vadd.f32 %v9549_v21, %v9768_v0  ;;  %v9770_v31 = vld [vmem:[#allocation19_spill] sm:$0xff] }
 0x627   : > { %v7755_v52 = vadd.f32 %v5849_v32, %v3199_v41  ;;  %v7693_v13 = vpop.f32.mrb[10].mxu1  ;;  %v3214_v41 = vadd.f32 %v9549_v21, %v9769_v20  ;;  %v3212_v53 = vadd.f32 %v9549_v21, %v9770_v31 }
 0x628   : > { %v5986_v18 = vmax.f32 %v7754_v4, 0.0  ;;  %v7756_v3 = vadd.f32 %v7693_v13, %v3202_v25  ;;  %v5852_v37 = vpop.f32.mrb[11].mxu1 }
 0x629   : > { %v5984_v50 = vmax.f32 %v7755_v52, 0.0  ;;  %v7757_v57 = vadd.f32 %v5852_v37, %v3200_v48 }
 0x62a   : > { %6018 = vst [vmem:[%s9562_s23 + $0x50] sm:$0xff] %v5986_v18  ;;  %v5987_v26 = vmax.f32 %v7756_v3, 0.0 }
 0x62b   : > { %6016 = vst [vmem:[%s9562_s23 + $0x40] sm:$0xff] %v5984_v50  ;;  %v5985_v28 = vmax.f32 %v7757_v57, 0.0 }
 0x62c   : > { %6019 = vst [vmem:[%s9562_s23 + $0x58] sm:$0xff] %v5987_v26  ;;  %v9771_v26 = vld [vmem:[#allocation24_spill] sm:$0xff] }
 0x62d   : > { %6017 = vst [vmem:[%s9562_s23 + $0x48] sm:$0xff] %v5985_v28  ;;  %v7696_v29 = vpop.f32.mrb[12].mxu1  ;;  %v3217_v55 = vadd.f32 %v9549_v21, %v9771_v26  ;;  %v9772_v28 = vld [vmem:[#allocation22_spill] sm:$0xff] }
 0x62e   : > { %v7758_v17 = vadd.f32 %v7696_v29, %v3205_v15  ;;  %v5865_v63 = vpop.f32.mrb[13].mxu1  ;;  %v3215_v1 = vadd.f32 %v9549_v21, %v9772_v28  ;;  %v9774_v29 = vld [vmem:[#allocation23_spill] sm:$0xff] }
 0x62f   : > { %v7759_v38 = vadd.f32 %v5865_v63, %v3203_v8  ;;  %v7697_v14 = vpop.f32.mrb[14].mxu1  ;;  %v9773_v8 = vld [vmem:[#allocation25_spill] sm:$0xff]  ;;  %v3216_v6 = vadd.f32 %v9549_v21, %v9774_v29 }
 0x630   : > { %v5990_v39 = vmax.f32 %v7758_v17, 0.0  ;;  %v7760_v45 = vadd.f32 %v7697_v14, %v3206_v30  ;;  %v5868_v42 = vpop.f32.mrb[15].mxu1  ;;  %v3218_v24 = vadd.f32 %v9549_v21, %v9773_v8 }
 0x631   : > { %v5988_v62 = vmax.f32 %v7759_v38, 0.0  ;;  %v7761_v51 = vadd.f32 %v5868_v42, %v3204_v16 }
 0x632   : > { %6022 = vst [vmem:[%s9562_s23 + $0x70] sm:$0xff] %v5990_v39  ;;  %v5991_v7 = vmax.f32 %v7760_v45, 0.0 }
 0x633   : > { %6020 = vst [vmem:[%s9562_s23 + $0x60] sm:$0xff] %v5988_v62  ;;  %v5989_v22 = vmax.f32 %v7761_v51, 0.0 }
 0x634   : > { %6023 = vst [vmem:[%s9562_s23 + $0x78] sm:$0xff] %v5991_v7  ;;  %v3221_v7 = vadd.f32 %v9549_v21, %v9184_v47 }
 0x635   : > { %6021 = vst [vmem:[%s9562_s23 + $0x68] sm:$0xff] %v5989_v22  ;;  %v7700_v33 = vpop.f32.mrb[16].mxu1 }
 0x636   : > { %v7762_v60 = vadd.f32 %v7700_v33, %v3209_v46  ;;  %v5881_v12 = vpop.f32.mrb[17].mxu1  ;;  %v9775_v46 = vld [vmem:[#allocation26_spill] sm:$0xff] }
 0x637   : > { %v7763_v59 = vadd.f32 %v5881_v12, %v3207_v9  ;;  %v7701_v58 = vpop.f32.mrb[18].mxu1  ;;  %v3219_v22 = vadd.f32 %v9549_v21, %v9775_v46 }
 0x638   : > { %v5994_v19 = vmax.f32 %v7762_v60, 0.0  ;;  %v7764_v56 = vadd.f32 %v7701_v58, %v3210_v2  ;;  %v5884_v43 = vpop.f32.mrb[19].mxu1  ;;  %v3220_v2 = vadd.f32 %v9549_v21, %v9776_v35 }
 0x639   : > { %v5992_v54 = vmax.f32 %v7763_v59, 0.0  ;;  %v7765_v23 = vadd.f32 %v5884_v43, %v3208_v36 }
 0x63a   : > { %6026 = vst [vmem:[%s9562_s23 + $0x90] sm:$0xff] %v5994_v19  ;;  %v5995_v61 = vmax.f32 %v7764_v56, 0.0 }
 0x63b   : > { %6024 = vst [vmem:[%s9562_s23 + $0x80] sm:$0xff] %v5992_v54  ;;  %v5993_v11 = vmax.f32 %v7765_v23, 0.0 }
 0x63c   : > { %6027 = vst [vmem:[%s9562_s23 + $0x98] sm:$0xff] %v5995_v61 }
 0x63d   : > { %6025 = vst [vmem:[%s9562_s23 + $0x88] sm:$0xff] %v5993_v11  ;;  %v7704_v25 = vpop.f32.mrb[20].mxu1 }
 0x63e   : > { %v7766_v48 = vadd.f32 %v7704_v25, %v3213_v40  ;;  %v5897_v4 = vpop.f32.mrb[21].mxu1 }
 0x63f   : > { %v7767_v32 = vadd.f32 %v5897_v4, %v3211_v44  ;;  %v7705_v52 = vpop.f32.mrb[22].mxu1 }
 0x640   : > { %v5998_v13 = vmax.f32 %v7766_v48, 0.0  ;;  %v7768_v18 = vadd.f32 %v7705_v52, %v3214_v41  ;;  %v5900_v3 = vpop.f32.mrb[23].mxu1 }
 0x641   : > { %v5996_v37 = vmax.f32 %v7767_v32, 0.0  ;;  %v7769_v50 = vadd.f32 %v5900_v3, %v3212_v53 }
 0x642   : > { %6030 = vst [vmem:[%s9562_s23 + $0xb0] sm:$0xff] %v5998_v13  ;;  %v5999_v57 = vmax.f32 %v7768_v18, 0.0 }
 0x643   : > { %6028 = vst [vmem:[%s9562_s23 + $0xa0] sm:$0xff] %v5996_v37  ;;  %v5997_v15 = vmax.f32 %v7769_v50, 0.0 }
 0x644   : > { %6031 = vst [vmem:[%s9562_s23 + $0xb8] sm:$0xff] %v5999_v57 }
 0x645   : > { %6029 = vst [vmem:[%s9562_s23 + $0xa8] sm:$0xff] %v5997_v15  ;;  %v7708_v30 = vpop.f32.mrb[24].mxu1 }
 0x646   : > { %v7770_v16 = vadd.f32 %v7708_v30, %v3217_v55  ;;  %v5913_v17 = vpop.f32.mrb[25].mxu1 }
 0x647   : > { %v7771_v63 = vadd.f32 %v5913_v17, %v3215_v1  ;;  %v7709_v38 = vpop.f32.mrb[26].mxu1 }
 0x648   : > { %v6002_v14 = vmax.f32 %v7770_v16, 0.0  ;;  %v7772_v39 = vadd.f32 %v7709_v38, %v3218_v24  ;;  %v5916_v45 = vpop.f32.mrb[27].mxu1 }
 0x649   : > { %v6000_v42 = vmax.f32 %v7771_v63, 0.0  ;;  %v7773_v62 = vadd.f32 %v5916_v45, %v3216_v6 }
 0x64a   : > { %6034 = vst [vmem:[%s9562_s23 + $0xd0] sm:$0xff] %v6002_v14  ;;  %v6003_v51 = vmax.f32 %v7772_v39, 0.0 }
 0x64b   : > { %6032 = vst [vmem:[%s9562_s23 + $0xc0] sm:$0xff] %v6000_v42  ;;  %v6001_v27 = vmax.f32 %v7773_v62, 0.0 }
 0x64c   : > { %6035 = vst [vmem:[%s9562_s23 + $0xd8] sm:$0xff] %v6003_v51 }
 0x64d   : > { %6033 = vst [vmem:[%s9562_s23 + $0xc8] sm:$0xff] %v6001_v27  ;;  %v7712_v9 = vpop.f32.mrb[28].mxu1 }
 0x64e   : > { %v7774_v33 = vadd.f32 %v7712_v9, %v3221_v7  ;;  %v5929_v34 = vpop.f32.mrb[29].mxu1 }
 0x64f   : > { %v7775_v47 = vadd.f32 %v5929_v34, %v3219_v22  ;;  %v7713_v36 = vpop.f32.mrb[30].mxu1 }
 0x650   : > { %v6006_v60 = vmax.f32 %v7774_v33, 0.0  ;;  %v7776_v12 = vadd.f32 %v7713_v36, %v3222_v10  ;;  %v5932_v59 = vpop.f32.mrb[31].mxu1 }
 0x651   : > { %v6004_v49 = vmax.f32 %v7775_v47, 0.0  ;;  %v7777_v58 = vadd.f32 %v5932_v59, %v3220_v2 }
 0x652   : > { %6038 = vst [vmem:[%s9562_s23 + $0xf0] sm:$0xff] %v6006_v60  ;;  %v6007_v19 = vmax.f32 %v7776_v12, 0.0 }
 0x653   : > { %6036 = vst [vmem:[%s9562_s23 + $0xe0] sm:$0xff] %v6004_v49  ;;  %v6005_v21 = vmax.f32 %v7777_v58, 0.0 }
 0x654   : > { %6039 = vst [vmem:[%s9562_s23 + $0xf8] sm:$0xff] %v6007_v19 }
 0x655   : > { %6037 = vst [vmem:[%s9562_s23 + $0xe8] sm:$0xff] %v6005_v21 }
 0x656   : > { %8532 = shalt.err (!%p8529_p7)
}
 0x657   : > { %s8533_s12 = scalar_lea.hbm %s9654_s7, 4096  ;;  %s8537_s14 = scalar_lea.hbm %s9709_s5, 8192 }
 0x658   : > { %p8534_p8 = scmp.ne.s32.totalorder %s9654_s7, %s8533_s12  ;;  %p8538_p1 = scmp.lt.u32.totalorder %s9654_s7, %s9709_s5 }
 0x659   : > { %p8539_p0 = scmp.lt.u32.totalorder %s8537_s14, %s8533_s12  ;;  %p8541_p6 = scmp.lt.u32.totalorder %s8533_s12, %s9654_s7 }
 0x65a   : > { %p8535_p11 = pnand %p8534_p8, %p9777_p9 }
 0x65b   : > { %p8540_p5 = por %p8539_p0, %p8538_p1 }
 0x65c   : > { %p8536_p13 = pneg %p8535_p11 }
 0x65d   : > { %p8542_p10 = por %p8541_p6, %p8540_p5 }
 0x65f   : > { %p8543_p12 = pnand %p8542_p10, %p8536_p13 }
 0x661   : > { %8546 = shalt.err (!%p8543_p12)
}
 0x662   : > { %s8593_s23 = smov 128   ;;  %s8594_s25 = smov 8  }
 0x663   : > { %8294 = dma.vmem_to_hbm [thread:$0]  (%p9777_p9), %s9656_s26, 4096, %s9654_s7, %s9663_s22, %s8593_s23, %s8593_s23, %s8594_s25  }
 0x664 PF: > { %p8306_p2 = scmp.ge.s32.totalorder %s8585_s21, 2  ;;  %s6069_s30 = sand.u32 1, %s8573_s18  }
 0x665   : > { %p9778_p3 = scmp.ne.s32.totalorder %s9733_s29, 0  ;;  %s6070_s6 = scalar_lea.sflag [#allocation5], %s6069_s30 }
 0x667   : > { %p8301_p4 = pnand %p8306_p2, %p9778_p3 }
 0x669   : > { %8568 = dma.done.wait (!%p8301_p4), %s6070_s6, 4096  }
 0x66a   : > { %8570 = vsyncadd (!%p8301_p4), %s6070_s6, 4294963200  ;;  %p16_p7 = scmp.ge.s32.totalorder %s8650_s24, 4   ;;  %s9779_s18 = smov %s8577_s19 }
 0x66b   : > { %s9780_s19 = smov %s8581_s20  ;;  %s9781_s20 = smov %s8661_s27 }
 0x66c   : > { %s9782_s21 = smov %s8650_s24  ;;  %18 = sbr.rel (!%p16_p7) target bundleno = 4 (0x4), region = 98 }
 0x673   :  { %6075 = vsyncpa [#allocation4], 1 }
 0x674   :  { %6077 = vsyncpa [#allocation4 + $0x1], 1 }
 0x675   :  { %6078 = vsyncpa [#allocation5], 1 }
 0x676   :  { %6080 = vsyncpa [#allocation5 + $0x1], 1 }

</bundles_post_ra>
